<compile_context>
chip_gen: v6e
topology: v6e:2x2x1
jax: 0.10.0
libtpu: 0.0.40
codegen_flags: <defaults>
</compile_context>

<pallas_src>
import functools

import jax
import jax.numpy as jnp
from jax.experimental import pallas as pl
from jax.experimental.pallas import tpu as pltpu

N_ATOM_TYPE = 120
N_CHIRALITY = 3
N_BOND_TYPE = 6
N_BOND_DIR = 3


# ---------------------------------------------------------------------------
# In-kernel helpers
# ---------------------------------------------------------------------------
def _gin_mlp(agg_f32, w1_ref, b1_ref, w2_ref, b2_ref, apply_relu):
    hid = jnp.dot(agg_f32.astype(jnp.bfloat16), w1_ref[...],
                  preferred_element_type=jnp.float32) + b1_ref[...]
    hid = jnp.maximum(hid, 0.0)
    out = jnp.dot(hid.astype(jnp.bfloat16), w2_ref[...],
                  preferred_element_type=jnp.float32) + b2_ref[...]
    if apply_relu:
        out = jnp.maximum(out, 0.0)
    return out


def _gin_layer_kernel(adj_ref, h_ref, eagg_ref, w1_ref, b1_ref, w2_ref, b2_ref,
                      out_ref, acc_ref, *, apply_relu):
    """One GIN layer: out[dst_blk] = MLP(sum_src adj_blk @ h_blk + edge_agg)."""
    sb = pl.program_id(1)                           # src block = reduction axis

    @pl.when(sb == 0)
    def _():
        acc_ref[...] = jnp.zeros_like(acc_ref)

    # adj diagonal carries the '+ h' self message (folded in the wrapper).
    acc_ref[...] += jnp.dot(adj_ref[...], h_ref[...],
                            preferred_element_type=jnp.float32)

    @pl.when(sb == pl.num_programs(1) - 1)
    def _():
        agg = acc_ref[...] + eagg_ref[...].astype(jnp.float32)
        out = _gin_mlp(agg, w1_ref, b1_ref, w2_ref, b2_ref, apply_relu)
        out_ref[...] = out.astype(out_ref.dtype)


def _gin_final_enc_kernel(adj_ref, h_ref, eagg_ref, w1_ref, b1_ref, w2_ref,
                          b2_ref, keep_ref, e2d_ref,
                          node_rep_ref, dec_in_ref, acc_ref):
    """Last encoder GIN layer fused with encoder_to_decoder + row masking."""
    sb = pl.program_id(1)

    @pl.when(sb == 0)
    def _():
        acc_ref[...] = jnp.zeros_like(acc_ref)

    acc_ref[...] += jnp.dot(adj_ref[...], h_ref[...],
                            preferred_element_type=jnp.float32)

    @pl.when(sb == pl.num_programs(1) - 1)
    def _():
        agg = acc_ref[...] + eagg_ref[...].astype(jnp.float32)
        node_rep = _gin_mlp(agg, w1_ref, b1_ref, w2_ref, b2_ref,
                            apply_relu=False)
        node_rep_ref[...] = node_rep
        # dec_in = (keep * node_rep) @ W_e2d  ==  keep * (node_rep @ W_e2d)
        masked = (node_rep * keep_ref[...].astype(jnp.float32)).astype(jnp.bfloat16)
        dec_in = jnp.dot(masked, e2d_ref[...], preferred_element_type=jnp.float32)
        dec_in_ref[...] = dec_in.astype(dec_in_ref.dtype)


# ---------------------------------------------------------------------------
# pallas_call wrappers
# ---------------------------------------------------------------------------
def _specs(d, tile):
    adj_spec = pl.BlockSpec((tile, tile), lambda i, j: (i, j))
    h_spec = pl.BlockSpec((tile, d), lambda i, j: (j, 0))
    row_spec = lambda: pl.BlockSpec((tile, d), lambda i, j: (i, 0))
    full_spec = lambda arr: pl.BlockSpec(arr.shape, lambda i, j: (0,) * arr.ndim)
    return adj_spec, h_spec, row_spec, full_spec


def _compiler_params(tile, d):
    bf, f4 = 2, 4
    need = (2 * tile * tile * bf            # adj, double-buffered
            + 2 * tile * d * bf * 3         # h / edge_agg / keep
            + 2 * tile * d * f4 * 2         # up to two f32 outputs
            + tile * d * f4                 # accumulator
            + (d * 2 * d + 2 * d * d + d * d) * bf   # w1, w2, e2d
            + (2 * d + d) * f4)             # biases
    limit = int(min(need * 2 + (8 << 20), 64 << 20))   # headroom, v7x-safe cap
    return pltpu.CompilerParams(
        dimension_semantics=("parallel", "arbitrary"),
        vmem_limit_bytes=limit)


def _cost(np_, d, extra_e2d=False):
    flops = 2 * np_ * np_ * d + 2 * np_ * d * (2 * d) + 2 * np_ * (2 * d) * d
    if extra_e2d:
        flops += 2 * np_ * d * d
    bytes_accessed = (np_ * np_ * 2 + 4 * np_ * d * 2 + np_ * d * 4
                      + (d * 2 * d + 2 * d * d + d * d) * 2)
    return pl.CostEstimate(flops=int(flops), transcendentals=0,
                           bytes_accessed=int(bytes_accessed))


def gin_layer(adj, h, eagg, w1, b1, w2, b2, *, tile, apply_relu, out_dtype):
    np_, d = h.shape
    nb = np_ // tile
    adj_spec, h_spec, row_spec, full_spec = _specs(d, tile)
    kernel = functools.partial(_gin_layer_kernel, apply_relu=apply_relu)
    return pl.pallas_call(
        kernel,
        out_shape=jax.ShapeDtypeStruct((np_, d), out_dtype),
        grid_spec=pltpu.PrefetchScalarGridSpec(
            num_scalar_prefetch=0,
            grid=(nb, nb),
            in_specs=[adj_spec, h_spec, row_spec(),
                      full_spec(w1), full_spec(b1), full_spec(w2), full_spec(b2)],
            out_specs=row_spec(),
            scratch_shapes=[pltpu.VMEM((tile, d), jnp.float32)]),
        compiler_params=_compiler_params(tile, d),
        cost_estimate=_cost(np_, d),
    )(adj, h, eagg, w1, b1, w2, b2)


def gin_final_encoder(adj, h, eagg, w1, b1, w2, b2, keep, e2d, *, tile):
    np_, d = h.shape
    nb = np_ // tile
    adj_spec, h_spec, row_spec, full_spec = _specs(d, tile)
    return pl.pallas_call(
        _gin_final_enc_kernel,
        out_shape=(jax.ShapeDtypeStruct((np_, d), jnp.float32),    # node_rep
                   jax.ShapeDtypeStruct((np_, d), jnp.bfloat16)),  # dec_in
        grid_spec=pltpu.PrefetchScalarGridSpec(
            num_scalar_prefetch=0,
            grid=(nb, nb),
            in_specs=[adj_spec, h_spec, row_spec(),
                      full_spec(w1), full_spec(b1), full_spec(w2), full_spec(b2),
                      row_spec(), full_spec(e2d)],
            out_specs=(row_spec(), row_spec()),
            scratch_shapes=[pltpu.VMEM((tile, d), jnp.float32)]),
        compiler_params=_compiler_params(tile, d),
        cost_estimate=_cost(np_, d, extra_e2d=True),
    )(adj, h, eagg, w1, b1, w2, b2, keep, e2d)


# ---------------------------------------------------------------------------
# Parameters (deterministic, in-script); f32 masters, cast to bf16 at call time
# ---------------------------------------------------------------------------
def init_params(key, emb_dim=128, num_layers=2):
    d = emb_dim
    ks = jax.random.split(key, 16)
    r = lambda k, s: 0.02 * jax.random.normal(k, s, jnp.float32)
    return {
        "atom_emb_type": r(ks[0], (N_ATOM_TYPE, d)),
        "atom_emb_chir": r(ks[1], (N_CHIRALITY, d)),
        "enc2dec_w":     r(ks[2], (d, d)),
        "enc_w1": r(ks[3], (num_layers, d, 2 * d)),
        "enc_b1": r(ks[4], (num_layers, 1, 2 * d)),
        "enc_w2": r(ks[5], (num_layers, 2 * d, d)),
        "enc_b2": r(ks[6], (num_layers, 1, d)),
        "enc_bond_type": r(ks[7], (num_layers, N_BOND_TYPE, d)),
        "enc_bond_dir":  r(ks[8], (num_layers, N_BOND_DIR, d)),
        "dec_w1": r(ks[9],  (d, 2 * d)),
        "dec_b1": r(ks[10], (1, 2 * d)),
        "dec_w2": r(ks[11], (2 * d, d)),
        "dec_b2": r(ks[12], (1, d)),
        "dec_bond_type": r(ks[13], (N_BOND_TYPE, d)),
        "dec_bond_dir":  r(ks[14], (N_BOND_DIR, d)),
    }


# ---------------------------------------------------------------------------
# MoAMa forward (x / edge_index may be a PyG-style batch of molecules, i.e. a
# single big block-diagonal graph — that is exactly what feeds the MXU well).
# ---------------------------------------------------------------------------
def moama_forward(params, x, edge_index, edge_attr, masked_atom_mask, *, tile=None):
    n = x.shape[0]
    d = params["atom_emb_type"].shape[1]
    num_layers = params["enc_w1"].shape[0]
    np_ = max(128, -(-n // 128) * 128)            # pad node dim to multiple of 128
    if tile is None:
        tile = 512 if np_ % 512 == 0 else (256 if np_ % 256 == 0 else 128)
    assert np_ % tile == 0

    src, dst = edge_index[0], edge_index[1]

    # Dense adjacency built DIRECTLY in bf16; diagonal = 1 folds in the GIN
    # '+ h' self message (padded rows have h == 0, so their diag is harmless).
    adj = jnp.eye(np_, dtype=jnp.bfloat16).at[dst, src].add(1.0)

    # Initial atom embeddings, padded.
    h0 = params["atom_emb_type"][x[:, 0]] + params["atom_emb_chir"][x[:, 1]]
    h0 = jnp.pad(h0.astype(jnp.bfloat16), ((0, np_ - n), (0, 0)))

    # One batched gather + segment_sum for ALL layers' edge-embedding sums.
    type_tables = jnp.concatenate(
        [params["enc_bond_type"], params["dec_bond_type"][None]], axis=0)
    dir_tables = jnp.concatenate(
        [params["enc_bond_dir"], params["dec_bond_dir"][None]], axis=0)
    e_all = type_tables[:, edge_attr[:, 0], :] + dir_tables[:, edge_attr[:, 1], :]
    edge_agg = jax.vmap(
        lambda e: jax.ops.segment_sum(e, dst, num_segments=np_))(e_all)
    edge_agg = edge_agg.astype(jnp.bfloat16)                      # [L+1, Np, D]

    # Lane-dense keep matrix (1.0 = keep row, 0.0 = masked row).
    keep = 1.0 - masked_atom_mask.astype(jnp.float32)
    keep = jnp.pad(keep, (0, np_ - n))
    keep = jnp.broadcast_to(keep[:, None], (np_, d)).astype(jnp.bfloat16)

    bf = lambda a: a.astype(jnp.bfloat16)

    # --- encoder layers 0..L-2 (ReLU between layers, bf16 h round-trips) ---
    h = h0
    for li in range(num_layers - 1):
        h = gin_layer(adj, h, edge_agg[li],
                      bf(params["enc_w1"][li]), params["enc_b1"][li],
                      bf(params["enc_w2"][li]), params["enc_b2"][li],
                      tile=tile, apply_relu=True, out_dtype=jnp.bfloat16)

    # --- last encoder layer fused with encoder_to_decoder + row masking ---
    li = num_layers - 1
    node_rep, dec_in = gin_final_encoder(
        adj, h, edge_agg[li],
        bf(params["enc_w1"][li]), params["enc_b1"][li],
        bf(params["enc_w2"][li]), params["enc_b2"][li],
        keep, bf(params["enc2dec_w"]), tile=tile)

    # --- decoder: single GINConv on the masked projection ---
    dec_out = gin_layer(adj, dec_in, edge_agg[num_layers],
                        bf(params["dec_w1"]), params["dec_b1"],
                        bf(params["dec_w2"]), params["dec_b2"],
                        tile=tile, apply_relu=False, out_dtype=jnp.float32)

    return node_rep[:n], dec_out[:n]


if __name__ == "__main__":
    # PyG-style batch: 12 molecules x 16 atoms = 192 nodes -> Np = 256, so the
    # (dst-block, src-block) grid is (2, 2) at tile=128 and the accumulator /
    # reduction path is actually exercised while shapes stay small.
    NUM_MOL, N_PER, E_PER, D = 12, 16, 32, 128
    N, E = NUM_MOL * N_PER, NUM_MOL * E_PER

    key = jax.random.PRNGKey(0)
    kx1, kx2, ke1, ke2, ka1, ka2, km, kp = jax.random.split(key, 8)

    x = jnp.stack([
        jax.random.randint(kx1, (N,), 0, N_ATOM_TYPE, dtype=jnp.int32),
        jax.random.randint(kx2, (N,), 0, N_CHIRALITY, dtype=jnp.int32),
    ], axis=1)                                                    # [N, 2]

    # intra-molecule edges only (block-diagonal adjacency)
    src_local = jax.random.randint(ke1, (NUM_MOL, E_PER), 0, N_PER, jnp.int32)
    dst_local = jax.random.randint(ke2, (NUM_MOL, E_PER), 0, N_PER, jnp.int32)
    offsets = (jnp.arange(NUM_MOL, dtype=jnp.int32) * N_PER)[:, None]
    edge_index = jnp.stack([(src_local + offsets).reshape(-1),
                            (dst_local + offsets).reshape(-1)], axis=0)  # [2, E]
    edge_attr = jnp.stack([
        jax.random.randint(ka1, (E,), 0, N_BOND_TYPE, dtype=jnp.int32),
        jax.random.randint(ka2, (E,), 0, N_BOND_DIR, dtype=jnp.int32),
    ], axis=1)                                                    # [E, 2]
    masked_atom_mask = jax.random.bernoulli(km, 0.25, (N,))       # [N] bool

    params = init_params(kp, emb_dim=D, num_layers=2)

    fwd = jax.jit(moama_forward, static_argnames=("tile",))
    node_rep, dec_out = fwd(params, x, edge_index, edge_attr,
                            masked_atom_mask, tile=128)
    jax.block_until_ready((node_rep, dec_out))

    assert node_rep.shape == (N, D) and dec_out.shape == (N, D)
    assert bool(jnp.all(jnp.isfinite(node_rep)))
    assert bool(jnp.all(jnp.isfinite(dec_out)))
    print("KERNEL_OK")
</pallas_src>

<mosaic_0001>
module attributes {stable_mosaic.version = 11 : i64} {
  func.func @_gin_layer_kernel(%arg0: i32, %arg1: i32, %arg2: memref<128x128xbf16, #tpu.memory_space<vmem>>, %arg3: memref<128x128xbf16, #tpu.memory_space<vmem>>, %arg4: memref<128x128xbf16, #tpu.memory_space<vmem>>, %arg5: memref<128x256xbf16, #tpu.memory_space<vmem>>, %arg6: memref<1x256xf32, #tpu.memory_space<vmem>>, %arg7: memref<256x128xbf16, #tpu.memory_space<vmem>>, %arg8: memref<1x128xf32, #tpu.memory_space<vmem>>, %arg9: memref<128x128xbf16, #tpu.memory_space<vmem>>, %arg10: memref<128x128xf32, #tpu.memory_space<vmem>>) attributes {dimension_semantics = [#tpu.dimension_semantics<parallel>, #tpu.dimension_semantics<arbitrary>], iteration_bounds = array<i64: 2, 2>, scalar_prefetch = 0 : i64, scratch_operands = 1 : i64, tpu.core_type = #tpu.core_type<tc>, window_params = [{transform_indices = @transform_0, window_bounds = array<i64: 128, 128>}, {transform_indices = @transform_1, window_bounds = array<i64: 128, 128>}, {transform_indices = @transform_2, window_bounds = array<i64: 128, 128>}, {pipeline_mode = #tpu.pipeline_mode<synchronous>, transform_indices = @transform_3, window_bounds = array<i64: 128, 256>}, {pipeline_mode = #tpu.pipeline_mode<synchronous>, transform_indices = @transform_4, window_bounds = array<i64: 1, 256>}, {pipeline_mode = #tpu.pipeline_mode<synchronous>, transform_indices = @transform_5, window_bounds = array<i64: 256, 128>}, {pipeline_mode = #tpu.pipeline_mode<synchronous>, transform_indices = @transform_6, window_bounds = array<i64: 1, 128>}, {transform_indices = @transform_7, window_bounds = array<i64: 128, 128>}]} {
    %c0_i32 = arith.constant 0 : i32
    %0 = arith.cmpi eq, %arg1, %c0_i32 : i32
    %1 = arith.extui %0 : i1 to i32
    %c0_i32_0 = arith.constant 0 : i32
    %2 = arith.cmpi ne, %1, %c0_i32_0 : i32
    scf.if %2 {
      %cst_9 = arith.constant 0.000000e+00 : f32
      %12 = vector.broadcast %cst_9 : f32 to vector<128x128xf32>
      %c0_10 = arith.constant 0 : index
      %c0_11 = arith.constant 0 : index
      %13 = vector.load %arg10[%c0_10, %c0_11] : memref<128x128xf32, #tpu.memory_space<vmem>>, vector<128x128xf32>
      tpu.vector_store %arg10[%c0_10, %c0_11], %12 {strides = array<i32>} : memref<128x128xf32, #tpu.memory_space<vmem>>, vector<128x128xf32>,
    } else {
    }
    %c0 = arith.constant 0 : index
    %c0_1 = arith.constant 0 : index
    %3 = vector.load %arg10[%c0, %c0_1] : memref<128x128xf32, #tpu.memory_space<vmem>>, vector<128x128xf32>
    %c0_2 = arith.constant 0 : index
    %c0_3 = arith.constant 0 : index
    %4 = vector.load %arg2[%c0_2, %c0_3] : memref<128x128xbf16, #tpu.memory_space<vmem>>, vector<128x128xbf16>
    %c0_4 = arith.constant 0 : index
    %c0_5 = arith.constant 0 : index
    %5 = vector.load %arg3[%c0_4, %c0_5] : memref<128x128xbf16, #tpu.memory_space<vmem>>, vector<128x128xbf16>
    %cst = arith.constant dense<0.000000e+00> : vector<128x128xf32>
    %6 = tpu.matmul %4, %5, %cst {dimension_numbers = #tpu.dot_dimension_numbers<[1], [0], [0], [1], [0, 0, 1, 1], [], []>} : vector<128x128xbf16>, vector<128x128xbf16>, vector<128x128xf32> -> vector<128x128xf32>
    %7 = arith.addf %3, %6 : vector<128x128xf32>
    %c0_6 = arith.constant 0 : index
    %c0_7 = arith.constant 0 : index
    %8 = vector.load %arg10[%c0_6, %c0_7] : memref<128x128xf32, #tpu.memory_space<vmem>>, vector<128x128xf32>
    tpu.vector_store %arg10[%c0_6, %c0_7], %7 {strides = array<i32>} : memref<128x128xf32, #tpu.memory_space<vmem>>, vector<128x128xf32>,
    %c1_i32 = arith.constant 1 : i32
    %9 = arith.cmpi eq, %arg1, %c1_i32 : i32
    %10 = arith.extui %9 : i1 to i32
    %c0_i32_8 = arith.constant 0 : i32
    %11 = arith.cmpi ne, %10, %c0_i32_8 : i32
    scf.if %11 {
      %c0_9 = arith.constant 0 : index
      %c0_10 = arith.constant 0 : index
      %12 = vector.load %arg10[%c0_9, %c0_10] : memref<128x128xf32, #tpu.memory_space<vmem>>, vector<128x128xf32>
      %c0_11 = arith.constant 0 : index
      %c0_12 = arith.constant 0 : index
      %13 = vector.load %arg4[%c0_11, %c0_12] : memref<128x128xbf16, #tpu.memory_space<vmem>>, vector<128x128xbf16>
      %14 = arith.extf %13 : vector<128x128xbf16> to vector<128x128xf32>
      %15 = arith.addf %12, %14 : vector<128x128xf32>
      %16 = arith.truncf %15 : vector<128x128xf32> to vector<128x128xbf16>
      %c0_13 = arith.constant 0 : index
      %c0_14 = arith.constant 0 : index
      %17 = vector.load %arg5[%c0_13, %c0_14] : memref<128x256xbf16, #tpu.memory_space<vmem>>, vector<128x256xbf16>
      %cst_15 = arith.constant dense<0.000000e+00> : vector<128x256xf32>
      %18 = tpu.matmul %16, %17, %cst_15 {dimension_numbers = #tpu.dot_dimension_numbers<[1], [0], [0], [1], [0, 0, 1, 1], [], []>} : vector<128x128xbf16>, vector<128x256xbf16>, vector<128x256xf32> -> vector<128x256xf32>
      %c0_16 = arith.constant 0 : index
      %c0_17 = arith.constant 0 : index
      %19 = vector.load %arg6[%c0_16, %c0_17] : memref<1x256xf32, #tpu.memory_space<vmem>>, vector<1x256xf32>
      %20 = vector.broadcast %19 : vector<1x256xf32> to vector<128x256xf32>
      %21 = arith.addf %18, %20 : vector<128x256xf32>
      %cst_18 = arith.constant 0.000000e+00 : f32
      %22 = vector.broadcast %cst_18 : f32 to vector<128x256xf32>
      %23 = arith.maximumf %21, %22 : vector<128x256xf32>
      %24 = arith.truncf %23 : vector<128x256xf32> to vector<128x256xbf16>
      %c0_19 = arith.constant 0 : index
      %c0_20 = arith.constant 0 : index
      %25 = vector.load %arg7[%c0_19, %c0_20] : memref<256x128xbf16, #tpu.memory_space<vmem>>, vector<256x128xbf16>
      %cst_21 = arith.constant dense<0.000000e+00> : vector<128x128xf32>
      %26 = tpu.matmul %24, %25, %cst_21 {dimension_numbers = #tpu.dot_dimension_numbers<[1], [0], [0], [1], [0, 0, 1, 1], [], []>} : vector<128x256xbf16>, vector<256x128xbf16>, vector<128x128xf32> -> vector<128x128xf32>
      %c0_22 = arith.constant 0 : index
      %c0_23 = arith.constant 0 : index
      %27 = vector.load %arg8[%c0_22, %c0_23] : memref<1x128xf32, #tpu.memory_space<vmem>>, vector<1x128xf32>
      %28 = vector.broadcast %27 : vector<1x128xf32> to vector<128x128xf32>
      %29 = arith.addf %26, %28 : vector<128x128xf32>
      %cst_24 = arith.constant 0.000000e+00 : f32
      %30 = vector.broadcast %cst_24 : f32 to vector<128x128xf32>
      %31 = arith.maximumf %29, %30 : vector<128x128xf32>
      %32 = arith.truncf %31 : vector<128x128xf32> to vector<128x128xbf16>
      %c0_25 = arith.constant 0 : index
      %c0_26 = arith.constant 0 : index
      %33 = vector.load %arg9[%c0_25, %c0_26] : memref<128x128xbf16, #tpu.memory_space<vmem>>, vector<128x128xbf16>
      tpu.vector_store %arg9[%c0_25, %c0_26], %32 {strides = array<i32>} : memref<128x128xbf16, #tpu.memory_space<vmem>>, vector<128x128xbf16>,
    } else {
    }
    return
  }
  func.func @transform_0(%arg0: i32, %arg1: i32) -> (i32, i32) {
    %c0_i32 = arith.constant 0 : i32
    return %arg0, %arg1 : i32, i32
  }
  func.func @transform_1(%arg0: i32, %arg1: i32) -> (i32, i32) {
    %c0_i32 = arith.constant 0 : i32
    %c0_i32_0 = arith.constant 0 : i32
    return %arg1, %c0_i32 : i32, i32
  }
  func.func @transform_2(%arg0: i32, %arg1: i32) -> (i32, i32) {
    %c0_i32 = arith.constant 0 : i32
    %c0_i32_0 = arith.constant 0 : i32
    return %arg0, %c0_i32 : i32, i32
  }
  func.func @transform_3(%arg0: i32, %arg1: i32) -> (i32, i32) {
    %c0_i32 = arith.constant 0 : i32
    %c0_i32_0 = arith.constant 0 : i32
    %c0_i32_1 = arith.constant 0 : i32
    return %c0_i32, %c0_i32_0 : i32, i32
  }
  func.func @transform_4(%arg0: i32, %arg1: i32) -> (i32, i32) {
    %c0_i32 = arith.constant 0 : i32
    %c0_i32_0 = arith.constant 0 : i32
    %c0_i32_1 = arith.constant 0 : i32
    return %c0_i32, %c0_i32_0 : i32, i32
  }
  func.func @transform_5(%arg0: i32, %arg1: i32) -> (i32, i32) {
    %c0_i32 = arith.constant 0 : i32
    %c0_i32_0 = arith.constant 0 : i32
    %c0_i32_1 = arith.constant 0 : i32
    return %c0_i32, %c0_i32_0 : i32, i32
  }
  func.func @transform_6(%arg0: i32, %arg1: i32) -> (i32, i32) {
    %c0_i32 = arith.constant 0 : i32
    %c0_i32_0 = arith.constant 0 : i32
    %c0_i32_1 = arith.constant 0 : i32
    return %c0_i32, %c0_i32_0 : i32, i32
  }
  func.func @transform_7(%arg0: i32, %arg1: i32) -> (i32, i32) {
    %c0_i32 = arith.constant 0 : i32
    %c0_i32_0 = arith.constant 0 : i32
    return %arg0, %c0_i32 : i32, i32
  }
}

module attributes {stable_mosaic.version = 11 : i64} {
  func.func @_gin_final_enc_kernel(%arg0: i32, %arg1: i32, %arg2: memref<128x128xbf16, #tpu.memory_space<vmem>>, %arg3: memref<128x128xbf16, #tpu.memory_space<vmem>>, %arg4: memref<128x128xbf16, #tpu.memory_space<vmem>>, %arg5: memref<128x256xbf16, #tpu.memory_space<vmem>>, %arg6: memref<1x256xf32, #tpu.memory_space<vmem>>, %arg7: memref<256x128xbf16, #tpu.memory_space<vmem>>, %arg8: memref<1x128xf32, #tpu.memory_space<vmem>>, %arg9: memref<128x128xbf16, #tpu.memory_space<vmem>>, %arg10: memref<128x128xbf16, #tpu.memory_space<vmem>>, %arg11: memref<128x128xf32, #tpu.memory_space<vmem>>, %arg12: memref<128x128xbf16, #tpu.memory_space<vmem>>, %arg13: memref<128x128xf32, #tpu.memory_space<vmem>>) attributes {dimension_semantics = [#tpu.dimension_semantics<parallel>, #tpu.dimension_semantics<arbitrary>], iteration_bounds = array<i64: 2, 2>, scalar_prefetch = 0 : i64, scratch_operands = 1 : i64, tpu.core_type = #tpu.core_type<tc>, window_params = [{transform_indices = @transform_0, window_bounds = array<i64: 128, 128>}, {transform_indices = @transform_1, window_bounds = array<i64: 128, 128>}, {transform_indices = @transform_2, window_bounds = array<i64: 128, 128>}, {pipeline_mode = #tpu.pipeline_mode<synchronous>, transform_indices = @transform_3, window_bounds = array<i64: 128, 256>}, {pipeline_mode = #tpu.pipeline_mode<synchronous>, transform_indices = @transform_4, window_bounds = array<i64: 1, 256>}, {pipeline_mode = #tpu.pipeline_mode<synchronous>, transform_indices = @transform_5, window_bounds = array<i64: 256, 128>}, {pipeline_mode = #tpu.pipeline_mode<synchronous>, transform_indices = @transform_6, window_bounds = array<i64: 1, 128>}, {transform_indices = @transform_7, window_bounds = array<i64: 128, 128>}, {pipeline_mode = #tpu.pipeline_mode<synchronous>, transform_indices = @transform_8, window_bounds = array<i64: 128, 128>}, {transform_indices = @transform_9, window_bounds = array<i64: 128, 128>}, {transform_indices = @transform_10, window_bounds = array<i64: 128, 128>}]} {
    %c0_i32 = arith.constant 0 : i32
    %0 = arith.cmpi eq, %arg1, %c0_i32 : i32
    %1 = arith.extui %0 : i1 to i32
    %c0_i32_0 = arith.constant 0 : i32
    %2 = arith.cmpi ne, %1, %c0_i32_0 : i32
    scf.if %2 {
      %cst_9 = arith.constant 0.000000e+00 : f32
      %12 = vector.broadcast %cst_9 : f32 to vector<128x128xf32>
      %c0_10 = arith.constant 0 : index
      %c0_11 = arith.constant 0 : index
      %13 = vector.load %arg13[%c0_10, %c0_11] : memref<128x128xf32, #tpu.memory_space<vmem>>, vector<128x128xf32>
      tpu.vector_store %arg13[%c0_10, %c0_11], %12 {strides = array<i32>} : memref<128x128xf32, #tpu.memory_space<vmem>>, vector<128x128xf32>,
    } else {
    }
    %c0 = arith.constant 0 : index
    %c0_1 = arith.constant 0 : index
    %3 = vector.load %arg13[%c0, %c0_1] : memref<128x128xf32, #tpu.memory_space<vmem>>, vector<128x128xf32>
    %c0_2 = arith.constant 0 : index
    %c0_3 = arith.constant 0 : index
    %4 = vector.load %arg2[%c0_2, %c0_3] : memref<128x128xbf16, #tpu.memory_space<vmem>>, vector<128x128xbf16>
    %c0_4 = arith.constant 0 : index
    %c0_5 = arith.constant 0 : index
    %5 = vector.load %arg3[%c0_4, %c0_5] : memref<128x128xbf16, #tpu.memory_space<vmem>>, vector<128x128xbf16>
    %cst = arith.constant dense<0.000000e+00> : vector<128x128xf32>
    %6 = tpu.matmul %4, %5, %cst {dimension_numbers = #tpu.dot_dimension_numbers<[1], [0], [0], [1], [0, 0, 1, 1], [], []>} : vector<128x128xbf16>, vector<128x128xbf16>, vector<128x128xf32> -> vector<128x128xf32>
    %7 = arith.addf %3, %6 : vector<128x128xf32>
    %c0_6 = arith.constant 0 : index
    %c0_7 = arith.constant 0 : index
    %8 = vector.load %arg13[%c0_6, %c0_7] : memref<128x128xf32, #tpu.memory_space<vmem>>, vector<128x128xf32>
    tpu.vector_store %arg13[%c0_6, %c0_7], %7 {strides = array<i32>} : memref<128x128xf32, #tpu.memory_space<vmem>>, vector<128x128xf32>,
    %c1_i32 = arith.constant 1 : i32
    %9 = arith.cmpi eq, %arg1, %c1_i32 : i32
    %10 = arith.extui %9 : i1 to i32
    %c0_i32_8 = arith.constant 0 : i32
    %11 = arith.cmpi ne, %10, %c0_i32_8 : i32
    scf.if %11 {
      %c0_9 = arith.constant 0 : index
      %c0_10 = arith.constant 0 : index
      %12 = vector.load %arg13[%c0_9, %c0_10] : memref<128x128xf32, #tpu.memory_space<vmem>>, vector<128x128xf32>
      %c0_11 = arith.constant 0 : index
      %c0_12 = arith.constant 0 : index
      %13 = vector.load %arg4[%c0_11, %c0_12] : memref<128x128xbf16, #tpu.memory_space<vmem>>, vector<128x128xbf16>
      %14 = arith.extf %13 : vector<128x128xbf16> to vector<128x128xf32>
      %15 = arith.addf %12, %14 : vector<128x128xf32>
      %16 = arith.truncf %15 : vector<128x128xf32> to vector<128x128xbf16>
      %c0_13 = arith.constant 0 : index
      %c0_14 = arith.constant 0 : index
      %17 = vector.load %arg5[%c0_13, %c0_14] : memref<128x256xbf16, #tpu.memory_space<vmem>>, vector<128x256xbf16>
      %cst_15 = arith.constant dense<0.000000e+00> : vector<128x256xf32>
      %18 = tpu.matmul %16, %17, %cst_15 {dimension_numbers = #tpu.dot_dimension_numbers<[1], [0], [0], [1], [0, 0, 1, 1], [], []>} : vector<128x128xbf16>, vector<128x256xbf16>, vector<128x256xf32> -> vector<128x256xf32>
      %c0_16 = arith.constant 0 : index
      %c0_17 = arith.constant 0 : index
      %19 = vector.load %arg6[%c0_16, %c0_17] : memref<1x256xf32, #tpu.memory_space<vmem>>, vector<1x256xf32>
      %20 = vector.broadcast %19 : vector<1x256xf32> to vector<128x256xf32>
      %21 = arith.addf %18, %20 : vector<128x256xf32>
      %cst_18 = arith.constant 0.000000e+00 : f32
      %22 = vector.broadcast %cst_18 : f32 to vector<128x256xf32>
      %23 = arith.maximumf %21, %22 : vector<128x256xf32>
      %24 = arith.truncf %23 : vector<128x256xf32> to vector<128x256xbf16>
      %c0_19 = arith.constant 0 : index
      %c0_20 = arith.constant 0 : index
      %25 = vector.load %arg7[%c0_19, %c0_20] : memref<256x128xbf16, #tpu.memory_space<vmem>>, vector<256x128xbf16>
      %cst_21 = arith.constant dense<0.000000e+00> : vector<128x128xf32>
      %26 = tpu.matmul %24, %25, %cst_21 {dimension_numbers = #tpu.dot_dimension_numbers<[1], [0], [0], [1], [0, 0, 1, 1], [], []>} : vector<128x256xbf16>, vector<256x128xbf16>, vector<128x128xf32> -> vector<128x128xf32>
      %c0_22 = arith.constant 0 : index
      %c0_23 = arith.constant 0 : index
      %27 = vector.load %arg8[%c0_22, %c0_23] : memref<1x128xf32, #tpu.memory_space<vmem>>, vector<1x128xf32>
      %28 = vector.broadcast %27 : vector<1x128xf32> to vector<128x128xf32>
      %29 = arith.addf %26, %28 : vector<128x128xf32>
      %c0_24 = arith.constant 0 : index
      %c0_25 = arith.constant 0 : index
      %30 = vector.load %arg11[%c0_24, %c0_25] : memref<128x128xf32, #tpu.memory_space<vmem>>, vector<128x128xf32>
      tpu.vector_store %arg11[%c0_24, %c0_25], %29 {strides = array<i32>} : memref<128x128xf32, #tpu.memory_space<vmem>>, vector<128x128xf32>,
      %c0_26 = arith.constant 0 : index
      %c0_27 = arith.constant 0 : index
      %31 = vector.load %arg9[%c0_26, %c0_27] : memref<128x128xbf16, #tpu.memory_space<vmem>>, vector<128x128xbf16>
      %32 = arith.extf %31 : vector<128x128xbf16> to vector<128x128xf32>
      %33 = arith.mulf %29, %32 : vector<128x128xf32>
      %34 = arith.truncf %33 : vector<128x128xf32> to vector<128x128xbf16>
      %c0_28 = arith.constant 0 : index
      %c0_29 = arith.constant 0 : index
      %35 = vector.load %arg10[%c0_28, %c0_29] : memref<128x128xbf16, #tpu.memory_space<vmem>>, vector<128x128xbf16>
      %cst_30 = arith.constant dense<0.000000e+00> : vector<128x128xf32>
      %36 = tpu.matmul %34, %35, %cst_30 {dimension_numbers = #tpu.dot_dimension_numbers<[1], [0], [0], [1], [0, 0, 1, 1], [], []>} : vector<128x128xbf16>, vector<128x128xbf16>, vector<128x128xf32> -> vector<128x128xf32>
      %37 = arith.truncf %36 : vector<128x128xf32> to vector<128x128xbf16>
      %c0_31 = arith.constant 0 : index
      %c0_32 = arith.constant 0 : index
      %38 = vector.load %arg12[%c0_31, %c0_32] : memref<128x128xbf16, #tpu.memory_space<vmem>>, vector<128x128xbf16>
      tpu.vector_store %arg12[%c0_31, %c0_32], %37 {strides = array<i32>} : memref<128x128xbf16, #tpu.memory_space<vmem>>, vector<128x128xbf16>,
    } else {
    }
    return
  }
  func.func @transform_0(%arg0: i32, %arg1: i32) -> (i32, i32) {
    %c0_i32 = arith.constant 0 : i32
    return %arg0, %arg1 : i32, i32
  }
  func.func @transform_1(%arg0: i32, %arg1: i32) -> (i32, i32) {
    %c0_i32 = arith.constant 0 : i32
    %c0_i32_0 = arith.constant 0 : i32
    return %arg1, %c0_i32 : i32, i32
  }
  func.func @transform_2(%arg0: i32, %arg1: i32) -> (i32, i32) {
    %c0_i32 = arith.constant 0 : i32
    %c0_i32_0 = arith.constant 0 : i32
    return %arg0, %c0_i32 : i32, i32
  }
  func.func @transform_3(%arg0: i32, %arg1: i32) -> (i32, i32) {
    %c0_i32 = arith.constant 0 : i32
    %c0_i32_0 = arith.constant 0 : i32
    %c0_i32_1 = arith.constant 0 : i32
    return %c0_i32, %c0_i32_0 : i32, i32
  }
  func.func @transform_4(%arg0: i32, %arg1: i32) -> (i32, i32) {
    %c0_i32 = arith.constant 0 : i32
    %c0_i32_0 = arith.constant 0 : i32
    %c0_i32_1 = arith.constant 0 : i32
    return %c0_i32, %c0_i32_0 : i32, i32
  }
  func.func @transform_5(%arg0: i32, %arg1: i32) -> (i32, i32) {
    %c0_i32 = arith.constant 0 : i32
    %c0_i32_0 = arith.constant 0 : i32
    %c0_i32_1 = arith.constant 0 : i32
    return %c0_i32, %c0_i32_0 : i32, i32
  }
  func.func @transform_6(%arg0: i32, %arg1: i32) -> (i32, i32) {
    %c0_i32 = arith.constant 0 : i32
    %c0_i32_0 = arith.constant 0 : i32
    %c0_i32_1 = arith.constant 0 : i32
    return %c0_i32, %c0_i32_0 : i32, i32
  }
  func.func @transform_7(%arg0: i32, %arg1: i32) -> (i32, i32) {
    %c0_i32 = arith.constant 0 : i32
    %c0_i32_0 = arith.constant 0 : i32
    return %arg0, %c0_i32 : i32, i32
  }
  func.func @transform_8(%arg0: i32, %arg1: i32) -> (i32, i32) {
    %c0_i32 = arith.constant 0 : i32
    %c0_i32_0 = arith.constant 0 : i32
    %c0_i32_1 = arith.constant 0 : i32
    return %c0_i32, %c0_i32_0 : i32, i32
  }
  func.func @transform_9(%arg0: i32, %arg1: i32) -> (i32, i32) {
    %c0_i32 = arith.constant 0 : i32
    %c0_i32_0 = arith.constant 0 : i32
    return %arg0, %c0_i32 : i32, i32
  }
  func.func @transform_10(%arg0: i32, %arg1: i32) -> (i32, i32) {
    %c0_i32 = arith.constant 0 : i32
    %c0_i32_0 = arith.constant 0 : i32
    return %arg0, %c0_i32 : i32, i32
  }
}

module attributes {stable_mosaic.version = 11 : i64} {
  func.func @_gin_layer_kernel(%arg0: i32, %arg1: i32, %arg2: memref<128x128xbf16, #tpu.memory_space<vmem>>, %arg3: memref<128x128xbf16, #tpu.memory_space<vmem>>, %arg4: memref<128x128xbf16, #tpu.memory_space<vmem>>, %arg5: memref<128x256xbf16, #tpu.memory_space<vmem>>, %arg6: memref<1x256xf32, #tpu.memory_space<vmem>>, %arg7: memref<256x128xbf16, #tpu.memory_space<vmem>>, %arg8: memref<1x128xf32, #tpu.memory_space<vmem>>, %arg9: memref<128x128xf32, #tpu.memory_space<vmem>>, %arg10: memref<128x128xf32, #tpu.memory_space<vmem>>) attributes {dimension_semantics = [#tpu.dimension_semantics<parallel>, #tpu.dimension_semantics<arbitrary>], iteration_bounds = array<i64: 2, 2>, scalar_prefetch = 0 : i64, scratch_operands = 1 : i64, tpu.core_type = #tpu.core_type<tc>, window_params = [{transform_indices = @transform_0, window_bounds = array<i64: 128, 128>}, {transform_indices = @transform_1, window_bounds = array<i64: 128, 128>}, {transform_indices = @transform_2, window_bounds = array<i64: 128, 128>}, {pipeline_mode = #tpu.pipeline_mode<synchronous>, transform_indices = @transform_3, window_bounds = array<i64: 128, 256>}, {pipeline_mode = #tpu.pipeline_mode<synchronous>, transform_indices = @transform_4, window_bounds = array<i64: 1, 256>}, {pipeline_mode = #tpu.pipeline_mode<synchronous>, transform_indices = @transform_5, window_bounds = array<i64: 256, 128>}, {pipeline_mode = #tpu.pipeline_mode<synchronous>, transform_indices = @transform_6, window_bounds = array<i64: 1, 128>}, {transform_indices = @transform_7, window_bounds = array<i64: 128, 128>}]} {
    %c0_i32 = arith.constant 0 : i32
    %0 = arith.cmpi eq, %arg1, %c0_i32 : i32
    %1 = arith.extui %0 : i1 to i32
    %c0_i32_0 = arith.constant 0 : i32
    %2 = arith.cmpi ne, %1, %c0_i32_0 : i32
    scf.if %2 {
      %cst_9 = arith.constant 0.000000e+00 : f32
      %12 = vector.broadcast %cst_9 : f32 to vector<128x128xf32>
      %c0_10 = arith.constant 0 : index
      %c0_11 = arith.constant 0 : index
      %13 = vector.load %arg10[%c0_10, %c0_11] : memref<128x128xf32, #tpu.memory_space<vmem>>, vector<128x128xf32>
      tpu.vector_store %arg10[%c0_10, %c0_11], %12 {strides = array<i32>} : memref<128x128xf32, #tpu.memory_space<vmem>>, vector<128x128xf32>,
    } else {
    }
    %c0 = arith.constant 0 : index
    %c0_1 = arith.constant 0 : index
    %3 = vector.load %arg10[%c0, %c0_1] : memref<128x128xf32, #tpu.memory_space<vmem>>, vector<128x128xf32>
    %c0_2 = arith.constant 0 : index
    %c0_3 = arith.constant 0 : index
    %4 = vector.load %arg2[%c0_2, %c0_3] : memref<128x128xbf16, #tpu.memory_space<vmem>>, vector<128x128xbf16>
    %c0_4 = arith.constant 0 : index
    %c0_5 = arith.constant 0 : index
    %5 = vector.load %arg3[%c0_4, %c0_5] : memref<128x128xbf16, #tpu.memory_space<vmem>>, vector<128x128xbf16>
    %cst = arith.constant dense<0.000000e+00> : vector<128x128xf32>
    %6 = tpu.matmul %4, %5, %cst {dimension_numbers = #tpu.dot_dimension_numbers<[1], [0], [0], [1], [0, 0, 1, 1], [], []>} : vector<128x128xbf16>, vector<128x128xbf16>, vector<128x128xf32> -> vector<128x128xf32>
    %7 = arith.addf %3, %6 : vector<128x128xf32>
    %c0_6 = arith.constant 0 : index
    %c0_7 = arith.constant 0 : index
    %8 = vector.load %arg10[%c0_6, %c0_7] : memref<128x128xf32, #tpu.memory_space<vmem>>, vector<128x128xf32>
    tpu.vector_store %arg10[%c0_6, %c0_7], %7 {strides = array<i32>} : memref<128x128xf32, #tpu.memory_space<vmem>>, vector<128x128xf32>,
    %c1_i32 = arith.constant 1 : i32
    %9 = arith.cmpi eq, %arg1, %c1_i32 : i32
    %10 = arith.extui %9 : i1 to i32
    %c0_i32_8 = arith.constant 0 : i32
    %11 = arith.cmpi ne, %10, %c0_i32_8 : i32
    scf.if %11 {
      %c0_9 = arith.constant 0 : index
      %c0_10 = arith.constant 0 : index
      %12 = vector.load %arg10[%c0_9, %c0_10] : memref<128x128xf32, #tpu.memory_space<vmem>>, vector<128x128xf32>
      %c0_11 = arith.constant 0 : index
      %c0_12 = arith.constant 0 : index
      %13 = vector.load %arg4[%c0_11, %c0_12] : memref<128x128xbf16, #tpu.memory_space<vmem>>, vector<128x128xbf16>
      %14 = arith.extf %13 : vector<128x128xbf16> to vector<128x128xf32>
      %15 = arith.addf %12, %14 : vector<128x128xf32>
      %16 = arith.truncf %15 : vector<128x128xf32> to vector<128x128xbf16>
      %c0_13 = arith.constant 0 : index
      %c0_14 = arith.constant 0 : index
      %17 = vector.load %arg5[%c0_13, %c0_14] : memref<128x256xbf16, #tpu.memory_space<vmem>>, vector<128x256xbf16>
      %cst_15 = arith.constant dense<0.000000e+00> : vector<128x256xf32>
      %18 = tpu.matmul %16, %17, %cst_15 {dimension_numbers = #tpu.dot_dimension_numbers<[1], [0], [0], [1], [0, 0, 1, 1], [], []>} : vector<128x128xbf16>, vector<128x256xbf16>, vector<128x256xf32> -> vector<128x256xf32>
      %c0_16 = arith.constant 0 : index
      %c0_17 = arith.constant 0 : index
      %19 = vector.load %arg6[%c0_16, %c0_17] : memref<1x256xf32, #tpu.memory_space<vmem>>, vector<1x256xf32>
      %20 = vector.broadcast %19 : vector<1x256xf32> to vector<128x256xf32>
      %21 = arith.addf %18, %20 : vector<128x256xf32>
      %cst_18 = arith.constant 0.000000e+00 : f32
      %22 = vector.broadcast %cst_18 : f32 to vector<128x256xf32>
      %23 = arith.maximumf %21, %22 : vector<128x256xf32>
      %24 = arith.truncf %23 : vector<128x256xf32> to vector<128x256xbf16>
      %c0_19 = arith.constant 0 : index
      %c0_20 = arith.constant 0 : index
      %25 = vector.load %arg7[%c0_19, %c0_20] : memref<256x128xbf16, #tpu.memory_space<vmem>>, vector<256x128xbf16>
      %cst_21 = arith.constant dense<0.000000e+00> : vector<128x128xf32>
      %26 = tpu.matmul %24, %25, %cst_21 {dimension_numbers = #tpu.dot_dimension_numbers<[1], [0], [0], [1], [0, 0, 1, 1], [], []>} : vector<128x256xbf16>, vector<256x128xbf16>, vector<128x128xf32> -> vector<128x128xf32>
      %c0_22 = arith.constant 0 : index
      %c0_23 = arith.constant 0 : index
      %27 = vector.load %arg8[%c0_22, %c0_23] : memref<1x128xf32, #tpu.memory_space<vmem>>, vector<1x128xf32>
      %28 = vector.broadcast %27 : vector<1x128xf32> to vector<128x128xf32>
      %29 = arith.addf %26, %28 : vector<128x128xf32>
      %c0_24 = arith.constant 0 : index
      %c0_25 = arith.constant 0 : index
      %30 = vector.load %arg9[%c0_24, %c0_25] : memref<128x128xf32, #tpu.memory_space<vmem>>, vector<128x128xf32>
      tpu.vector_store %arg9[%c0_24, %c0_25], %29 {strides = array<i32>} : memref<128x128xf32, #tpu.memory_space<vmem>>, vector<128x128xf32>,
    } else {
    }
    return
  }
  func.func @transform_0(%arg0: i32, %arg1: i32) -> (i32, i32) {
    %c0_i32 = arith.constant 0 : i32
    return %arg0, %arg1 : i32, i32
  }
  func.func @transform_1(%arg0: i32, %arg1: i32) -> (i32, i32) {
    %c0_i32 = arith.constant 0 : i32
    %c0_i32_0 = arith.constant 0 : i32
    return %arg1, %c0_i32 : i32, i32
  }
  func.func @transform_2(%arg0: i32, %arg1: i32) -> (i32, i32) {
    %c0_i32 = arith.constant 0 : i32
    %c0_i32_0 = arith.constant 0 : i32
    return %arg0, %c0_i32 : i32, i32
  }
  func.func @transform_3(%arg0: i32, %arg1: i32) -> (i32, i32) {
    %c0_i32 = arith.constant 0 : i32
    %c0_i32_0 = arith.constant 0 : i32
    %c0_i32_1 = arith.constant 0 : i32
    return %c0_i32, %c0_i32_0 : i32, i32
  }
  func.func @transform_4(%arg0: i32, %arg1: i32) -> (i32, i32) {
    %c0_i32 = arith.constant 0 : i32
    %c0_i32_0 = arith.constant 0 : i32
    %c0_i32_1 = arith.constant 0 : i32
    return %c0_i32, %c0_i32_0 : i32, i32
  }
  func.func @transform_5(%arg0: i32, %arg1: i32) -> (i32, i32) {
    %c0_i32 = arith.constant 0 : i32
    %c0_i32_0 = arith.constant 0 : i32
    %c0_i32_1 = arith.constant 0 : i32
    return %c0_i32, %c0_i32_0 : i32, i32
  }
  func.func @transform_6(%arg0: i32, %arg1: i32) -> (i32, i32) {
    %c0_i32 = arith.constant 0 : i32
    %c0_i32_0 = arith.constant 0 : i32
    %c0_i32_1 = arith.constant 0 : i32
    return %c0_i32, %c0_i32_0 : i32, i32
  }
  func.func @transform_7(%arg0: i32, %arg1: i32) -> (i32, i32) {
    %c0_i32 = arith.constant 0 : i32
    %c0_i32_0 = arith.constant 0 : i32
    return %arg0, %c0_i32 : i32, i32
  }
}

</mosaic_0001>

<bundles_post_ra>
// kernel: moama_forward.3
= control target key start
LH: loop header
LB: loop body
LE: loop exit
PB: predicated region body
PF: predicated region fallthrough
CT: control target
= control target key end

     0   :  { %s2040_s24 = smov 0   ;;  %s2042_s25 = smov 0   ;;  %s2359_s0 = inlined_call_operand.vmem [shape: bf16[256,256], index: 0, kind: input, shape index: {}]   ;;  %s2360_s1 = inlined_call_operand.vmem [shape: bf16[256,128], index: 1, kind: input, shape index: {}]   ;;  %s2361_s2 = inlined_call_operand.vmem [shape: bf16[256,128], index: 2, kind: input, shape index: {}]   ;;  %s2362_s3 = inlined_call_operand.vmem [shape: bf16[128,256], index: 3, kind: input, shape index: {}]   ;;  %s2363_s4 = inlined_call_operand.vmem [shape: f32[1,256], index: 4, kind: input, shape index: {}]   ;;  %s2364_s5 = inlined_call_operand.vmem [shape: bf16[256,128], index: 5, kind: input, shape index: {}]   ;;  %s2365_s6 = inlined_call_operand.vmem [shape: f32[1,128], index: 6, kind: input, shape index: {}]   ;;  %s2366_s7 = inlined_call_operand.vmem [shape: bf16[256,128], index: 7, kind: output, shape index: {}]  }
   0x1   :  { %s2044_s26 = smov 0   ;;  %s2046_s27 = smov 0  }
   0x2   :  { %s2048_s28 = smov 0   ;;  %s2050_s29 = smov 0  }
   0x3   :  { %s2052_s30 = smov 0  }
   0x4 LB: > { %s26_s8 = sadd.s32 1, %s1988_s28  ;;  %s29_s9 = sadd.s32 1, %s1992_s29  ;;  %s1996_s30 = sphi %s2052_s30, %s17_s30   ;;  %s1992_s29 = sphi %s2050_s29, %s2372_s29   ;;  %s1988_s28 = sphi %s2048_s28, %s2371_s28   ;;  %s1984_s27 = sphi %s2046_s27, %s2370_s27   ;;  %s1980_s26 = sphi %s2044_s26, %s2369_s26   ;;  %s1976_s25 = sphi %s2042_s25, %s2368_s25   ;;  %s1972_s24 = sphi %s2040_s24, %s2367_s24  }
   0x5   : > { %p27_p0 = scmp.ge.s32.totalorder %s26_s8, 2  ;;  %p45_p1 = scmp.ne.s32.totalorder %s1976_s25, %s1972_s24 }
   0x6   : > { %p46_p2 = scmp.eq.s32.totalorder %s1996_s30, 0  ;;  %s38_s13 = sadd.s32 1, %s1976_s25 }
   0x7   : > { %s2374_s8 = smov (%p27_p0, %s26_s8), 0  ;;  %s2376_s9 = smov (!%p27_p0, %s29_s9), %s1992_s29 }
   0x8   : > { %p47_p3 = por %p46_p2, %p45_p1  ;;  %p31_p4 = scmp.ge.s32.totalorder %s2376_s9, 2 }
   0x9   : > { %s34_s10 = ssub.s32 %s1988_s28, %s2374_s8  ;;  %p1515_p6 = scmp.ge.s32.totalorder %s1996_s30, 4 }
   0xa   : > { %s2378_s9 = smov (%p31_p4, %s2376_s9), 0 }
   0xb   : > { %s33_s11 = ssub.s32 %s1992_s29, %s2378_s9  ;;  %245 = sbr.rel (%p1515_p6) target bundleno = 32 (0x20), region = 32 }
   0xc   : > { %s35_s12 = sor.u32 %s34_s10, %s33_s11 }
   0xd   : > { %p36_p5 = scmp.eq.s32.totalorder %s35_s12, 0 }
   0xf   : > { %s2091_s14 = scalar_select %p36_p5, %s1976_s25, %s38_s13  }
  0x10   : > { %248 = sbr.rel (!%p47_p3) target bundleno = 32 (0x20), region = 36  ;;  %s250_s15 = sand.u32 (%p47_p3), 1, %s1976_s25  }
  0x11   : > { %s1597_s16 = sshll.u32 (%p47_p3), %s1992_s29, 5  ;;  %s1516_s17 = sshll.u32 (%p47_p3), %s250_s15, 6 }
  0x12   : > { %s255_s18 = sadd.s32 (%p47_p3), %s1988_s28, %s1597_s16  ;;  %s252_s23 = scalar_lea.vmem (%p47_p3), [#allocation3], %s1516_s17 }
  0x13   : > { %s1519_s19 = sshll.u32 (%p47_p3), %s255_s18, 2 }
  0x14   : > { %s2100_s22 = scalar_lea.vmem (%p47_p3), %s2359_s0, %s1519_s19 }
  0x15   : > { %v274_v0 = vld [vmem:[%s2100_s22] sm:$0xf]  ;;  %v276_v1 = vld [vmem:[%s2100_s22 + $0x8] sm:$0xf]  ;;  %v278_v2 = vld [vmem:[%s2100_s22 + $0x10] sm:$0xf] }
  0x16   : > { %275 = vst [vmem:[%s252_s23] sm:$0xf] %v274_v0  ;;  %277 = vst [vmem:[%s252_s23 + $0x4] sm:$0xf] %v276_v1  ;;  %v280_v3 = vld [vmem:[%s2100_s22 + $0x18] sm:$0xf] }
  0x17   : > { %279 = vst [vmem:[%s252_s23 + $0x8] sm:$0xf] %v278_v2  ;;  %v282_v4 = vld [vmem:[%s2100_s22 + $0x20] sm:$0xf]  ;;  %v284_v5 = vld [vmem:[%s2100_s22 + $0x28] sm:$0xf] }
  0x18   : > { %281 = vst [vmem:[%s252_s23 + $0xc] sm:$0xf] %v280_v3  ;;  %283 = vst [vmem:[%s252_s23 + $0x10] sm:$0xf] %v282_v4  ;;  %v286_v6 = vld [vmem:[%s2100_s22 + $0x30] sm:$0xf] }
  0x19   : > { %285 = vst [vmem:[%s252_s23 + $0x14] sm:$0xf] %v284_v5  ;;  %v288_v7 = vld [vmem:[%s2100_s22 + $0x38] sm:$0xf]  ;;  %v290_v8 = vld [vmem:[%s2100_s22 + $0x40] sm:$0xf] }
  0x1a   : > { %287 = vst [vmem:[%s252_s23 + $0x18] sm:$0xf] %v286_v6  ;;  %289 = vst [vmem:[%s252_s23 + $0x1c] sm:$0xf] %v288_v7  ;;  %v292_v9 = vld [vmem:[%s2100_s22 + $0x48] sm:$0xf] }
  0x1b   : > { %291 = vst [vmem:[%s252_s23 + $0x20] sm:$0xf] %v290_v8  ;;  %v294_v10 = vld [vmem:[%s2100_s22 + $0x50] sm:$0xf]  ;;  %v296_v11 = vld [vmem:[%s2100_s22 + $0x58] sm:$0xf] }
  0x1c   : > { %293 = vst [vmem:[%s252_s23 + $0x24] sm:$0xf] %v292_v9  ;;  %295 = vst [vmem:[%s252_s23 + $0x28] sm:$0xf] %v294_v10  ;;  %v298_v12 = vld [vmem:[%s2100_s22 + $0x60] sm:$0xf] }
  0x1d   : > { %297 = vst [vmem:[%s252_s23 + $0x2c] sm:$0xf] %v296_v11  ;;  %v300_v13 = vld [vmem:[%s2100_s22 + $0x68] sm:$0xf]  ;;  %v302_v14 = vld [vmem:[%s2100_s22 + $0x70] sm:$0xf] }
  0x1e   : > { %299 = vst [vmem:[%s252_s23 + $0x30] sm:$0xf] %v298_v12  ;;  %301 = vst [vmem:[%s252_s23 + $0x34] sm:$0xf] %v300_v13  ;;  %v304_v15 = vld [vmem:[%s2100_s22 + $0x78] sm:$0xf] }
  0x1f   : > { %303 = vst [vmem:[%s252_s23 + $0x38] sm:$0xf] %v302_v14  ;;  %305 = vst [vmem:[%s252_s23 + $0x3c] sm:$0xf] %v304_v15 }
  0x20 PF: > { %p1520_p7 = scmp.ge.s32.totalorder %s1996_s30, 1  ;;  %p378_p8 = scmp.lt.s32.totalorder %s1996_s30, 5 }
  0x22   : > { %p379_p9 = pnand %p1520_p7, %p378_p8 }
  0x23   : > { %s385_s10 = sand.u32 (!%p379_p9), 1, %s1972_s24   ;;  %s1522_s11 = sshll.u32 (!%p379_p9), %s1980_s26, 4 }
  0x24   : > { %382 = sbr.rel (%p379_p9) target bundleno = 804 (0x324), region = 85  ;;  %s1521_s12 = sshll.u32 (!%p379_p9), %s385_s10, 6 }
  0x25   : > { %p428_p10 = scmp.lt.s32.totalorder (!%p379_p9), %s1522_s11, 31  ;;  %s1524_s13 = sshll.u32 (!%p379_p9), %s1984_s27, 4 }
  0x26   : > { %p434_p11 = scmp.lt.s32.totalorder (!%p379_p9), %s1524_s13, 31  ;;  %s2138_s27 = scalar_lea.vmem (!%p379_p9), [#allocation3], %s1521_s12 }
  0x27   : > { %p1528_p12 = scmp.ne.s32.totalorder (!%p379_p9), %s1980_s26, 0 }
  0x29   : > { %s2380_s11 = smov (!%p428_p10, %s1522_s11), 31  ;;  %s2382_s13 = smov (!%p434_p11, %s1524_s13), 31 }
  0x2a   : > { %s1523_s15 = sshll.u32 %s2380_s11, 2  ;;  %s1525_s19 = sshll.u32 %s2382_s13, 2 }
  0x2b   : > { %s2126_s18 = scalar_lea.vmem %s2360_s1, %s1523_s15  ;;  %s2131_s22 = scalar_lea.vmem %s2361_s2, %s1525_s19 }
  0x2c   : > { %s2136_s10 = scalar_lea.vmem %s2366_s7, %s1525_s19  ;;  %449 = sbr.rel (%p1528_p12) target bundleno = 58 (0x3a), region = 93 }
  0x31   : > { %v1998_v16 = vmov 0.0  }
  0x32   : > { %450 = vst [vmem:[#allocation2 + $0x30] sm:$0xff] %v1998_v16  ;;  %451 = vst [vmem:[#allocation2] sm:$0xff] %v1998_v16 }
  0x33   : > { %452 = vst [vmem:[#allocation2 + $0x58] sm:$0xff] %v1998_v16  ;;  %453 = vst [vmem:[#allocation2 + $0x18] sm:$0xff] %v1998_v16 }
  0x34   : > { %454 = vst [vmem:[#allocation2 + $0x50] sm:$0xff] %v1998_v16  ;;  %455 = vst [vmem:[#allocation2 + $0x68] sm:$0xff] %v1998_v16 }
  0x35   : > { %456 = vst [vmem:[#allocation2 + $0x8] sm:$0xff] %v1998_v16  ;;  %457 = vst [vmem:[#allocation2 + $0x48] sm:$0xff] %v1998_v16 }
  0x36   : > { %458 = vst [vmem:[#allocation2 + $0x40] sm:$0xff] %v1998_v16  ;;  %459 = vst [vmem:[#allocation2 + $0x20] sm:$0xff] %v1998_v16 }
  0x37   : > { %460 = vst [vmem:[#allocation2 + $0x10] sm:$0xff] %v1998_v16  ;;  %461 = vst [vmem:[#allocation2 + $0x38] sm:$0xff] %v1998_v16 }
  0x38   : > { %462 = vst [vmem:[#allocation2 + $0x60] sm:$0xff] %v1998_v16  ;;  %463 = vst [vmem:[#allocation2 + $0x70] sm:$0xff] %v1998_v16 }
  0x39   : > { %464 = vst [vmem:[#allocation2 + $0x78] sm:$0xff] %v1998_v16  ;;  %465 = vst [vmem:[#allocation2 + $0x28] sm:$0xff] %v1998_v16 }
  0x3a PF: > { %v1886_v17 = vld [vmem:[%s2126_s18 + $0x38] sm:$0xff]   ;;  %v1887_v18 = vld [vmem:[%s2126_s18 + $0x30] sm:$0xff]   ;;  %v1888_v19 = vld [vmem:[%s2126_s18 + $0x28] sm:$0xff]   ;;  %p1545_p13 = scmp.ne.s32.totalorder %s1980_s26, 1 }
  0x3b   : > { %1780 = vmatprep.subr.bf16.mxu0 %v1886_v17  ;;  %1812 = vmatprep.subr.bf16.mxu1 %v1886_v17  ;;  %v1889_v20 = vld [vmem:[%s2126_s18 + $0x20] sm:$0xff]   ;;  %v1890_v23 = vld [vmem:[%s2126_s18 + $0x18] sm:$0xff]   ;;  %v1891_v24 = vld [vmem:[%s2126_s18 + $0x10] sm:$0xff]  }
  0x3c   : > { %1781 = vmatpush3.bf16.msra.mxu0 %v1886_v17  ;;  %1820 = vmatpush3.bf16.msra.mxu1 %v1886_v17  ;;  %v1894_v21 = vld [vmem:[%s2138_s27] sm:$0xff]   ;;  %v1892_v25 = vld [vmem:[%s2126_s18 + $0x8] sm:$0xff]   ;;  %v1898_v29 = vld [vmem:[%s2138_s27 + $0x10] sm:$0xff]  }
  0x3d   : > { %1782 = vmatprep.subr.bf16.mxu0 %v1887_v18  ;;  %1813 = vmatprep.subr.bf16.mxu1 %v1887_v18  ;;  %v1895_v22 = vld [vmem:[%s2138_s27 + $0x20] sm:$0xff]   ;;  %v1896_v27 = vld [vmem:[%s2138_s27 + $0x8] sm:$0xff]   ;;  %v1899_v30 = vld [vmem:[%s2138_s27 + $0x30] sm:$0xff]  }
  0x3e   : > { %1796 = vmatprep.mubr.bf16.mxu0 %v1894_v21  ;;  %1804 = vmatprep.mubr.bf16.mxu1 %v1895_v22  ;;  %v1893_v26 = vld [vmem:[%s2126_s18] sm:$0xff]   ;;  %v1897_v28 = vld [vmem:[%s2138_s27 + $0x28] sm:$0xff]   ;;  %v1900_v31 = vld [vmem:[%s2138_s27 + $0x18] sm:$0xff]  }
  0x3f   : > { %v1901_v32 = vld [vmem:[%s2138_s27 + $0x38] sm:$0xff]   ;;  %v476_v34 = vld [vmem:[#allocation2 + $0x10] sm:$0xff]  ;;  %v474_v38 = vld [vmem:[#allocation2 + $0x40] sm:$0xff] }
  0x40   : > { %1783 = vmatpush3.bf16.msra.mxu0 %v1887_v18  ;;  %1821 = vmatpush3.bf16.msra.mxu1 %v1887_v18  ;;  %v468_v33 = vld [vmem:[#allocation2 + $0x58] sm:$0xff]  ;;  %v466_v37 = vld [vmem:[#allocation2 + $0x30] sm:$0xff]  ;;  %v467_v49 = vld [vmem:[#allocation2] sm:$0xff] }
  0x41   : > { %1784 = vmatprep.subr.bf16.mxu0 %v1888_v19  ;;  %1814 = vmatprep.subr.bf16.mxu1 %v1888_v19  ;;  %v469_v43 = vld [vmem:[#allocation2 + $0x18] sm:$0xff]  ;;  %v475_v50 = vld [vmem:[#allocation2 + $0x20] sm:$0xff]  ;;  %v472_v55 = vld [vmem:[#allocation2 + $0x8] sm:$0xff] }
  0x42   : > { %v477_v44 = vld [vmem:[#allocation2 + $0x38] sm:$0xff]  ;;  %v470_v61 = vld [vmem:[#allocation2 + $0x50] sm:$0xff]  ;;  %v478_v62 = vld [vmem:[#allocation2 + $0x60] sm:$0xff] }
  0x43   : > { %v480_v56 = vld [vmem:[#allocation2 + $0x78] sm:$0xff]  ;;  %v473_v3 = vld [vmem:[#allocation2 + $0x48] sm:$0xff]  ;;  %v479_v10 = vld [vmem:[#allocation2 + $0x70] sm:$0xff] }
  0x44   : > { %1785 = vmatpush3.bf16.msra.mxu0 %v1888_v19  ;;  %1822 = vmatpush3.bf16.msra.mxu1 %v1888_v19  ;;  %v481_v4 = vld [vmem:[#allocation2 + $0x28] sm:$0xff] }
  0x45   : > { %1786 = vmatprep.subr.bf16.mxu0 %v1889_v20  ;;  %1815 = vmatprep.subr.bf16.mxu1 %v1889_v20  ;;  %v471_v9 = vld [vmem:[#allocation2 + $0x68] sm:$0xff] }
  0x48   : > { %1787 = vmatpush3.bf16.msra.mxu0 %v1889_v20  ;;  %1823 = vmatpush3.bf16.msra.mxu1 %v1889_v20 }
  0x49   : > { %1788 = vmatprep.subr.bf16.mxu0 %v1890_v23  ;;  %1816 = vmatprep.subr.bf16.mxu1 %v1890_v23 }
  0x4c   : > { %1789 = vmatpush3.bf16.msra.mxu0 %v1890_v23  ;;  %1824 = vmatpush3.bf16.msra.mxu1 %v1890_v23 }
  0x4d   : > { %1790 = vmatprep.subr.bf16.mxu0 %v1891_v24  ;;  %1817 = vmatprep.subr.bf16.mxu1 %v1891_v24 }
  0x50   : > { %1791 = vmatpush3.bf16.msra.mxu0 %v1891_v24  ;;  %1825 = vmatpush3.bf16.msra.mxu1 %v1891_v24 }
  0x51   : > { %1792 = vmatprep.subr.bf16.mxu0 %v1892_v25  ;;  %1818 = vmatprep.subr.bf16.mxu1 %v1892_v25 }
  0x54   : > { %1793 = vmatpush3.bf16.msra.mxu0 %v1892_v25  ;;  %1826 = vmatpush3.bf16.msra.mxu1 %v1892_v25 }
  0x55   : > { %1794 = vmatprep.subr.bf16.mxu0 %v1893_v26  ;;  %1819 = vmatprep.subr.bf16.mxu1 %v1893_v26 }
  0x58   : > { %1795 = vmatpush3.bf16.msra.mxu0 %v1893_v26  ;;  %1827 = vmatpush3.bf16.msra.mxu1 %v1893_v26 }
  0x5b   : > { %1797 = vmatmul.mubr.bf16.vlgmr.msra.gmra.mxu0 %v1896_v27  ;;  %1805 = vmatmul.mubr.bf16.vlgmr.msra.gmra.mxu1 %v1897_v28 }
  0x5c   : > { %1800 = vmatprep.mubr.bf16.mxu0 %v1898_v29  ;;  %1808 = vmatprep.mubr.bf16.mxu1 %v1899_v30 }
  0x63   : > { %1801 = vmatmul.mubr.bf16.gmra.mxu0 %v1900_v31  ;;  %1809 = vmatmul.mubr.bf16.gmra.mxu1 %v1901_v32 }
 0x11b   : > { %v1798_v35 = vpop.f32.mrf.mxu0  ;;  %v1806_v36 = vpop.f32.mrf.mxu1 }
 0x11c   : > { %v709_v39 = vadd.f32 %v1798_v35, %v468_v33  ;;  %v717_v40 = vadd.f32 %v1806_v36, %v476_v34 }
 0x11d   : > { %v644_v41 = vpop.f32.mrf.mxu0  ;;  %v676_v42 = vpop.f32.mrf.mxu1 }
 0x11e   : > { %725 = vst [vmem:[#allocation2 + $0x58] sm:$0xff] %v709_v39  ;;  %733 = vst [vmem:[#allocation2 + $0x10] sm:$0xff] %v717_v40  ;;  %v707_v45 = vadd.f32 %v644_v41, %v466_v37  ;;  %v715_v46 = vadd.f32 %v676_v42, %v474_v38 }
 0x11f   : > { %v1799_v47 = vpop.f32.mrf.mxu0  ;;  %v1807_v48 = vpop.f32.mrf.mxu1 }
 0x120   : > { %723 = vst [vmem:[#allocation2 + $0x30] sm:$0xff] %v707_v45  ;;  %731 = vst [vmem:[#allocation2 + $0x40] sm:$0xff] %v715_v46  ;;  %v710_v51 = vadd.f32 %v1799_v47, %v469_v43  ;;  %v718_v52 = vadd.f32 %v1807_v48, %v477_v44 }
 0x121   : > { %v647_v53 = vpop.f32.mrf.mxu0  ;;  %v679_v54 = vpop.f32.mrf.mxu1 }
 0x122   : > { %726 = vst [vmem:[#allocation2 + $0x18] sm:$0xff] %v710_v51  ;;  %734 = vst [vmem:[#allocation2 + $0x38] sm:$0xff] %v718_v52  ;;  %v708_v57 = vadd.f32 %v647_v53, %v467_v49  ;;  %v716_v58 = vadd.f32 %v679_v54, %v475_v50 }
 0x123   : > { %v1802_v59 = vpop.f32.mrf.mxu0  ;;  %v1810_v60 = vpop.f32.mrf.mxu1 }
 0x124   : > { %724 = vst [vmem:[#allocation2] sm:$0xff] %v708_v57  ;;  %732 = vst [vmem:[#allocation2 + $0x20] sm:$0xff] %v716_v58  ;;  %v713_v63 = vadd.f32 %v1802_v59, %v472_v55  ;;  %v721_v0 = vadd.f32 %v1810_v60, %v480_v56 }
 0x125   : > { %v660_v1 = vpop.f32.mrf.mxu0  ;;  %v692_v2 = vpop.f32.mrf.mxu1 }
 0x126   : > { %729 = vst [vmem:[#allocation2 + $0x8] sm:$0xff] %v713_v63  ;;  %737 = vst [vmem:[#allocation2 + $0x78] sm:$0xff] %v721_v0  ;;  %v711_v5 = vadd.f32 %v660_v1, %v470_v61  ;;  %v719_v6 = vadd.f32 %v692_v2, %v478_v62 }
 0x127   : > { %v1803_v7 = vpop.f32.mrf.mxu0  ;;  %v1811_v8 = vpop.f32.mrf.mxu1 }
 0x128   : > { %727 = vst [vmem:[#allocation2 + $0x50] sm:$0xff] %v711_v5  ;;  %735 = vst [vmem:[#allocation2 + $0x60] sm:$0xff] %v719_v6  ;;  %v714_v11 = vadd.f32 %v1803_v7, %v473_v3  ;;  %v722_v12 = vadd.f32 %v1811_v8, %v481_v4  ;;  %742 = sbr.rel (%p1545_p13) target bundleno = 804 (0x324), region = 97 }
 0x129   : > { %v663_v13 = vpop.f32.mrf.mxu0  ;;  %v695_v14 = vpop.f32.mrf.mxu1 }
 0x12a   : > { %730 = vst [vmem:[#allocation2 + $0x48] sm:$0xff] %v714_v11  ;;  %738 = vst [vmem:[#allocation2 + $0x28] sm:$0xff] %v722_v12  ;;  %v712_v15 = vadd.f32 %v663_v13, %v471_v9  ;;  %v720_v16 = vadd.f32 %v695_v14, %v479_v10 }
 0x12c   : > { %728 = vst [vmem:[#allocation2 + $0x68] sm:$0xff] %v712_v15  ;;  %736 = vst [vmem:[#allocation2 + $0x70] sm:$0xff] %v720_v16 }
 0x12d   : > { %v1902_v17 = vld [vmem:[%s2362_s3 + $0x74] ss:$8 sps:$4 sm:$0xff]   ;;  %v1904_v18 = vld [vmem:[%s2362_s3 + $0x70] ss:$8 sps:$4 sm:$0xff]   ;;  %v1999_v19 = vmov 0   ;;  %v1615_v31 = vld [vmem:[%s2131_s22] sm:$0xff]  }
 0x12e   : > { %955 = vmatprep.mubr.bf16.mxu0 %v1999_v19  ;;  %923 = vmatprep.subr.bf16.mxu0 %v1902_v17  ;;  %v1905_v20 = vld [vmem:[%s2362_s3 + $0x64] ss:$8 sps:$4 sm:$0xff]   ;;  %v1907_v21 = vld [vmem:[%s2362_s3 + $0x60] ss:$8 sps:$4 sm:$0xff]   ;;  %v1908_v22 = vld [vmem:[%s2362_s3 + $0x54] ss:$8 sps:$4 sm:$0xff]   ;;  %v1616_v38 = vunpack.c.l.bf16 %v1615_v31  ;;  %v1617_v39 = vunpack.c.h.bf16 %v1615_v31 }
 0x12f   : > { %924 = vmatpush1.bf16.msra.mxu0 %v1904_v18  ;;  %v1910_v23 = vld [vmem:[%s2362_s3 + $0x50] ss:$8 sps:$4 sm:$0xff]   ;;  %v1911_v24 = vld [vmem:[%s2362_s3 + $0x44] ss:$8 sps:$4 sm:$0xff]   ;;  %v1913_v25 = vld [vmem:[%s2362_s3 + $0x40] ss:$8 sps:$4 sm:$0xff]  }
 0x130   : > { %925 = vmatprep.subr.bf16.mxu0 %v1905_v20  ;;  %v1914_v26 = vld [vmem:[%s2362_s3 + $0x34] ss:$8 sps:$4 sm:$0xff]   ;;  %v1916_v27 = vld [vmem:[%s2362_s3 + $0x30] ss:$8 sps:$4 sm:$0xff]   ;;  %v1917_v28 = vld [vmem:[%s2362_s3 + $0x24] ss:$8 sps:$4 sm:$0xff]  }
 0x131   : > { %v1919_v29 = vld [vmem:[%s2362_s3 + $0x20] ss:$8 sps:$4 sm:$0xff]   ;;  %v1920_v30 = vld [vmem:[%s2362_s3 + $0x14] ss:$8 sps:$4 sm:$0xff]   ;;  %v1922_v34 = vld [vmem:[%s2362_s3 + $0x10] ss:$8 sps:$4 sm:$0xff]  }
 0x132   : > { %v1926_v32 = vld [vmem:[%s2364_s5 + $0x78] sm:$0xff]   ;;  %v743_v35 = vld [vmem:[#allocation2 + $0x30] sm:$0xff]  ;;  %v744_v36 = vld [vmem:[#allocation2] sm:$0xff] }
 0x133   : > { %926 = vmatpush1.bf16.msra.mxu0 %v1907_v21  ;;  %v1927_v33 = vld [vmem:[%s2364_s5 + $0x38] sm:$0xff]   ;;  %1716 = vmatprep.subr.bf16.mxu1 %v1926_v32  ;;  %v1928_v37 = vld [vmem:[%s2364_s5 + $0x70] sm:$0xff]   ;;  %v1930_v41 = vld [vmem:[%s2364_s5 + $0x68] sm:$0xff]   ;;  %v791_v45 = vadd.f32 %v1616_v38, %v743_v35  ;;  %v792_v46 = vadd.f32 %v1617_v39, %v744_v36 }
 0x134   : > { %927 = vmatprep.subr.bf16.mxu0 %v1908_v22  ;;  %1717 = vmatpush3.bf16.msra.mxu1 %v1927_v33  ;;  %v1929_v40 = vld [vmem:[%s2364_s5 + $0x30] sm:$0xff]   ;;  %v1923_v42 = vld [vmem:[%s2362_s3 + $0x4] ss:$8 sps:$4 sm:$0xff]   ;;  %v1925_v43 = vld [vmem:[%s2362_s3] ss:$8 sps:$4 sm:$0xff]  }
 0x135   : > { %1718 = vmatprep.subr.bf16.mxu1 %v1928_v37  ;;  %v1686_v44 = vld [vmem:[%s2131_s22 + $0x8] sm:$0xff]   ;;  %v1932_v48 = vld [vmem:[%s2364_s5 + $0x60] sm:$0xff]   ;;  %v745_v50 = vld [vmem:[#allocation2 + $0x58] sm:$0xff]  ;;  %v807_v53 = vpack.c.bf16 %v792_v46, %v791_v45 }
 0x136   : > { %v1931_v47 = vld [vmem:[%s2364_s5 + $0x28] sm:$0xff]   ;;  %v1933_v49 = vld [vmem:[%s2364_s5 + $0x20] sm:$0xff]   ;;  %v746_v51 = vld [vmem:[#allocation2 + $0x18] sm:$0xff]  ;;  %v1620_v54 = vunpack.c.l.bf16 %v1686_v44  ;;  %v1621_v55 = vunpack.c.h.bf16 %v1686_v44 }
 0x137   : > { %928 = vmatpush1.bf16.msra.mxu0 %v1910_v23  ;;  %v1934_v52 = vld [vmem:[%s2364_s5 + $0x58] sm:$0xff]   ;;  %v1687_v59 = vld [vmem:[%s2131_s22 + $0x10] sm:$0xff]   ;;  %v748_v0 = vld [vmem:[#allocation2 + $0x68] sm:$0xff] }
 0x138   : > { %929 = vmatprep.subr.bf16.mxu0 %v1911_v24  ;;  %1719 = vmatpush3.bf16.msra.mxu1 %v1929_v40  ;;  %v793_v56 = vadd.f32 %v1620_v54, %v745_v50  ;;  %v794_v57 = vadd.f32 %v1621_v55, %v746_v51  ;;  %v1935_v58 = vld [vmem:[%s2364_s5 + $0x18] sm:$0xff]   ;;  %v1624_v61 = vunpack.c.l.bf16 %v1687_v59  ;;  %v1625_v62 = vunpack.c.h.bf16 %v1687_v59  ;;  %v747_v63 = vld [vmem:[#allocation2 + $0x50] sm:$0xff]  ;;  %v749_v7 = vld [vmem:[#allocation2 + $0x8] sm:$0xff] }
 0x139   : > { %1720 = vmatprep.subr.bf16.mxu1 %v1930_v41  ;;  %v1688_v3 = vld [vmem:[%s2131_s22 + $0x18] sm:$0xff]   ;;  %v750_v8 = vld [vmem:[#allocation2 + $0x48] sm:$0xff]  ;;  %v1689_v11 = vld [vmem:[%s2131_s22 + $0x20] sm:$0xff]   ;;  %v833_v50 = vlaneseq }
 0x13a   : > { %v808_v60 = vpack.c.bf16 %v794_v57, %v793_v56  ;;  %v795_v1 = vadd.f32 %v1624_v61, %v747_v63  ;;  %v796_v2 = vadd.f32 %v1625_v62, %v748_v0  ;;  %v1628_v5 = vunpack.c.l.bf16 %v1688_v3  ;;  %v751_v15 = vld [vmem:[#allocation2 + $0x40] sm:$0xff]  ;;  %v1690_v20 = vld [vmem:[%s2131_s22 + $0x28] sm:$0xff]   ;;  %v753_v24 = vld [vmem:[#allocation2 + $0x10] sm:$0xff] }
 0x13b   : > { %930 = vmatpush1.bf16.msra.mxu0 %v1913_v25  ;;  %v1629_v6 = vunpack.c.h.bf16 %v1688_v3  ;;  %v1632_v13 = vunpack.c.l.bf16 %v1689_v11  ;;  %v1633_v14 = vunpack.c.h.bf16 %v1689_v11  ;;  %v752_v16 = vld [vmem:[#allocation2 + $0x20] sm:$0xff]  ;;  %v1636_v22 = vunpack.c.l.bf16 %v1690_v20  ;;  %v754_v25 = vld [vmem:[#allocation2 + $0x38] sm:$0xff]  ;;  %v756_v33 = vld [vmem:[#allocation2 + $0x70] sm:$0xff] }
 0x13c   : > { %931 = vmatprep.subr.bf16.mxu0 %v1914_v26  ;;  %1721 = vmatpush3.bf16.msra.mxu1 %v1931_v47  ;;  %v809_v4 = vpack.c.bf16 %v796_v2, %v795_v1  ;;  %v797_v9 = vadd.f32 %v1628_v5, %v749_v7  ;;  %v1637_v23 = vunpack.c.h.bf16 %v1690_v20  ;;  %v755_v32 = vld [vmem:[#allocation2 + $0x60] sm:$0xff]  ;;  %v1692_v36 = vld [vmem:[%s2131_s22 + $0x38] sm:$0xff]   ;;  %v758_v41 = vld [vmem:[#allocation2 + $0x28] sm:$0xff]  ;;  %v834_v51 = vshrl.u32 %v833_v50, 7 }
 0x13d   : > { %1722 = vmatprep.subr.bf16.mxu1 %v1932_v48  ;;  %v798_v10 = vadd.f32 %v1629_v6, %v750_v8  ;;  %v799_v17 = vadd.f32 %v1632_v13, %v751_v15  ;;  %v800_v18 = vadd.f32 %v1633_v14, %v752_v16  ;;  %v801_v26 = vadd.f32 %v1636_v22, %v753_v24  ;;  %v757_v40 = vld [vmem:[#allocation2 + $0x78] sm:$0xff]  ;;  %v1936_v45 = vld [vmem:[%s2364_s5 + $0x50] sm:$0xff]   ;;  %v1938_v47 = vld [vmem:[%s2364_s5 + $0x48] sm:$0xff]  }
 0x13e   : > { %v1644_v38 = vunpack.c.l.bf16 %v1692_v36  ;;  %v1645_v39 = vunpack.c.h.bf16 %v1692_v36  ;;  %v1937_v46 = vld [vmem:[%s2364_s5 + $0x10] sm:$0xff]   ;;  %v1940_v48 = vld [vmem:[%s2364_s5 + $0x40] sm:$0xff]  }
 0x13f   : > { %932 = vmatpush1.bf16.msra.mxu0 %v1916_v27  ;;  %v810_v12 = vpack.c.bf16 %v798_v10, %v797_v9  ;;  %v811_v21 = vpack.c.bf16 %v800_v18, %v799_v17  ;;  %v802_v27 = vadd.f32 %v1637_v23, %v754_v25  ;;  %v831_v54 = vld [vmem:[%s2363_s4] sm:$0x3] }
 0x140   : > { %933 = vmatprep.subr.bf16.mxu0 %v1917_v28  ;;  %1723 = vmatpush3.bf16.msra.mxu1 %v1933_v49  ;;  %v1691_v28 = vld [vmem:[%s2131_s22 + $0x30] sm:$0xff]   ;;  %v1941_v49 = vld [vmem:[%s2364_s5] sm:$0xff]  }
 0x141   : > { %1724 = vmatprep.subr.bf16.mxu1 %v1934_v52  ;;  %v1641_v31 = vunpack.c.h.bf16 %v1691_v28  ;;  %v839_v52 = vsub.s32 1, %v834_v51 }
 0x143   : > { %934 = vmatpush1.bf16.msra.mxu0 %v1919_v29  ;;  %v812_v29 = vpack.c.bf16 %v802_v27, %v801_v26  ;;  %v804_v35 = vadd.f32 %v1641_v31, %v756_v33  ;;  %v2273_v56 = vrot.slane %v831_v54, %v839_v52 }
 0x144   : > { %935 = vmatprep.subr.bf16.mxu0 %v1920_v30  ;;  %1725 = vmatpush3.bf16.msra.mxu1 %v1935_v58  ;;  %v1640_v30 = vunpack.c.l.bf16 %v1691_v28 }
 0x145   : > { %1726 = vmatprep.subr.bf16.mxu1 %v1936_v45 }
 0x147   : > { %936 = vmatpush1.bf16.msra.mxu0 %v1922_v34  ;;  %v803_v34 = vadd.f32 %v1640_v30, %v755_v32 }
 0x148   : > { %937 = vmatprep.subr.bf16.mxu0 %v1923_v42  ;;  %v805_v42 = vadd.f32 %v1644_v38, %v757_v40  ;;  %1727 = vmatpush3.bf16.msra.mxu1 %v1937_v46 }
 0x149   : > { %v813_v37 = vpack.c.bf16 %v804_v35, %v803_v34  ;;  %1728 = vmatprep.subr.bf16.mxu1 %v1938_v47 }
 0x14b   : > { %938 = vmatpush1.bf16.msra.mxu0 %v1925_v43  ;;  %v806_v43 = vadd.f32 %v1645_v39, %v758_v41 }
 0x14d   : > { %v814_v44 = vpack.c.bf16 %v806_v43, %v805_v42 }
 0x14e   : > { %956 = vmatmul.mubr.bf16.vlgmr.msra.gmra.mxu0 %v807_v53  ;;  %v835_v53 = vsub.s32 0, %v834_v51 }
 0x14f   : > { %965 = vmatprep.mubr.bf16.mxu0 %v1999_v19 }
 0x150   : > { %v2275_v57 = vrot.slane %v831_v54, %v835_v53 }
 0x156   : > { %966 = vmatmul.mubr.bf16.gmra.mxu0 %v808_v60 }
 0x157   : > { %975 = vmatprep.mubr.bf16.mxu0 %v1999_v19 }
 0x15e   : > { %976 = vmatmul.mubr.bf16.gmra.mxu0 %v809_v4 }
 0x15f   : > { %985 = vmatprep.mubr.bf16.mxu0 %v1999_v19 }
 0x166   : > { %986 = vmatmul.mubr.bf16.gmra.mxu0 %v810_v12 }
 0x167   : > { %995 = vmatprep.mubr.bf16.mxu0 %v1999_v19 }
 0x16e   : > { %996 = vmatmul.mubr.bf16.gmra.mxu0 %v811_v21 }
 0x16f   : > { %1005 = vmatprep.mubr.bf16.mxu0 %v1999_v19 }
 0x176   : > { %1006 = vmatmul.mubr.bf16.gmra.mxu0 %v812_v29 }
 0x177   : > { %1015 = vmatprep.mubr.bf16.mxu0 %v1999_v19 }
 0x17e   : > { %1016 = vmatmul.mubr.bf16.gmra.mxu0 %v813_v37 }
 0x17f   : > { %1025 = vmatprep.mubr.bf16.mxu0 %v1999_v19  ;;  %v1939_v19 = vld [vmem:[%s2364_s5 + $0x8] sm:$0xff]  }
 0x180   : > { %1729 = vmatpush3.bf16.msra.mxu1 %v1939_v19 }
 0x181   : > { %1730 = vmatprep.subr.bf16.mxu1 %v1940_v48 }
 0x184   : > { %1731 = vmatpush3.bf16.msra.mxu1 %v1941_v49 }
 0x186   : > { %1026 = vmatmul.mubr.bf16.gmra.mxu0 %v814_v44 }
 0x20e   : > { %v957_v55 = vpop.f32.mrf.mxu0 }
 0x20f   : > { %v958_v62 = vadd.f32 %v957_v55, %v2275_v57 }
 0x210   : > { %v959_v58 = vpop.f32.mrf.mxu0 }
 0x211   : > { %v960_v60 = vadd.f32 %v959_v58, %v2273_v56  ;;  %v1036_v5 = vmax.f32 %v958_v62, 0.0 }
 0x212   : > { %v961_v59 = vpop.f32.mrf.mxu0 }
 0x213   : > { %v962_v61 = vadd.f32 %v961_v59, %v2275_v57  ;;  %v1037_v3 = vmax.f32 %v960_v60, 0.0 }
 0x214   : > { %v963_v63 = vpop.f32.mrf.mxu0 }
 0x215   : > { %v964_v0 = vadd.f32 %v963_v63, %v2273_v56  ;;  %v1038_v1 = vmax.f32 %v962_v61, 0.0 }
 0x216   : > { %v967_v2 = vpop.f32.mrf.mxu0 }
 0x217   : > { %v1039_v4 = vmax.f32 %v964_v0, 0.0  ;;  %v1068_v8 = vpack.c.bf16 %v1038_v1, %v1036_v5  ;;  %v968_v12 = vadd.f32 %v967_v2, %v2275_v57 }
 0x218   : > { %v969_v6 = vpop.f32.mrf.mxu0 }
 0x219   : > { %v1069_v7 = vpack.c.bf16 %v1039_v4, %v1037_v3  ;;  %v970_v10 = vadd.f32 %v969_v6, %v2273_v56  ;;  %v1040_v20 = vmax.f32 %v968_v12, 0.0 }
 0x21a   : > { %v971_v9 = vpop.f32.mrf.mxu0 }
 0x21b   : > { %v972_v11 = vadd.f32 %v971_v9, %v2275_v57  ;;  %1251 = vmatprep.mubr.bf16.mxu1 %v1069_v7  ;;  %v1041_v17 = vmax.f32 %v970_v10, 0.0 }
 0x21c   : > { %v973_v13 = vpop.f32.mrf.mxu0  ;;  %1252 = vmatmul.mubr.bf16.vlgmr.msra.gmra.mxu1 %v1068_v8 }
 0x21d   : > { %v974_v14 = vadd.f32 %v973_v13, %v2273_v56  ;;  %v1042_v15 = vmax.f32 %v972_v11, 0.0 }
 0x21e   : > { %v977_v16 = vpop.f32.mrf.mxu0 }
 0x21f   : > { %v1043_v18 = vmax.f32 %v974_v14, 0.0  ;;  %v1070_v23 = vpack.c.bf16 %v1042_v15, %v1040_v20  ;;  %v978_v27 = vadd.f32 %v977_v16, %v2275_v57 }
 0x220   : > { %v979_v21 = vpop.f32.mrf.mxu0 }
 0x221   : > { %v1071_v22 = vpack.c.bf16 %v1043_v18, %v1041_v17  ;;  %v980_v25 = vadd.f32 %v979_v21, %v2273_v56  ;;  %v1044_v34 = vmax.f32 %v978_v27, 0.0 }
 0x222   : > { %v981_v24 = vpop.f32.mrf.mxu0 }
 0x223   : > { %v982_v26 = vadd.f32 %v981_v24, %v2275_v57  ;;  %1259 = vmatprep.mubr.bf16.mxu1 %v1071_v22  ;;  %v1045_v32 = vmax.f32 %v980_v25, 0.0 }
 0x224   : > { %v983_v28 = vpop.f32.mrf.mxu0  ;;  %1260 = vmatmul.mubr.bf16.gmra.mxu1 %v1070_v23 }
 0x225   : > { %v984_v29 = vadd.f32 %v983_v28, %v2273_v56  ;;  %v1046_v30 = vmax.f32 %v982_v26, 0.0 }
 0x226   : > { %v987_v31 = vpop.f32.mrf.mxu0 }
 0x227   : > { %v1047_v33 = vmax.f32 %v984_v29, 0.0  ;;  %v1072_v37 = vpack.c.bf16 %v1046_v30, %v1044_v34  ;;  %v988_v41 = vadd.f32 %v987_v31, %v2275_v57 }
 0x228   : > { %v989_v35 = vpop.f32.mrf.mxu0 }
 0x229   : > { %v1073_v36 = vpack.c.bf16 %v1047_v33, %v1045_v32  ;;  %v990_v39 = vadd.f32 %v989_v35, %v2273_v56  ;;  %v1048_v19 = vmax.f32 %v988_v41, 0.0 }
 0x22a   : > { %v991_v38 = vpop.f32.mrf.mxu0 }
 0x22b   : > { %v992_v40 = vadd.f32 %v991_v38, %v2275_v57  ;;  %1267 = vmatprep.mubr.bf16.mxu1 %v1073_v36  ;;  %v1049_v46 = vmax.f32 %v990_v39, 0.0 }
 0x22c   : > { %v993_v42 = vpop.f32.mrf.mxu0  ;;  %1268 = vmatmul.mubr.bf16.gmra.mxu1 %v1072_v37 }
 0x22d   : > { %v994_v43 = vadd.f32 %v993_v42, %v2273_v56  ;;  %v1050_v44 = vmax.f32 %v992_v40, 0.0 }
 0x22e   : > { %v997_v45 = vpop.f32.mrf.mxu0 }
 0x22f   : > { %v1051_v47 = vmax.f32 %v994_v43, 0.0  ;;  %v1074_v50 = vpack.c.bf16 %v1050_v44, %v1048_v19  ;;  %v998_v54 = vadd.f32 %v997_v45, %v2275_v57 }
 0x230   : > { %v999_v48 = vpop.f32.mrf.mxu0 }
 0x231   : > { %v1075_v49 = vpack.c.bf16 %v1051_v47, %v1049_v46  ;;  %v1000_v52 = vadd.f32 %v999_v48, %v2273_v56  ;;  %v1052_v63 = vmax.f32 %v998_v54, 0.0 }
 0x232   : > { %v1001_v51 = vpop.f32.mrf.mxu0 }
 0x233   : > { %v1002_v53 = vadd.f32 %v1001_v51, %v2275_v57  ;;  %1275 = vmatprep.mubr.bf16.mxu1 %v1075_v49  ;;  %v1053_v61 = vmax.f32 %v1000_v52, 0.0 }
 0x234   : > { %v1003_v55 = vpop.f32.mrf.mxu0  ;;  %1276 = vmatmul.mubr.bf16.gmra.mxu1 %v1074_v50 }
 0x235   : > { %v1004_v58 = vadd.f32 %v1003_v55, %v2273_v56  ;;  %v1054_v59 = vmax.f32 %v1002_v53, 0.0 }
 0x236   : > { %v1007_v60 = vpop.f32.mrf.mxu0 }
 0x237   : > { %v1055_v62 = vmax.f32 %v1004_v58, 0.0  ;;  %v1076_v2 = vpack.c.bf16 %v1054_v59, %v1052_v63  ;;  %v1008_v6 = vadd.f32 %v1007_v60, %v2275_v57 }
 0x238   : > { %v1009_v0 = vpop.f32.mrf.mxu0 }
 0x239   : > { %v1077_v1 = vpack.c.bf16 %v1055_v62, %v1053_v61  ;;  %v1010_v4 = vadd.f32 %v1009_v0, %v2273_v56  ;;  %v1056_v13 = vmax.f32 %v1008_v6, 0.0 }
 0x23a   : > { %v1011_v3 = vpop.f32.mrf.mxu0 }
 0x23b   : > { %v1012_v5 = vadd.f32 %v1011_v3, %v2275_v57  ;;  %1283 = vmatprep.mubr.bf16.mxu1 %v1077_v1  ;;  %v1057_v11 = vmax.f32 %v1010_v4, 0.0 }
 0x23c   : > { %v1013_v7 = vpop.f32.mrf.mxu0  ;;  %1284 = vmatmul.mubr.bf16.gmra.mxu1 %v1076_v2 }
 0x23d   : > { %v1014_v8 = vadd.f32 %v1013_v7, %v2273_v56  ;;  %v1058_v9 = vmax.f32 %v1012_v5, 0.0 }
 0x23e   : > { %v1017_v10 = vpop.f32.mrf.mxu0 }
 0x23f   : > { %v1059_v12 = vmax.f32 %v1014_v8, 0.0  ;;  %v1078_v16 = vpack.c.bf16 %v1058_v9, %v1056_v13  ;;  %v1018_v21 = vadd.f32 %v1017_v10, %v2275_v57 }
 0x240   : > { %v1019_v14 = vpop.f32.mrf.mxu0 }
 0x241   : > { %v1079_v15 = vpack.c.bf16 %v1059_v12, %v1057_v11  ;;  %v1020_v18 = vadd.f32 %v1019_v14, %v2273_v56  ;;  %v1060_v28 = vmax.f32 %v1018_v21, 0.0 }
 0x242   : > { %v1021_v17 = vpop.f32.mrf.mxu0 }
 0x243   : > { %v1022_v20 = vadd.f32 %v1021_v17, %v2275_v57  ;;  %1291 = vmatprep.mubr.bf16.mxu1 %v1079_v15  ;;  %v1061_v26 = vmax.f32 %v1020_v18, 0.0 }
 0x244   : > { %v1023_v22 = vpop.f32.mrf.mxu0  ;;  %1292 = vmatmul.mubr.bf16.gmra.mxu1 %v1078_v16 }
 0x245   : > { %v1024_v23 = vadd.f32 %v1023_v22, %v2273_v56  ;;  %v1062_v24 = vmax.f32 %v1022_v20, 0.0 }
 0x246   : > { %v1027_v25 = vpop.f32.mrf.mxu0 }
 0x247   : > { %v1063_v27 = vmax.f32 %v1024_v23, 0.0  ;;  %v1080_v31 = vpack.c.bf16 %v1062_v24, %v1060_v28  ;;  %v1028_v35 = vadd.f32 %v1027_v25, %v2275_v57 }
 0x248   : > { %v1029_v29 = vpop.f32.mrf.mxu0 }
 0x249   : > { %v1081_v30 = vpack.c.bf16 %v1063_v27, %v1061_v26  ;;  %v1030_v33 = vadd.f32 %v1029_v29, %v2273_v56  ;;  %v1064_v41 = vmax.f32 %v1028_v35, 0.0 }
 0x24a   : > { %v1031_v32 = vpop.f32.mrf.mxu0 }
 0x24b   : > { %v1032_v34 = vadd.f32 %v1031_v32, %v2275_v57  ;;  %1299 = vmatprep.mubr.bf16.mxu1 %v1081_v30  ;;  %v1065_v39 = vmax.f32 %v1030_v33, 0.0  ;;  %v2312_v57 = vld [vmem:[%s2365_s6] ss:$0 sm:$0xff] }
 0x24c   : > { %v1033_v36 = vpop.f32.mrf.mxu0  ;;  %1300 = vmatmul.mubr.bf16.gmra.mxu1 %v1080_v31 }
 0x24d   : > { %v1034_v37 = vadd.f32 %v1033_v36, %v2273_v56  ;;  %v1066_v38 = vmax.f32 %v1032_v34, 0.0 }
 0x24f   : > { %v1067_v40 = vmax.f32 %v1034_v37, 0.0  ;;  %v1082_v43 = vpack.c.bf16 %v1066_v38, %v1064_v41 }
 0x251   : > { %v1083_v42 = vpack.c.bf16 %v1067_v40, %v1065_v39 }
 0x253   : > { %1307 = vmatprep.mubr.bf16.mxu1 %v1083_v42 }
 0x254   : > { %1308 = vmatmul.mubr.bf16.gmra.mxu1 %v1082_v43 }
 0x2dc   : > { %v1732_v44 = vpop.f32.mrf.mxu1 }
 0x2de   : > { %v1733_v45 = vpop.f32.mrf.mxu1 }
 0x2df   : > { %v1734_v46 = vadd.f32 %v1733_v45, %v1732_v44 }
 0x2e0   : > { %v1735_v47 = vpop.f32.mrf.mxu1 }
 0x2e1   : > { %v1254_v56 = vadd.f32 %v1734_v46, %v2312_v57 }
 0x2e2   : > { %v1736_v19 = vpop.f32.mrf.mxu1 }
 0x2e3   : > { %v1737_v48 = vadd.f32 %v1736_v19, %v1735_v47  ;;  %v1316_v52 = vmax.f32 %v1254_v56, 0.0 }
 0x2e4   : > { %v1738_v49 = vpop.f32.mrf.mxu1 }
 0x2e5   : > { %v1257_v50 = vadd.f32 %v1737_v48, %v2312_v57 }
 0x2e6   : > { %v1739_v51 = vpop.f32.mrf.mxu1 }
 0x2e7   : > { %v1317_v53 = vmax.f32 %v1257_v50, 0.0  ;;  %v1740_v54 = vadd.f32 %v1739_v51, %v1738_v49 }
 0x2e8   : > { %v1741_v55 = vpop.f32.mrf.mxu1 }
 0x2e9   : > { %v1649_v58 = vpack.c.bf16 %v1317_v53, %v1316_v52  ;;  %v1262_v60 = vadd.f32 %v1740_v54, %v2312_v57 }
 0x2ea   : > { %v1742_v59 = vpop.f32.mrf.mxu1 }
 0x2eb   : > { %1650 = vst [vmem:[%s2136_s10] sm:$0xff] %v1649_v58   ;;  %v1743_v61 = vadd.f32 %v1742_v59, %v1741_v55  ;;  %v1318_v1 = vmax.f32 %v1262_v60, 0.0 }
 0x2ec   : > { %v1744_v62 = vpop.f32.mrf.mxu1 }
 0x2ed   : > { %v1265_v63 = vadd.f32 %v1743_v61, %v2312_v57 }
 0x2ee   : > { %v1745_v0 = vpop.f32.mrf.mxu1 }
 0x2ef   : > { %v1319_v2 = vmax.f32 %v1265_v63, 0.0  ;;  %v1746_v3 = vadd.f32 %v1745_v0, %v1744_v62 }
 0x2f0   : > { %v1747_v4 = vpop.f32.mrf.mxu1 }
 0x2f1   : > { %v1654_v5 = vpack.c.bf16 %v1319_v2, %v1318_v1  ;;  %v1270_v7 = vadd.f32 %v1746_v3, %v2312_v57 }
 0x2f2   : > { %v1748_v6 = vpop.f32.mrf.mxu1 }
 0x2f3   : > { %1693 = vst [vmem:[%s2136_s10 + $0x8] sm:$0xff] %v1654_v5   ;;  %v1749_v8 = vadd.f32 %v1748_v6, %v1747_v4  ;;  %v1320_v12 = vmax.f32 %v1270_v7, 0.0 }
 0x2f4   : > { %v1750_v9 = vpop.f32.mrf.mxu1 }
 0x2f5   : > { %v1273_v10 = vadd.f32 %v1749_v8, %v2312_v57 }
 0x2f6   : > { %v1751_v11 = vpop.f32.mrf.mxu1 }
 0x2f7   : > { %v1321_v13 = vmax.f32 %v1273_v10, 0.0  ;;  %v1752_v14 = vadd.f32 %v1751_v11, %v1750_v9 }
 0x2f8   : > { %v1753_v15 = vpop.f32.mrf.mxu1 }
 0x2f9   : > { %v1659_v16 = vpack.c.bf16 %v1321_v13, %v1320_v12  ;;  %v1278_v18 = vadd.f32 %v1752_v14, %v2312_v57 }
 0x2fa   : > { %v1754_v17 = vpop.f32.mrf.mxu1 }
 0x2fb   : > { %1694 = vst [vmem:[%s2136_s10 + $0x10] sm:$0xff] %v1659_v16   ;;  %v1755_v20 = vadd.f32 %v1754_v17, %v1753_v15  ;;  %v1322_v24 = vmax.f32 %v1278_v18, 0.0 }
 0x2fc   : > { %v1756_v21 = vpop.f32.mrf.mxu1 }
 0x2fd   : > { %v1281_v22 = vadd.f32 %v1755_v20, %v2312_v57 }
 0x2fe   : > { %v1757_v23 = vpop.f32.mrf.mxu1 }
 0x2ff   : > { %v1323_v25 = vmax.f32 %v1281_v22, 0.0  ;;  %v1758_v26 = vadd.f32 %v1757_v23, %v1756_v21 }
 0x300   : > { %v1759_v27 = vpop.f32.mrf.mxu1 }
 0x301   : > { %v1664_v28 = vpack.c.bf16 %v1323_v25, %v1322_v24  ;;  %v1286_v30 = vadd.f32 %v1758_v26, %v2312_v57 }
 0x302   : > { %v1760_v29 = vpop.f32.mrf.mxu1 }
 0x303   : > { %1695 = vst [vmem:[%s2136_s10 + $0x18] sm:$0xff] %v1664_v28   ;;  %v1761_v31 = vadd.f32 %v1760_v29, %v1759_v27  ;;  %v1324_v35 = vmax.f32 %v1286_v30, 0.0 }
 0x304   : > { %v1762_v32 = vpop.f32.mrf.mxu1 }
 0x305   : > { %v1289_v33 = vadd.f32 %v1761_v31, %v2312_v57 }
 0x306   : > { %v1763_v34 = vpop.f32.mrf.mxu1 }
 0x307   : > { %v1325_v36 = vmax.f32 %v1289_v33, 0.0  ;;  %v1764_v37 = vadd.f32 %v1763_v34, %v1762_v32 }
 0x308   : > { %v1765_v38 = vpop.f32.mrf.mxu1 }
 0x309   : > { %v1669_v39 = vpack.c.bf16 %v1325_v36, %v1324_v35  ;;  %v1294_v41 = vadd.f32 %v1764_v37, %v2312_v57 }
 0x30a   : > { %v1766_v40 = vpop.f32.mrf.mxu1 }
 0x30b   : > { %1696 = vst [vmem:[%s2136_s10 + $0x20] sm:$0xff] %v1669_v39   ;;  %v1767_v42 = vadd.f32 %v1766_v40, %v1765_v38  ;;  %v1326_v46 = vmax.f32 %v1294_v41, 0.0 }
 0x30c   : > { %v1768_v43 = vpop.f32.mrf.mxu1 }
 0x30d   : > { %v1297_v44 = vadd.f32 %v1767_v42, %v2312_v57 }
 0x30e   : > { %v1769_v45 = vpop.f32.mrf.mxu1 }
 0x30f   : > { %v1327_v47 = vmax.f32 %v1297_v44, 0.0  ;;  %v1770_v19 = vadd.f32 %v1769_v45, %v1768_v43 }
 0x310   : > { %v1771_v56 = vpop.f32.mrf.mxu1 }
 0x311   : > { %v1674_v48 = vpack.c.bf16 %v1327_v47, %v1326_v46  ;;  %v1302_v50 = vadd.f32 %v1770_v19, %v2312_v57 }
 0x312   : > { %v1772_v49 = vpop.f32.mrf.mxu1 }
 0x313   : > { %1697 = vst [vmem:[%s2136_s10 + $0x28] sm:$0xff] %v1674_v48   ;;  %v1773_v51 = vadd.f32 %v1772_v49, %v1771_v56  ;;  %v1328_v55 = vmax.f32 %v1302_v50, 0.0 }
 0x314   : > { %v1774_v52 = vpop.f32.mrf.mxu1 }
 0x315   : > { %v1305_v53 = vadd.f32 %v1773_v51, %v2312_v57 }
 0x316   : > { %v1775_v54 = vpop.f32.mrf.mxu1 }
 0x317   : > { %v1329_v58 = vmax.f32 %v1305_v53, 0.0  ;;  %v1776_v59 = vadd.f32 %v1775_v54, %v1774_v52 }
 0x318   : > { %v1777_v60 = vpop.f32.mrf.mxu1 }
 0x319   : > { %v1679_v61 = vpack.c.bf16 %v1329_v58, %v1328_v55  ;;  %v1310_v63 = vadd.f32 %v1776_v59, %v2312_v57 }
 0x31a   : > { %v1778_v62 = vpop.f32.mrf.mxu1 }
 0x31b   : > { %1698 = vst [vmem:[%s2136_s10 + $0x30] sm:$0xff] %v1679_v61   ;;  %v1779_v0 = vadd.f32 %v1778_v62, %v1777_v60  ;;  %v1330_v2 = vmax.f32 %v1310_v63, 0.0 }
 0x31d   : > { %v1313_v1 = vadd.f32 %v1779_v0, %v2312_v57 }
 0x31f   : > { %v1331_v3 = vmax.f32 %v1313_v1, 0.0 }
 0x321   : > { %v1684_v4 = vpack.c.bf16 %v1331_v3, %v1330_v2 }
 0x323   : > { %1699 = vst [vmem:[%s2136_s10 + $0x38] sm:$0xff] %v1684_v4  }
 0x324 PF: > { %s17_s30 = sadd.s32 1, %s1996_s30   ;;  %s2367_s24 = smov %s1976_s25 }
 0x325   : > { %p14_p0 = scmp.ge.s32.totalorder %s17_s30, 6   ;;  %s2368_s25 = smov %s2091_s14 }
 0x326   : > { %s2369_s26 = smov %s1988_s28  ;;  %s2370_s27 = smov %s1992_s29 }
 0x327   : > { %s2371_s28 = smov %s2374_s8  ;;  %s2372_s29 = smov %s2378_s9 }
 0x328   :  { %16 = sbr.rel (!%p14_p0) target bundleno = 4 (0x4), region = 138 }

// kernel: moama_forward.4
= control target key start
LH: loop header
LB: loop body
LE: loop exit
PB: predicated region body
PF: predicated region fallthrough
CT: control target
= control target key end

     0   :  { %s2935_s0 = inlined_call_operand.vmem [shape: bf16[256,256], index: 0, kind: input, shape index: {}]   ;;  %s2936_s1 = inlined_call_operand.vmem [shape: bf16[256,128], index: 1, kind: input, shape index: {}]   ;;  %s2937_s2 = inlined_call_operand.vmem [shape: bf16[256,128], index: 2, kind: input, shape index: {}]   ;;  %s2938_s3 = inlined_call_operand.vmem [shape: bf16[128,256], index: 3, kind: input, shape index: {}]   ;;  %s2939_s4 = inlined_call_operand.vmem [shape: f32[1,256], index: 4, kind: input, shape index: {}]   ;;  %s2940_s5 = inlined_call_operand.vmem [shape: bf16[256,128], index: 5, kind: input, shape index: {}]   ;;  %s2941_s6 = inlined_call_operand.vmem [shape: f32[1,128], index: 6, kind: input, shape index: {}]   ;;  %s2942_s7 = inlined_call_operand.vmem [shape: bf16[256,128], index: 7, kind: input, shape index: {}]   ;;  %s2943_s8 = inlined_call_operand.vmem [shape: bf16[128,128], index: 8, kind: input, shape index: {}]   ;;  %s2944_s9 = inlined_call_operand.vmem [shape: f32[256,128], index: 9, kind: output, shape index: {0}]   ;;  %s2945_s10 = inlined_call_operand.vmem [shape: bf16[256,128], index: 10, kind: output, shape index: {1}]  }
   0x1   :  { %2950 = sst [smem:[#allocation8_spill]] %s2935_s0 }
   0x2   :  { %s2558_s13 = smov 0   ;;  %s2560_s14 = smov 0  }
   0x3   :  { %s2562_s15 = smov 0   ;;  %s2564_s16 = smov 0  }
   0x4   :  { %s2566_s17 = smov 0   ;;  %s2568_s18 = smov 0  }
   0x5   :  { %s2570_s19 = smov 0  }
   0x6 LB: > { %2951 = sst [smem:[#allocation4_spill]] %s2491_s17  ;;  %s30_s20 = sadd.s32 1, %s2491_s17  ;;  %s2499_s19 = sphi %s2570_s19, %s21_s19   ;;  %s2495_s18 = sphi %s2568_s18, %s2959_s18   ;;  %s2491_s17 = sphi %s2566_s17, %s2958_s17   ;;  %s2487_s16 = sphi %s2564_s16, %s2957_s16   ;;  %s2483_s15 = sphi %s2562_s15, %s2956_s15   ;;  %s2479_s14 = sphi %s2560_s14, %s2961_s14   ;;  %s2475_s13 = sphi %s2558_s13, %s2960_s13  }
   0x7   : > { %2952 = sst [smem:[#allocation5_spill]] %s2495_s18  ;;  %p31_p0 = scmp.ge.s32.totalorder %s30_s20, 2 }
   0x8   : > { %s33_s21 = sadd.s32 1, %s2495_s18  ;;  %p49_p1 = scmp.ne.s32.totalorder %s2479_s14, %s2475_s13 }
   0x9   : > { %p50_p2 = scmp.eq.s32.totalorder %s2499_s19, 0  ;;  %s2963_s20 = smov (%p31_p0, %s30_s20), 0 }
   0xa   : > { %2953 = sst [smem:[#allocation6_spill]] %s2963_s20  ;;  %s2965_s21 = smov (!%p31_p0, %s33_s21), %s2495_s18 }
   0xb   : > { %p51_p3 = por %p50_p2, %p49_p1  ;;  %p35_p4 = scmp.ge.s32.totalorder %s2965_s21, 2 }
   0xc   : > { %s38_s22 = ssub.s32 %s2491_s17, %s2963_s20  ;;  %s42_s25 = sadd.s32 1, %s2479_s14 }
   0xd   : > { %s2967_s21 = smov (%p35_p4, %s2965_s21), 0  ;;  %p1895_p6 = scmp.ge.s32.totalorder %s2499_s19, 4 }
   0xe   : > { %2954 = sst [smem:[#allocation7_spill]] %s2967_s21  ;;  %s37_s23 = ssub.s32 %s2495_s18, %s2967_s21 }
   0xf   : > { %s39_s24 = sor.u32 %s38_s22, %s37_s23  ;;  %325 = sbr.rel (%p1895_p6) target bundleno = 40 (0x28), region = 36 }
  0x10   : > { %p40_p5 = scmp.eq.s32.totalorder %s39_s24, 0 }
  0x12   : > { %s2609_s26 = scalar_select %p40_p5, %s2479_s14, %s42_s25  }
  0x14   : > { %328 = sbr.rel (!%p51_p3) target bundleno = 40 (0x28), region = 40  ;;  %s330_s27 = sand.u32 (%p51_p3), 1, %s2479_s14  }
  0x15   : > { %s1989_s28 = sshll.u32 (%p51_p3), %s2495_s18, 5  ;;  %s1896_s29 = sshll.u32 (%p51_p3), %s330_s27, 6 }
  0x16   : > { %s335_s30 = sadd.s32 (%p51_p3), %s2491_s17, %s1989_s28  ;;  %s2955_s0 = sld [smem:[#allocation8_spill]] (%p51_p3) }
  0x17   : > { %s1899_s11 = sshll.u32 (%p51_p3), %s335_s30, 2  ;;  %s332_s23 = scalar_lea.vmem (%p51_p3), [#allocation3], %s1896_s29 }
  0x1c   : > { %s2618_s22 = scalar_lea.vmem %s2955_s0, %s1899_s11 }
  0x1d   : > { %v354_v0 = vld [vmem:[%s2618_s22] sm:$0xf]  ;;  %v356_v1 = vld [vmem:[%s2618_s22 + $0x8] sm:$0xf]  ;;  %v358_v2 = vld [vmem:[%s2618_s22 + $0x10] sm:$0xf] }
  0x1e   : > { %355 = vst [vmem:[%s332_s23] sm:$0xf] %v354_v0  ;;  %357 = vst [vmem:[%s332_s23 + $0x4] sm:$0xf] %v356_v1  ;;  %v360_v3 = vld [vmem:[%s2618_s22 + $0x18] sm:$0xf] }
  0x1f   : > { %359 = vst [vmem:[%s332_s23 + $0x8] sm:$0xf] %v358_v2  ;;  %v362_v4 = vld [vmem:[%s2618_s22 + $0x20] sm:$0xf]  ;;  %v364_v5 = vld [vmem:[%s2618_s22 + $0x28] sm:$0xf] }
  0x20   : > { %361 = vst [vmem:[%s332_s23 + $0xc] sm:$0xf] %v360_v3  ;;  %363 = vst [vmem:[%s332_s23 + $0x10] sm:$0xf] %v362_v4  ;;  %v366_v6 = vld [vmem:[%s2618_s22 + $0x30] sm:$0xf] }
  0x21   : > { %365 = vst [vmem:[%s332_s23 + $0x14] sm:$0xf] %v364_v5  ;;  %v368_v7 = vld [vmem:[%s2618_s22 + $0x38] sm:$0xf]  ;;  %v370_v8 = vld [vmem:[%s2618_s22 + $0x40] sm:$0xf] }
  0x22   : > { %367 = vst [vmem:[%s332_s23 + $0x18] sm:$0xf] %v366_v6  ;;  %369 = vst [vmem:[%s332_s23 + $0x1c] sm:$0xf] %v368_v7  ;;  %v372_v9 = vld [vmem:[%s2618_s22 + $0x48] sm:$0xf] }
  0x23   : > { %371 = vst [vmem:[%s332_s23 + $0x20] sm:$0xf] %v370_v8  ;;  %v374_v10 = vld [vmem:[%s2618_s22 + $0x50] sm:$0xf]  ;;  %v376_v11 = vld [vmem:[%s2618_s22 + $0x58] sm:$0xf] }
  0x24   : > { %373 = vst [vmem:[%s332_s23 + $0x24] sm:$0xf] %v372_v9  ;;  %375 = vst [vmem:[%s332_s23 + $0x28] sm:$0xf] %v374_v10  ;;  %v378_v12 = vld [vmem:[%s2618_s22 + $0x60] sm:$0xf] }
  0x25   : > { %377 = vst [vmem:[%s332_s23 + $0x2c] sm:$0xf] %v376_v11  ;;  %v380_v13 = vld [vmem:[%s2618_s22 + $0x68] sm:$0xf]  ;;  %v382_v14 = vld [vmem:[%s2618_s22 + $0x70] sm:$0xf] }
  0x26   : > { %379 = vst [vmem:[%s332_s23 + $0x30] sm:$0xf] %v378_v12  ;;  %381 = vst [vmem:[%s332_s23 + $0x34] sm:$0xf] %v380_v13  ;;  %v384_v15 = vld [vmem:[%s2618_s22 + $0x78] sm:$0xf] }
  0x27   : > { %383 = vst [vmem:[%s332_s23 + $0x38] sm:$0xf] %v382_v14  ;;  %385 = vst [vmem:[%s332_s23 + $0x3c] sm:$0xf] %v384_v15 }
  0x28 PF: > { %p1900_p7 = scmp.ge.s32.totalorder %s2499_s19, 1  ;;  %p467_p8 = scmp.lt.s32.totalorder %s2499_s19, 5 }
  0x2a   : > { %p468_p9 = pnand %p1900_p7, %p467_p8 }
  0x2b   : > { %s474_s20 = sand.u32 (!%p468_p9), 1, %s2475_s13   ;;  %s1902_s24 = sshll.u32 (!%p468_p9), %s2483_s15, 4 }
  0x2c   : > { %471 = sbr.rel (%p468_p9) target bundleno = 1015 (0x3f7), region = 93  ;;  %s1901_s25 = sshll.u32 (!%p468_p9), %s474_s20, 6 }
  0x2d   : > { %p533_p10 = scmp.lt.s32.totalorder (!%p468_p9), %s1902_s24, 31  ;;  %s1904_s27 = sshll.u32 (!%p468_p9), %s2487_s16, 4 }
  0x2e   : > { %p539_p11 = scmp.lt.s32.totalorder (!%p468_p9), %s1904_s27, 31  ;;  %p1912_p12 = scmp.ne.s32.totalorder (!%p468_p9), %s2483_s15, 0 }
  0x31   : > { %s2969_s24 = smov (!%p533_p10, %s1902_s24), 31  ;;  %s2971_s27 = smov (!%p539_p11, %s1904_s27), 31 }
  0x32   : > { %s1903_s28 = sshll.u32 %s2969_s24, 2  ;;  %s1905_s12 = sshll.u32 %s2971_s27, 2 }
  0x33   : > { %s2644_s11 = scalar_lea.vmem %s2936_s1, %s1903_s28  ;;  %s1909_s22 = sshll.u32 %s2971_s27, 3 }
  0x34   : > { %s2649_s21 = scalar_lea.vmem %s2937_s2, %s1905_s12  ;;  %s2654_s16 = scalar_lea.vmem %s2942_s7, %s1905_s12 }
  0x35   : > { %s2659_s17 = scalar_lea.vmem %s2944_s9, %s1909_s22  ;;  %s2664_s30 = scalar_lea.vmem %s2945_s10, %s1905_s12 }
  0x36   : > { %s2666_s27 = scalar_lea.vmem [#allocation3], %s1901_s25  ;;  %566 = sbr.rel (%p1912_p12) target bundleno = 68 (0x44), region = 101 }
  0x3b   : > { %v2501_v16 = vmov 0.0  }
  0x3c   : > { %567 = vst [vmem:[#allocation2 + $0x30] sm:$0xff] %v2501_v16  ;;  %568 = vst [vmem:[#allocation2] sm:$0xff] %v2501_v16 }
  0x3d   : > { %569 = vst [vmem:[#allocation2 + $0x58] sm:$0xff] %v2501_v16  ;;  %570 = vst [vmem:[#allocation2 + $0x18] sm:$0xff] %v2501_v16 }
  0x3e   : > { %571 = vst [vmem:[#allocation2 + $0x50] sm:$0xff] %v2501_v16  ;;  %572 = vst [vmem:[#allocation2 + $0x68] sm:$0xff] %v2501_v16 }
  0x3f   : > { %573 = vst [vmem:[#allocation2 + $0x8] sm:$0xff] %v2501_v16  ;;  %574 = vst [vmem:[#allocation2 + $0x48] sm:$0xff] %v2501_v16 }
  0x40   : > { %575 = vst [vmem:[#allocation2 + $0x40] sm:$0xff] %v2501_v16  ;;  %576 = vst [vmem:[#allocation2 + $0x20] sm:$0xff] %v2501_v16 }
  0x41   : > { %577 = vst [vmem:[#allocation2 + $0x10] sm:$0xff] %v2501_v16  ;;  %578 = vst [vmem:[#allocation2 + $0x38] sm:$0xff] %v2501_v16 }
  0x42   : > { %579 = vst [vmem:[#allocation2 + $0x60] sm:$0xff] %v2501_v16  ;;  %580 = vst [vmem:[#allocation2 + $0x70] sm:$0xff] %v2501_v16 }
  0x43   : > { %581 = vst [vmem:[#allocation2 + $0x78] sm:$0xff] %v2501_v16  ;;  %582 = vst [vmem:[#allocation2 + $0x28] sm:$0xff] %v2501_v16 }
  0x44 PF: > { %v2381_v17 = vld [vmem:[%s2644_s11 + $0x38] sm:$0xff]   ;;  %v2382_v18 = vld [vmem:[%s2644_s11 + $0x30] sm:$0xff]   ;;  %v2383_v19 = vld [vmem:[%s2644_s11 + $0x28] sm:$0xff]   ;;  %p1929_p13 = scmp.ne.s32.totalorder %s2483_s15, 1 }
  0x45   : > { %2227 = vmatprep.subr.bf16.mxu0 %v2381_v17  ;;  %2291 = vmatprep.subr.bf16.mxu1 %v2381_v17  ;;  %v2384_v20 = vld [vmem:[%s2644_s11 + $0x20] sm:$0xff]   ;;  %v2385_v23 = vld [vmem:[%s2644_s11 + $0x18] sm:$0xff]   ;;  %v2386_v24 = vld [vmem:[%s2644_s11 + $0x10] sm:$0xff]  }
  0x46   : > { %2228 = vmatpush3.bf16.msra.mxu0 %v2381_v17  ;;  %2299 = vmatpush3.bf16.msra.mxu1 %v2381_v17  ;;  %v2389_v21 = vld [vmem:[%s2666_s27] sm:$0xff]   ;;  %v2387_v25 = vld [vmem:[%s2644_s11 + $0x8] sm:$0xff]   ;;  %v2393_v29 = vld [vmem:[%s2666_s27 + $0x10] sm:$0xff]  }
  0x47   : > { %2229 = vmatprep.subr.bf16.mxu0 %v2382_v18  ;;  %2292 = vmatprep.subr.bf16.mxu1 %v2382_v18  ;;  %v2390_v22 = vld [vmem:[%s2666_s27 + $0x20] sm:$0xff]   ;;  %v2391_v27 = vld [vmem:[%s2666_s27 + $0x8] sm:$0xff]   ;;  %v2394_v30 = vld [vmem:[%s2666_s27 + $0x30] sm:$0xff]  }
  0x48   : > { %2243 = vmatprep.mubr.bf16.mxu0 %v2389_v21  ;;  %2251 = vmatprep.mubr.bf16.mxu1 %v2390_v22  ;;  %v2388_v26 = vld [vmem:[%s2644_s11] sm:$0xff]   ;;  %v2392_v28 = vld [vmem:[%s2666_s27 + $0x28] sm:$0xff]   ;;  %v2395_v31 = vld [vmem:[%s2666_s27 + $0x18] sm:$0xff]  }
  0x49   : > { %v2396_v32 = vld [vmem:[%s2666_s27 + $0x38] sm:$0xff]   ;;  %v593_v34 = vld [vmem:[#allocation2 + $0x10] sm:$0xff]  ;;  %v591_v38 = vld [vmem:[#allocation2 + $0x40] sm:$0xff] }
  0x4a   : > { %2230 = vmatpush3.bf16.msra.mxu0 %v2382_v18  ;;  %2300 = vmatpush3.bf16.msra.mxu1 %v2382_v18  ;;  %v585_v33 = vld [vmem:[#allocation2 + $0x58] sm:$0xff]  ;;  %v583_v37 = vld [vmem:[#allocation2 + $0x30] sm:$0xff]  ;;  %v584_v49 = vld [vmem:[#allocation2] sm:$0xff] }
  0x4b   : > { %2231 = vmatprep.subr.bf16.mxu0 %v2383_v19  ;;  %2293 = vmatprep.subr.bf16.mxu1 %v2383_v19  ;;  %v586_v43 = vld [vmem:[#allocation2 + $0x18] sm:$0xff]  ;;  %v592_v50 = vld [vmem:[#allocation2 + $0x20] sm:$0xff]  ;;  %v589_v55 = vld [vmem:[#allocation2 + $0x8] sm:$0xff] }
  0x4c   : > { %v594_v44 = vld [vmem:[#allocation2 + $0x38] sm:$0xff]  ;;  %v587_v61 = vld [vmem:[#allocation2 + $0x50] sm:$0xff]  ;;  %v595_v62 = vld [vmem:[#allocation2 + $0x60] sm:$0xff] }
  0x4d   : > { %v597_v56 = vld [vmem:[#allocation2 + $0x78] sm:$0xff]  ;;  %v590_v3 = vld [vmem:[#allocation2 + $0x48] sm:$0xff]  ;;  %v596_v10 = vld [vmem:[#allocation2 + $0x70] sm:$0xff] }
  0x4e   : > { %2232 = vmatpush3.bf16.msra.mxu0 %v2383_v19  ;;  %2301 = vmatpush3.bf16.msra.mxu1 %v2383_v19  ;;  %v598_v4 = vld [vmem:[#allocation2 + $0x28] sm:$0xff] }
  0x4f   : > { %2233 = vmatprep.subr.bf16.mxu0 %v2384_v20  ;;  %2294 = vmatprep.subr.bf16.mxu1 %v2384_v20  ;;  %v588_v9 = vld [vmem:[#allocation2 + $0x68] sm:$0xff] }
  0x52   : > { %2234 = vmatpush3.bf16.msra.mxu0 %v2384_v20  ;;  %2302 = vmatpush3.bf16.msra.mxu1 %v2384_v20 }
  0x53   : > { %2235 = vmatprep.subr.bf16.mxu0 %v2385_v23  ;;  %2295 = vmatprep.subr.bf16.mxu1 %v2385_v23 }
  0x56   : > { %2236 = vmatpush3.bf16.msra.mxu0 %v2385_v23  ;;  %2303 = vmatpush3.bf16.msra.mxu1 %v2385_v23 }
  0x57   : > { %2237 = vmatprep.subr.bf16.mxu0 %v2386_v24  ;;  %2296 = vmatprep.subr.bf16.mxu1 %v2386_v24 }
  0x5a   : > { %2238 = vmatpush3.bf16.msra.mxu0 %v2386_v24  ;;  %2304 = vmatpush3.bf16.msra.mxu1 %v2386_v24 }
  0x5b   : > { %2239 = vmatprep.subr.bf16.mxu0 %v2387_v25  ;;  %2297 = vmatprep.subr.bf16.mxu1 %v2387_v25 }
  0x5e   : > { %2240 = vmatpush3.bf16.msra.mxu0 %v2387_v25  ;;  %2305 = vmatpush3.bf16.msra.mxu1 %v2387_v25 }
  0x5f   : > { %2241 = vmatprep.subr.bf16.mxu0 %v2388_v26  ;;  %2298 = vmatprep.subr.bf16.mxu1 %v2388_v26 }
  0x62   : > { %2242 = vmatpush3.bf16.msra.mxu0 %v2388_v26  ;;  %2306 = vmatpush3.bf16.msra.mxu1 %v2388_v26 }
  0x65   : > { %2244 = vmatmul.mubr.bf16.vlgmr.msra.gmra.mxu0 %v2391_v27  ;;  %2252 = vmatmul.mubr.bf16.vlgmr.msra.gmra.mxu1 %v2392_v28 }
  0x66   : > { %2247 = vmatprep.mubr.bf16.mxu0 %v2393_v29  ;;  %2255 = vmatprep.mubr.bf16.mxu1 %v2394_v30 }
  0x6d   : > { %2248 = vmatmul.mubr.bf16.gmra.mxu0 %v2395_v31  ;;  %2256 = vmatmul.mubr.bf16.gmra.mxu1 %v2396_v32 }
 0x125   : > { %v2245_v35 = vpop.f32.mrf.mxu0  ;;  %v2253_v36 = vpop.f32.mrf.mxu1 }
 0x126   : > { %v826_v39 = vadd.f32 %v2245_v35, %v585_v33  ;;  %v834_v40 = vadd.f32 %v2253_v36, %v593_v34 }
 0x127   : > { %v761_v41 = vpop.f32.mrf.mxu0  ;;  %v793_v42 = vpop.f32.mrf.mxu1 }
 0x128   : > { %842 = vst [vmem:[#allocation2 + $0x58] sm:$0xff] %v826_v39  ;;  %850 = vst [vmem:[#allocation2 + $0x10] sm:$0xff] %v834_v40  ;;  %v824_v45 = vadd.f32 %v761_v41, %v583_v37  ;;  %v832_v46 = vadd.f32 %v793_v42, %v591_v38 }
 0x129   : > { %v2246_v47 = vpop.f32.mrf.mxu0  ;;  %v2254_v48 = vpop.f32.mrf.mxu1 }
 0x12a   : > { %840 = vst [vmem:[#allocation2 + $0x30] sm:$0xff] %v824_v45  ;;  %848 = vst [vmem:[#allocation2 + $0x40] sm:$0xff] %v832_v46  ;;  %v827_v51 = vadd.f32 %v2246_v47, %v586_v43  ;;  %v835_v52 = vadd.f32 %v2254_v48, %v594_v44 }
 0x12b   : > { %v764_v53 = vpop.f32.mrf.mxu0  ;;  %v796_v54 = vpop.f32.mrf.mxu1 }
 0x12c   : > { %843 = vst [vmem:[#allocation2 + $0x18] sm:$0xff] %v827_v51  ;;  %851 = vst [vmem:[#allocation2 + $0x38] sm:$0xff] %v835_v52  ;;  %v825_v57 = vadd.f32 %v764_v53, %v584_v49  ;;  %v833_v58 = vadd.f32 %v796_v54, %v592_v50 }
 0x12d   : > { %v2249_v59 = vpop.f32.mrf.mxu0  ;;  %v2257_v60 = vpop.f32.mrf.mxu1 }
 0x12e   : > { %841 = vst [vmem:[#allocation2] sm:$0xff] %v825_v57  ;;  %849 = vst [vmem:[#allocation2 + $0x20] sm:$0xff] %v833_v58  ;;  %v830_v63 = vadd.f32 %v2249_v59, %v589_v55  ;;  %v838_v0 = vadd.f32 %v2257_v60, %v597_v56 }
 0x12f   : > { %v777_v1 = vpop.f32.mrf.mxu0  ;;  %v809_v2 = vpop.f32.mrf.mxu1 }
 0x130   : > { %846 = vst [vmem:[#allocation2 + $0x8] sm:$0xff] %v830_v63  ;;  %854 = vst [vmem:[#allocation2 + $0x78] sm:$0xff] %v838_v0  ;;  %v828_v5 = vadd.f32 %v777_v1, %v587_v61  ;;  %v836_v6 = vadd.f32 %v809_v2, %v595_v62 }
 0x131   : > { %v2250_v7 = vpop.f32.mrf.mxu0  ;;  %v2258_v8 = vpop.f32.mrf.mxu1 }
 0x132   : > { %844 = vst [vmem:[#allocation2 + $0x50] sm:$0xff] %v828_v5  ;;  %852 = vst [vmem:[#allocation2 + $0x60] sm:$0xff] %v836_v6  ;;  %v831_v11 = vadd.f32 %v2250_v7, %v590_v3  ;;  %v839_v12 = vadd.f32 %v2258_v8, %v598_v4  ;;  %859 = sbr.rel (%p1929_p13) target bundleno = 1015 (0x3f7), region = 105 }
 0x133   : > { %v780_v13 = vpop.f32.mrf.mxu0  ;;  %v812_v14 = vpop.f32.mrf.mxu1 }
 0x134   : > { %847 = vst [vmem:[#allocation2 + $0x48] sm:$0xff] %v831_v11  ;;  %855 = vst [vmem:[#allocation2 + $0x28] sm:$0xff] %v839_v12  ;;  %v829_v15 = vadd.f32 %v780_v13, %v588_v9  ;;  %v837_v16 = vadd.f32 %v812_v14, %v596_v10 }
 0x136   : > { %845 = vst [vmem:[#allocation2 + $0x68] sm:$0xff] %v829_v15  ;;  %853 = vst [vmem:[#allocation2 + $0x70] sm:$0xff] %v837_v16 }
 0x137   : > { %v2397_v17 = vld [vmem:[%s2938_s3 + $0x74] ss:$8 sps:$4 sm:$0xff]   ;;  %v2399_v18 = vld [vmem:[%s2938_s3 + $0x70] ss:$8 sps:$4 sm:$0xff]   ;;  %v2502_v19 = vmov 0   ;;  %v2007_v31 = vld [vmem:[%s2649_s21] sm:$0xff]  }
 0x138   : > { %1072 = vmatprep.mubr.bf16.mxu0 %v2502_v19  ;;  %1040 = vmatprep.subr.bf16.mxu0 %v2397_v17  ;;  %v2400_v20 = vld [vmem:[%s2938_s3 + $0x64] ss:$8 sps:$4 sm:$0xff]   ;;  %v2402_v21 = vld [vmem:[%s2938_s3 + $0x60] ss:$8 sps:$4 sm:$0xff]   ;;  %v2403_v22 = vld [vmem:[%s2938_s3 + $0x54] ss:$8 sps:$4 sm:$0xff]   ;;  %v2008_v38 = vunpack.c.l.bf16 %v2007_v31  ;;  %v2009_v39 = vunpack.c.h.bf16 %v2007_v31 }
 0x139   : > { %1041 = vmatpush1.bf16.msra.mxu0 %v2399_v18  ;;  %v2405_v23 = vld [vmem:[%s2938_s3 + $0x50] ss:$8 sps:$4 sm:$0xff]   ;;  %v2406_v24 = vld [vmem:[%s2938_s3 + $0x44] ss:$8 sps:$4 sm:$0xff]   ;;  %v2408_v25 = vld [vmem:[%s2938_s3 + $0x40] ss:$8 sps:$4 sm:$0xff]  }
 0x13a   : > { %1042 = vmatprep.subr.bf16.mxu0 %v2400_v20  ;;  %v2409_v26 = vld [vmem:[%s2938_s3 + $0x34] ss:$8 sps:$4 sm:$0xff]   ;;  %v2411_v27 = vld [vmem:[%s2938_s3 + $0x30] ss:$8 sps:$4 sm:$0xff]   ;;  %v2412_v28 = vld [vmem:[%s2938_s3 + $0x24] ss:$8 sps:$4 sm:$0xff]  }
 0x13b   : > { %v2414_v29 = vld [vmem:[%s2938_s3 + $0x20] ss:$8 sps:$4 sm:$0xff]   ;;  %v2415_v30 = vld [vmem:[%s2938_s3 + $0x14] ss:$8 sps:$4 sm:$0xff]   ;;  %v2417_v34 = vld [vmem:[%s2938_s3 + $0x10] ss:$8 sps:$4 sm:$0xff]  }
 0x13c   : > { %v2421_v32 = vld [vmem:[%s2940_s5 + $0x78] sm:$0xff]   ;;  %v860_v35 = vld [vmem:[#allocation2 + $0x30] sm:$0xff]  ;;  %v861_v36 = vld [vmem:[#allocation2] sm:$0xff] }
 0x13d   : > { %1043 = vmatpush1.bf16.msra.mxu0 %v2402_v21  ;;  %v2422_v33 = vld [vmem:[%s2940_s5 + $0x38] sm:$0xff]   ;;  %2147 = vmatprep.subr.bf16.mxu1 %v2421_v32  ;;  %v2423_v37 = vld [vmem:[%s2940_s5 + $0x70] sm:$0xff]   ;;  %v2425_v41 = vld [vmem:[%s2940_s5 + $0x68] sm:$0xff]   ;;  %v908_v45 = vadd.f32 %v2008_v38, %v860_v35  ;;  %v909_v46 = vadd.f32 %v2009_v39, %v861_v36 }
 0x13e   : > { %1044 = vmatprep.subr.bf16.mxu0 %v2403_v22  ;;  %2148 = vmatpush3.bf16.msra.mxu1 %v2422_v33  ;;  %v2424_v40 = vld [vmem:[%s2940_s5 + $0x30] sm:$0xff]   ;;  %v2418_v42 = vld [vmem:[%s2938_s3 + $0x4] ss:$8 sps:$4 sm:$0xff]   ;;  %v2420_v43 = vld [vmem:[%s2938_s3] ss:$8 sps:$4 sm:$0xff]  }
 0x13f   : > { %2149 = vmatprep.subr.bf16.mxu1 %v2423_v37  ;;  %v2110_v44 = vld [vmem:[%s2649_s21 + $0x8] sm:$0xff]   ;;  %v2427_v48 = vld [vmem:[%s2940_s5 + $0x60] sm:$0xff]   ;;  %v862_v50 = vld [vmem:[#allocation2 + $0x58] sm:$0xff]  ;;  %v924_v53 = vpack.c.bf16 %v909_v46, %v908_v45 }
 0x140   : > { %v2426_v47 = vld [vmem:[%s2940_s5 + $0x28] sm:$0xff]   ;;  %v2428_v49 = vld [vmem:[%s2940_s5 + $0x20] sm:$0xff]   ;;  %v863_v51 = vld [vmem:[#allocation2 + $0x18] sm:$0xff]  ;;  %v2012_v54 = vunpack.c.l.bf16 %v2110_v44  ;;  %v2013_v55 = vunpack.c.h.bf16 %v2110_v44 }
 0x141   : > { %1045 = vmatpush1.bf16.msra.mxu0 %v2405_v23  ;;  %v2429_v52 = vld [vmem:[%s2940_s5 + $0x58] sm:$0xff]   ;;  %v2111_v57 = vld [vmem:[%s2649_s21 + $0x10] sm:$0xff]   ;;  %v865_v0 = vld [vmem:[#allocation2 + $0x68] sm:$0xff] }
 0x142   : > { %1046 = vmatprep.subr.bf16.mxu0 %v2406_v24  ;;  %2150 = vmatpush3.bf16.msra.mxu1 %v2424_v40  ;;  %v2430_v56 = vld [vmem:[%s2940_s5 + $0x18] sm:$0xff]   ;;  %v910_v58 = vadd.f32 %v2012_v54, %v862_v50  ;;  %v911_v59 = vadd.f32 %v2013_v55, %v863_v51  ;;  %v2016_v61 = vunpack.c.l.bf16 %v2111_v57  ;;  %v2017_v62 = vunpack.c.h.bf16 %v2111_v57  ;;  %v864_v63 = vld [vmem:[#allocation2 + $0x50] sm:$0xff]  ;;  %v866_v7 = vld [vmem:[#allocation2 + $0x8] sm:$0xff] }
 0x143   : > { %2151 = vmatprep.subr.bf16.mxu1 %v2425_v41  ;;  %v2112_v3 = vld [vmem:[%s2649_s21 + $0x18] sm:$0xff]   ;;  %v867_v8 = vld [vmem:[#allocation2 + $0x48] sm:$0xff]  ;;  %v2113_v11 = vld [vmem:[%s2649_s21 + $0x20] sm:$0xff]  }
 0x144   : > { %v925_v60 = vpack.c.bf16 %v911_v59, %v910_v58  ;;  %v912_v1 = vadd.f32 %v2016_v61, %v864_v63  ;;  %v913_v2 = vadd.f32 %v2017_v62, %v865_v0  ;;  %v2020_v5 = vunpack.c.l.bf16 %v2112_v3  ;;  %v868_v15 = vld [vmem:[#allocation2 + $0x40] sm:$0xff]  ;;  %v2114_v20 = vld [vmem:[%s2649_s21 + $0x28] sm:$0xff]   ;;  %v870_v24 = vld [vmem:[#allocation2 + $0x10] sm:$0xff] }
 0x145   : > { %1047 = vmatpush1.bf16.msra.mxu0 %v2408_v25  ;;  %v2021_v6 = vunpack.c.h.bf16 %v2112_v3  ;;  %v2024_v13 = vunpack.c.l.bf16 %v2113_v11  ;;  %v2025_v14 = vunpack.c.h.bf16 %v2113_v11  ;;  %v869_v16 = vld [vmem:[#allocation2 + $0x20] sm:$0xff]  ;;  %v2028_v22 = vunpack.c.l.bf16 %v2114_v20  ;;  %v871_v25 = vld [vmem:[#allocation2 + $0x38] sm:$0xff]  ;;  %v873_v33 = vld [vmem:[#allocation2 + $0x70] sm:$0xff] }
 0x146   : > { %1048 = vmatprep.subr.bf16.mxu0 %v2409_v26  ;;  %2152 = vmatpush3.bf16.msra.mxu1 %v2426_v47  ;;  %v926_v4 = vpack.c.bf16 %v913_v2, %v912_v1  ;;  %v914_v9 = vadd.f32 %v2020_v5, %v866_v7  ;;  %v2029_v23 = vunpack.c.h.bf16 %v2114_v20  ;;  %v872_v32 = vld [vmem:[#allocation2 + $0x60] sm:$0xff]  ;;  %v2116_v36 = vld [vmem:[%s2649_s21 + $0x38] sm:$0xff]   ;;  %v875_v41 = vld [vmem:[#allocation2 + $0x28] sm:$0xff] }
 0x147   : > { %2153 = vmatprep.subr.bf16.mxu1 %v2427_v48  ;;  %v915_v10 = vadd.f32 %v2021_v6, %v867_v8  ;;  %v916_v17 = vadd.f32 %v2024_v13, %v868_v15  ;;  %v917_v18 = vadd.f32 %v2025_v14, %v869_v16  ;;  %v918_v26 = vadd.f32 %v2028_v22, %v870_v24  ;;  %v874_v40 = vld [vmem:[#allocation2 + $0x78] sm:$0xff]  ;;  %v2431_v45 = vld [vmem:[%s2940_s5 + $0x50] sm:$0xff]   ;;  %v2433_v47 = vld [vmem:[%s2940_s5 + $0x48] sm:$0xff]  }
 0x148   : > { %v2036_v38 = vunpack.c.l.bf16 %v2116_v36  ;;  %v2037_v39 = vunpack.c.h.bf16 %v2116_v36  ;;  %v2432_v46 = vld [vmem:[%s2940_s5 + $0x10] sm:$0xff]   ;;  %v2435_v48 = vld [vmem:[%s2940_s5 + $0x40] sm:$0xff]   ;;  %v2437_v50 = vld [vmem:[%s2943_s8 + $0x38] sm:$0xff]  }
 0x149   : > { %1049 = vmatpush1.bf16.msra.mxu0 %v2411_v27  ;;  %v927_v12 = vpack.c.bf16 %v915_v10, %v914_v9  ;;  %v928_v21 = vpack.c.bf16 %v917_v18, %v916_v17  ;;  %v919_v27 = vadd.f32 %v2029_v23, %v871_v25  ;;  %v2438_v51 = vld [vmem:[%s2943_s8 + $0x30] sm:$0xff]   ;;  %v948_v57 = vld [vmem:[%s2939_s4] sm:$0x3] }
 0x14a   : > { %1050 = vmatprep.subr.bf16.mxu0 %v2412_v28  ;;  %2154 = vmatpush3.bf16.msra.mxu1 %v2428_v49  ;;  %v2115_v28 = vld [vmem:[%s2649_s21 + $0x30] sm:$0xff]   ;;  %v2436_v49 = vld [vmem:[%s2940_s5] sm:$0xff]  }
 0x14b   : > { %2155 = vmatprep.subr.bf16.mxu1 %v2429_v52  ;;  %v2033_v31 = vunpack.c.h.bf16 %v2115_v28  ;;  %v2439_v52 = vld [vmem:[%s2943_s8 + $0x28] sm:$0xff]  }
 0x14d   : > { %1051 = vmatpush1.bf16.msra.mxu0 %v2414_v29  ;;  %v929_v29 = vpack.c.bf16 %v919_v27, %v918_v26  ;;  %v921_v35 = vadd.f32 %v2033_v31, %v873_v33 }
 0x14e   : > { %1052 = vmatprep.subr.bf16.mxu0 %v2415_v30  ;;  %2156 = vmatpush3.bf16.msra.mxu1 %v2430_v56  ;;  %v2032_v30 = vunpack.c.l.bf16 %v2115_v28 }
 0x14f   : > { %2157 = vmatprep.subr.bf16.mxu1 %v2431_v45 }
 0x151   : > { %1053 = vmatpush1.bf16.msra.mxu0 %v2417_v34  ;;  %v920_v34 = vadd.f32 %v2032_v30, %v872_v32 }
 0x152   : > { %1054 = vmatprep.subr.bf16.mxu0 %v2418_v42  ;;  %v922_v42 = vadd.f32 %v2036_v38, %v874_v40  ;;  %2158 = vmatpush3.bf16.msra.mxu1 %v2432_v46 }
 0x153   : > { %v930_v37 = vpack.c.bf16 %v921_v35, %v920_v34  ;;  %2159 = vmatprep.subr.bf16.mxu1 %v2433_v47 }
 0x155   : > { %1055 = vmatpush1.bf16.msra.mxu0 %v2420_v43  ;;  %v923_v43 = vadd.f32 %v2037_v39, %v875_v41 }
 0x156   : > { %2259 = vmatprep.subr.bf16.mxu0 %v2437_v50 }
 0x157   : > { %v931_v44 = vpack.c.bf16 %v923_v43, %v922_v42 }
 0x158   : > { %1073 = vmatmul.mubr.bf16.vlgmr.msra.gmra.mxu0 %v924_v53  ;;  %v950_v53 = vlaneseq }
 0x159   : > { %1082 = vmatprep.mubr.bf16.mxu0 %v2502_v19  ;;  %2260 = vmatpush3.bf16.msra.mxu0 %v2437_v50 }
 0x15a   : > { %2261 = vmatprep.subr.bf16.mxu0 %v2438_v51  ;;  %v951_v54 = vshrl.u32 %v950_v53, 7 }
 0x15c   : > { %v956_v55 = vsub.s32 1, %v951_v54  ;;  %v952_v56 = vsub.s32 0, %v951_v54 }
 0x15d   : > { %2262 = vmatpush3.bf16.msra.mxu0 %v2438_v51 }
 0x15e   : > { %2263 = vmatprep.subr.bf16.mxu0 %v2439_v52  ;;  %v2810_v59 = vrot.slane %v948_v57, %v956_v55 }
 0x160   : > { %1083 = vmatmul.mubr.bf16.gmra.mxu0 %v925_v60  ;;  %v2812_v60 = vrot.slane %v948_v57, %v952_v56 }
 0x161   : > { %1092 = vmatprep.mubr.bf16.mxu0 %v2502_v19  ;;  %2264 = vmatpush3.bf16.msra.mxu0 %v2439_v52 }
 0x168   : > { %1093 = vmatmul.mubr.bf16.gmra.mxu0 %v926_v4 }
 0x169   : > { %1102 = vmatprep.mubr.bf16.mxu0 %v2502_v19 }
 0x170   : > { %1103 = vmatmul.mubr.bf16.gmra.mxu0 %v927_v12 }
 0x171   : > { %1112 = vmatprep.mubr.bf16.mxu0 %v2502_v19 }
 0x178   : > { %1113 = vmatmul.mubr.bf16.gmra.mxu0 %v928_v21 }
 0x179   : > { %1122 = vmatprep.mubr.bf16.mxu0 %v2502_v19 }
 0x180   : > { %1123 = vmatmul.mubr.bf16.gmra.mxu0 %v929_v29 }
 0x181   : > { %1132 = vmatprep.mubr.bf16.mxu0 %v2502_v19 }
 0x188   : > { %1133 = vmatmul.mubr.bf16.gmra.mxu0 %v930_v37 }
 0x189   : > { %1142 = vmatprep.mubr.bf16.mxu0 %v2502_v19  ;;  %v2434_v19 = vld [vmem:[%s2940_s5 + $0x8] sm:$0xff]  }
 0x18a   : > { %2160 = vmatpush3.bf16.msra.mxu1 %v2434_v19 }
 0x18b   : > { %2161 = vmatprep.subr.bf16.mxu1 %v2435_v48 }
 0x18e   : > { %2162 = vmatpush3.bf16.msra.mxu1 %v2436_v49 }
 0x18f   : > { %2307 = vmatprep.subr.bf16.mxu1 %v2437_v50 }
 0x190   : > { %1143 = vmatmul.mubr.bf16.gmra.mxu0 %v931_v44 }
 0x218   : > { %v1074_v58 = vpop.f32.mrf.mxu0 }
 0x219   : > { %v1075_v1 = vadd.f32 %v1074_v58, %v2812_v60 }
 0x21a   : > { %v1076_v61 = vpop.f32.mrf.mxu0 }
 0x21b   : > { %v1077_v63 = vadd.f32 %v1076_v61, %v2810_v59  ;;  %v1153_v8 = vmax.f32 %v1075_v1, 0.0 }
 0x21c   : > { %v1078_v62 = vpop.f32.mrf.mxu0 }
 0x21d   : > { %v1079_v0 = vadd.f32 %v1078_v62, %v2812_v60  ;;  %v1154_v6 = vmax.f32 %v1077_v63, 0.0 }
 0x21e   : > { %v1080_v2 = vpop.f32.mrf.mxu0 }
 0x21f   : > { %v1081_v3 = vadd.f32 %v1080_v2, %v2810_v59  ;;  %v1155_v4 = vmax.f32 %v1079_v0, 0.0 }
 0x220   : > { %v1084_v5 = vpop.f32.mrf.mxu0 }
 0x221   : > { %v1156_v7 = vmax.f32 %v1081_v3, 0.0  ;;  %v1185_v11 = vpack.c.bf16 %v1155_v4, %v1153_v8  ;;  %v1085_v15 = vadd.f32 %v1084_v5, %v2812_v60 }
 0x222   : > { %v1086_v9 = vpop.f32.mrf.mxu0 }
 0x223   : > { %v1186_v10 = vpack.c.bf16 %v1156_v7, %v1154_v6  ;;  %v1087_v13 = vadd.f32 %v1086_v9, %v2810_v59  ;;  %v1157_v23 = vmax.f32 %v1085_v15, 0.0 }
 0x224   : > { %v1088_v12 = vpop.f32.mrf.mxu0 }
 0x225   : > { %v1089_v14 = vadd.f32 %v1088_v12, %v2812_v60  ;;  %1368 = vmatprep.mubr.bf16.mxu1 %v1186_v10  ;;  %v1158_v21 = vmax.f32 %v1087_v13, 0.0 }
 0x226   : > { %v1090_v16 = vpop.f32.mrf.mxu0  ;;  %1369 = vmatmul.mubr.bf16.vlgmr.msra.gmra.mxu1 %v1185_v11 }
 0x227   : > { %v1091_v17 = vadd.f32 %v1090_v16, %v2810_v59  ;;  %2315 = vmatpush3.bf16.msra.mxu1 %v2437_v50  ;;  %v1159_v18 = vmax.f32 %v1089_v14, 0.0 }
 0x228   : > { %v1094_v20 = vpop.f32.mrf.mxu0  ;;  %2308 = vmatprep.subr.bf16.mxu1 %v2438_v51 }
 0x229   : > { %v1160_v22 = vmax.f32 %v1091_v17, 0.0  ;;  %v1187_v26 = vpack.c.bf16 %v1159_v18, %v1157_v23  ;;  %v1095_v30 = vadd.f32 %v1094_v20, %v2812_v60 }
 0x22a   : > { %v1096_v24 = vpop.f32.mrf.mxu0 }
 0x22b   : > { %v1188_v25 = vpack.c.bf16 %v1160_v22, %v1158_v21  ;;  %2316 = vmatpush3.bf16.msra.mxu1 %v2438_v51  ;;  %v1097_v28 = vadd.f32 %v1096_v24, %v2810_v59  ;;  %v1161_v37 = vmax.f32 %v1095_v30, 0.0 }
 0x22c   : > { %v1098_v27 = vpop.f32.mrf.mxu0  ;;  %2309 = vmatprep.subr.bf16.mxu1 %v2439_v52 }
 0x22d   : > { %v1099_v29 = vadd.f32 %v1098_v27, %v2812_v60  ;;  %1376 = vmatprep.mubr.bf16.mxu1 %v1188_v25  ;;  %v1162_v35 = vmax.f32 %v1097_v28, 0.0 }
 0x22e   : > { %v1100_v31 = vpop.f32.mrf.mxu0  ;;  %1377 = vmatmul.mubr.bf16.gmra.mxu1 %v1187_v26 }
 0x22f   : > { %v1101_v32 = vadd.f32 %v1100_v31, %v2810_v59  ;;  %2317 = vmatpush3.bf16.msra.mxu1 %v2439_v52  ;;  %v1163_v33 = vmax.f32 %v1099_v29, 0.0 }
 0x230   : > { %v1104_v34 = vpop.f32.mrf.mxu0 }
 0x231   : > { %v1164_v36 = vmax.f32 %v1101_v32, 0.0  ;;  %v1189_v40 = vpack.c.bf16 %v1163_v33, %v1161_v37  ;;  %v1105_v44 = vadd.f32 %v1104_v34, %v2812_v60 }
 0x232   : > { %v1106_v38 = vpop.f32.mrf.mxu0 }
 0x233   : > { %v1190_v39 = vpack.c.bf16 %v1164_v36, %v1162_v35  ;;  %v1107_v42 = vadd.f32 %v1106_v38, %v2810_v59  ;;  %v1165_v50 = vmax.f32 %v1105_v44, 0.0 }
 0x234   : > { %v1108_v41 = vpop.f32.mrf.mxu0 }
 0x235   : > { %v1109_v43 = vadd.f32 %v1108_v41, %v2812_v60  ;;  %1384 = vmatprep.mubr.bf16.mxu1 %v1190_v39  ;;  %v1166_v48 = vmax.f32 %v1107_v42, 0.0 }
 0x236   : > { %v1110_v45 = vpop.f32.mrf.mxu0  ;;  %1385 = vmatmul.mubr.bf16.gmra.mxu1 %v1189_v40 }
 0x237   : > { %v1111_v46 = vadd.f32 %v1110_v45, %v2810_v59  ;;  %v1167_v47 = vmax.f32 %v1109_v43, 0.0 }
 0x238   : > { %v1114_v19 = vpop.f32.mrf.mxu0 }
 0x239   : > { %v1168_v49 = vmax.f32 %v1111_v46, 0.0  ;;  %v1191_v53 = vpack.c.bf16 %v1167_v47, %v1165_v50  ;;  %v1115_v57 = vadd.f32 %v1114_v19, %v2812_v60  ;;  %v2440_v47 = vld [vmem:[%s2943_s8 + $0x20] sm:$0xff]   ;;  %v2443_v19 = vld [vmem:[%s2943_s8 + $0x8] sm:$0xff]  }
 0x23a   : > { %v1116_v51 = vpop.f32.mrf.mxu0  ;;  %2265 = vmatprep.subr.bf16.mxu0 %v2440_v47  ;;  %2310 = vmatprep.subr.bf16.mxu1 %v2440_v47  ;;  %v2864_v50 = vld [vmem:[%s2941_s6] ss:$0 sm:$0xff] }
 0x23b   : > { %v1192_v52 = vpack.c.bf16 %v1168_v49, %v1166_v48  ;;  %v1117_v55 = vadd.f32 %v1116_v51, %v2810_v59  ;;  %v1169_v2 = vmax.f32 %v1115_v57, 0.0  ;;  %2266 = vmatpush3.bf16.msra.mxu0 %v2440_v47  ;;  %2318 = vmatpush3.bf16.msra.mxu1 %v2440_v47  ;;  %v2444_v48 = vld [vmem:[%s2943_s8] sm:$0xff]  }
 0x23c   : > { %v1118_v54 = vpop.f32.mrf.mxu0  ;;  %v2120_v47 = vld [vmem:[%s2654_s16 + $0x20] sm:$0xff]  }
 0x23d   : > { %v1119_v56 = vadd.f32 %v1118_v54, %v2812_v60  ;;  %1392 = vmatprep.mubr.bf16.mxu1 %v1192_v52  ;;  %v1170_v0 = vmax.f32 %v1117_v55, 0.0 }
 0x23e   : > { %v1120_v58 = vpop.f32.mrf.mxu0  ;;  %1393 = vmatmul.mubr.bf16.gmra.mxu1 %v1191_v53  ;;  %v2039_v53 = vld [vmem:[%s2654_s16] sm:$0xff]  }
 0x23f   : > { %v1121_v61 = vadd.f32 %v1120_v58, %v2810_v59  ;;  %v1171_v62 = vmax.f32 %v1119_v56, 0.0  ;;  %v2040_v57 = vunpack.c.l.bf16 %v2039_v53 }
 0x240   : > { %v1124_v63 = vpop.f32.mrf.mxu0 }
 0x241   : > { %v1172_v1 = vmax.f32 %v1121_v61, 0.0  ;;  %v1193_v5 = vpack.c.bf16 %v1171_v62, %v1169_v2  ;;  %v1125_v9 = vadd.f32 %v1124_v63, %v2812_v60  ;;  %v2041_v61 = vunpack.c.h.bf16 %v2039_v53 }
 0x242   : > { %v1126_v3 = vpop.f32.mrf.mxu0 }
 0x243   : > { %v1194_v4 = vpack.c.bf16 %v1172_v1, %v1170_v0  ;;  %v1127_v7 = vadd.f32 %v1126_v3, %v2810_v59  ;;  %v1173_v16 = vmax.f32 %v1125_v9, 0.0 }
 0x244   : > { %v1128_v6 = vpop.f32.mrf.mxu0 }
 0x245   : > { %v1129_v8 = vadd.f32 %v1128_v6, %v2812_v60  ;;  %1400 = vmatprep.mubr.bf16.mxu1 %v1194_v4  ;;  %v1174_v14 = vmax.f32 %v1127_v7, 0.0  ;;  %v2117_v4 = vld [vmem:[%s2654_s16 + $0x8] sm:$0xff]  }
 0x246   : > { %v1130_v10 = vpop.f32.mrf.mxu0  ;;  %1401 = vmatmul.mubr.bf16.gmra.mxu1 %v1193_v5  ;;  %v2044_v9 = vunpack.c.l.bf16 %v2117_v4 }
 0x247   : > { %v1131_v11 = vadd.f32 %v1130_v10, %v2810_v59  ;;  %v1175_v12 = vmax.f32 %v1129_v8, 0.0 }
 0x248   : > { %v1134_v13 = vpop.f32.mrf.mxu0 }
 0x249   : > { %v1176_v15 = vmax.f32 %v1131_v11, 0.0  ;;  %v1195_v20 = vpack.c.bf16 %v1175_v12, %v1173_v16  ;;  %v1135_v24 = vadd.f32 %v1134_v13, %v2812_v60  ;;  %v2045_v11 = vunpack.c.h.bf16 %v2117_v4 }
 0x24a   : > { %v1136_v17 = vpop.f32.mrf.mxu0 }
 0x24b   : > { %v1196_v18 = vpack.c.bf16 %v1176_v15, %v1174_v14  ;;  %v1137_v22 = vadd.f32 %v1136_v17, %v2810_v59  ;;  %v1177_v31 = vmax.f32 %v1135_v24, 0.0 }
 0x24c   : > { %v1138_v21 = vpop.f32.mrf.mxu0 }
 0x24d   : > { %v1139_v23 = vadd.f32 %v1138_v21, %v2812_v60  ;;  %1408 = vmatprep.mubr.bf16.mxu1 %v1196_v18  ;;  %v1178_v29 = vmax.f32 %v1137_v22, 0.0  ;;  %v2118_v18 = vld [vmem:[%s2654_s16 + $0x10] sm:$0xff]  }
 0x24e   : > { %v1140_v25 = vpop.f32.mrf.mxu0  ;;  %1409 = vmatmul.mubr.bf16.gmra.mxu1 %v1195_v20  ;;  %v2048_v24 = vunpack.c.l.bf16 %v2118_v18 }
 0x24f   : > { %v1141_v26 = vadd.f32 %v1140_v25, %v2810_v59  ;;  %v1179_v27 = vmax.f32 %v1139_v23, 0.0 }
 0x250   : > { %v1144_v28 = vpop.f32.mrf.mxu0 }
 0x251   : > { %v1180_v30 = vmax.f32 %v1141_v26, 0.0  ;;  %v1197_v34 = vpack.c.bf16 %v1179_v27, %v1177_v31  ;;  %v1145_v38 = vadd.f32 %v1144_v28, %v2812_v60  ;;  %v2049_v26 = vunpack.c.h.bf16 %v2118_v18 }
 0x252   : > { %v1146_v32 = vpop.f32.mrf.mxu0 }
 0x253   : > { %v1198_v33 = vpack.c.bf16 %v1180_v30, %v1178_v29  ;;  %v1147_v36 = vadd.f32 %v1146_v32, %v2810_v59  ;;  %v1181_v44 = vmax.f32 %v1145_v38, 0.0 }
 0x254   : > { %v1148_v35 = vpop.f32.mrf.mxu0 }
 0x255   : > { %v1149_v37 = vadd.f32 %v1148_v35, %v2812_v60  ;;  %1416 = vmatprep.mubr.bf16.mxu1 %v1198_v33  ;;  %v1182_v42 = vmax.f32 %v1147_v36, 0.0  ;;  %v2442_v60 = vld [vmem:[%s2943_s8 + $0x10] sm:$0xff]   ;;  %v2119_v33 = vld [vmem:[%s2654_s16 + $0x18] sm:$0xff]  }
 0x256   : > { %v1150_v39 = vpop.f32.mrf.mxu0  ;;  %1417 = vmatmul.mubr.bf16.gmra.mxu1 %v1197_v34  ;;  %v2052_v38 = vunpack.c.l.bf16 %v2119_v33 }
 0x257   : > { %v1151_v40 = vadd.f32 %v1150_v39, %v2810_v59  ;;  %v1183_v41 = vmax.f32 %v1149_v37, 0.0  ;;  %v2441_v59 = vld [vmem:[%s2943_s8 + $0x18] sm:$0xff]  }
 0x258   : > { %2267 = vmatprep.subr.bf16.mxu0 %v2441_v59  ;;  %2311 = vmatprep.subr.bf16.mxu1 %v2441_v59 }
 0x259   : > { %v1184_v43 = vmax.f32 %v1151_v40, 0.0  ;;  %v1199_v46 = vpack.c.bf16 %v1183_v41, %v1181_v44  ;;  %2268 = vmatpush3.bf16.msra.mxu0 %v2441_v59  ;;  %2319 = vmatpush3.bf16.msra.mxu1 %v2441_v59  ;;  %v2053_v40 = vunpack.c.h.bf16 %v2119_v33 }
 0x25a   : > { %2269 = vmatprep.subr.bf16.mxu0 %v2442_v60  ;;  %2312 = vmatprep.subr.bf16.mxu1 %v2442_v60 }
 0x25b   : > { %v1200_v45 = vpack.c.bf16 %v1184_v43, %v1182_v42 }
 0x25d   : > { %1424 = vmatprep.mubr.bf16.mxu1 %v1200_v45  ;;  %2270 = vmatpush3.bf16.msra.mxu0 %v2442_v60 }
 0x25e   : > { %1425 = vmatmul.mubr.bf16.gmra.mxu1 %v1199_v46  ;;  %2271 = vmatprep.subr.bf16.mxu0 %v2443_v19 }
 0x25f   : > { %2320 = vmatpush3.bf16.msra.mxu1 %v2442_v60 }
 0x260   : > { %2313 = vmatprep.subr.bf16.mxu1 %v2443_v19 }
 0x261   : > { %2272 = vmatpush3.bf16.msra.mxu0 %v2443_v19 }
 0x262   : > { %2273 = vmatprep.subr.bf16.mxu0 %v2444_v48 }
 0x263   : > { %2321 = vmatpush3.bf16.msra.mxu1 %v2443_v19 }
 0x264   : > { %2314 = vmatprep.subr.bf16.mxu1 %v2444_v48 }
 0x265   : > { %2274 = vmatpush3.bf16.msra.mxu0 %v2444_v48 }
 0x267   : > { %2322 = vmatpush3.bf16.msra.mxu1 %v2444_v48 }
 0x2e6   : > { %v2163_v49 = vpop.f32.mrf.mxu1 }
 0x2e8   : > { %v2164_v51 = vpop.f32.mrf.mxu1 }
 0x2e9   : > { %v2165_v52 = vadd.f32 %v2164_v51, %v2163_v49  ;;  %v2056_v49 = vunpack.c.l.bf16 %v2120_v47 }
 0x2ea   : > { %v2166_v54 = vpop.f32.mrf.mxu1 }
 0x2eb   : > { %v1371_v55 = vadd.f32 %v2165_v52, %v2864_v50  ;;  %v2057_v52 = vunpack.c.h.bf16 %v2120_v47 }
 0x2ec   : > { %v2167_v56 = vpop.f32.mrf.mxu1 }
 0x2ed   : > { %1433 = vst [vmem:[%s2659_s17] sm:$0xff] %v1371_v55  ;;  %v2168_v58 = vadd.f32 %v2167_v56, %v2166_v54  ;;  %v1481_v1 = vmul.f32 %v2040_v57, %v1371_v55 }
 0x2ee   : > { %v2169_v62 = vpop.f32.mrf.mxu1 }
 0x2ef   : > { %v1374_v63 = vadd.f32 %v2168_v58, %v2864_v50 }
 0x2f0   : > { %v2170_v0 = vpop.f32.mrf.mxu1 }
 0x2f1   : > { %1434 = vst [vmem:[%s2659_s17 + $0x8] sm:$0xff] %v1374_v63  ;;  %v1482_v2 = vmul.f32 %v2041_v61, %v1374_v63  ;;  %v2171_v3 = vadd.f32 %v2170_v0, %v2169_v62  ;;  %v2121_v61 = vld [vmem:[%s2654_s16 + $0x28] sm:$0xff]  }
 0x2f2   : > { %v2172_v5 = vpop.f32.mrf.mxu1  ;;  %v2061_v4 = vunpack.c.h.bf16 %v2121_v61 }
 0x2f3   : > { %v1379_v6 = vadd.f32 %v2171_v3, %v2864_v50  ;;  %v1497_v7 = vpack.c.bf16 %v1482_v2, %v1481_v1  ;;  %v2060_v2 = vunpack.c.l.bf16 %v2121_v61 }
 0x2f4   : > { %v2173_v8 = vpop.f32.mrf.mxu1 }
 0x2f5   : > { %1435 = vst [vmem:[%s2659_s17 + $0x10] sm:$0xff] %v1379_v6  ;;  %v2174_v10 = vadd.f32 %v2173_v8, %v2172_v5  ;;  %2275 = vmatprep.mubr.bf16.mxu0 %v1497_v7  ;;  %v1483_v15 = vmul.f32 %v2044_v9, %v1379_v6 }
 0x2f6   : > { %v2175_v12 = vpop.f32.mrf.mxu1 }
 0x2f7   : > { %v1382_v13 = vadd.f32 %v2174_v10, %v2864_v50 }
 0x2f8   : > { %v2176_v14 = vpop.f32.mrf.mxu1 }
 0x2f9   : > { %1436 = vst [vmem:[%s2659_s17 + $0x18] sm:$0xff] %v1382_v13  ;;  %v1484_v16 = vmul.f32 %v2045_v11, %v1382_v13  ;;  %v2177_v17 = vadd.f32 %v2176_v14, %v2175_v12  ;;  %v2122_v11 = vld [vmem:[%s2654_s16 + $0x30] sm:$0xff]  }
 0x2fa   : > { %v2178_v20 = vpop.f32.mrf.mxu1  ;;  %v2065_v18 = vunpack.c.h.bf16 %v2122_v11 }
 0x2fb   : > { %v1498_v21 = vpack.c.bf16 %v1484_v16, %v1483_v15  ;;  %v1387_v22 = vadd.f32 %v2177_v17, %v2864_v50  ;;  %v2064_v16 = vunpack.c.l.bf16 %v2122_v11 }
 0x2fc   : > { %v2179_v23 = vpop.f32.mrf.mxu1 }
 0x2fd   : > { %1437 = vst [vmem:[%s2659_s17 + $0x20] sm:$0xff] %v1387_v22  ;;  %v2180_v25 = vadd.f32 %v2179_v23, %v2178_v20  ;;  %2276 = vmatmul.mubr.bf16.vlgmr.msra.gmra.mxu0 %v1498_v21  ;;  %v1485_v30 = vmul.f32 %v2048_v24, %v1387_v22 }
 0x2fe   : > { %v2181_v27 = vpop.f32.mrf.mxu1 }
 0x2ff   : > { %v1390_v28 = vadd.f32 %v2180_v25, %v2864_v50 }
 0x300   : > { %v2182_v29 = vpop.f32.mrf.mxu1 }
 0x301   : > { %1438 = vst [vmem:[%s2659_s17 + $0x28] sm:$0xff] %v1390_v28  ;;  %v1486_v31 = vmul.f32 %v2049_v26, %v1390_v28  ;;  %v2183_v32 = vadd.f32 %v2182_v29, %v2181_v27  ;;  %v2123_v26 = vld [vmem:[%s2654_s16 + $0x38] sm:$0xff]  }
 0x302   : > { %v2184_v34 = vpop.f32.mrf.mxu1  ;;  %v2069_v33 = vunpack.c.h.bf16 %v2123_v26 }
 0x303   : > { %v1395_v35 = vadd.f32 %v2183_v32, %v2864_v50  ;;  %v1499_v36 = vpack.c.bf16 %v1486_v31, %v1485_v30  ;;  %v2068_v31 = vunpack.c.l.bf16 %v2123_v26 }
 0x304   : > { %v2185_v37 = vpop.f32.mrf.mxu1 }
 0x305   : > { %1439 = vst [vmem:[%s2659_s17 + $0x30] sm:$0xff] %v1395_v35  ;;  %v2186_v39 = vadd.f32 %v2185_v37, %v2184_v34  ;;  %2279 = vmatprep.mubr.bf16.mxu0 %v1499_v36  ;;  %v1487_v44 = vmul.f32 %v2052_v38, %v1395_v35 }
 0x306   : > { %v2187_v41 = vpop.f32.mrf.mxu1 }
 0x307   : > { %v1398_v42 = vadd.f32 %v2186_v39, %v2864_v50 }
 0x308   : > { %v2188_v43 = vpop.f32.mrf.mxu1 }
 0x309   : > { %1440 = vst [vmem:[%s2659_s17 + $0x38] sm:$0xff] %v1398_v42  ;;  %v1488_v45 = vmul.f32 %v2053_v40, %v1398_v42  ;;  %v2189_v46 = vadd.f32 %v2188_v43, %v2187_v41 }
 0x30a   : > { %v2190_v59 = vpop.f32.mrf.mxu1 }
 0x30b   : > { %v1403_v60 = vadd.f32 %v2189_v46, %v2864_v50  ;;  %v1500_v19 = vpack.c.bf16 %v1488_v45, %v1487_v44 }
 0x30c   : > { %v2191_v48 = vpop.f32.mrf.mxu1 }
 0x30d   : > { %1441 = vst [vmem:[%s2659_s17 + $0x40] sm:$0xff] %v1403_v60  ;;  %v2192_v51 = vadd.f32 %v2191_v48, %v2190_v59  ;;  %2280 = vmatmul.mubr.bf16.gmra.mxu0 %v1500_v19  ;;  %v1489_v56 = vmul.f32 %v2056_v49, %v1403_v60 }
 0x30e   : > { %v2193_v53 = vpop.f32.mrf.mxu1 }
 0x30f   : > { %v1406_v54 = vadd.f32 %v2192_v51, %v2864_v50 }
 0x310   : > { %v2194_v55 = vpop.f32.mrf.mxu1 }
 0x311   : > { %1442 = vst [vmem:[%s2659_s17 + $0x48] sm:$0xff] %v1406_v54  ;;  %v1490_v57 = vmul.f32 %v2057_v52, %v1406_v54  ;;  %v2195_v58 = vadd.f32 %v2194_v55, %v2193_v53 }
 0x312   : > { %v2196_v62 = vpop.f32.mrf.mxu1 }
 0x313   : > { %v1411_v63 = vadd.f32 %v2195_v58, %v2864_v50  ;;  %v1501_v0 = vpack.c.bf16 %v1490_v57, %v1489_v56 }
 0x314   : > { %v2197_v1 = vpop.f32.mrf.mxu1 }
 0x315   : > { %1443 = vst [vmem:[%s2659_s17 + $0x50] sm:$0xff] %v1411_v63  ;;  %v2198_v3 = vadd.f32 %v2197_v1, %v2196_v62  ;;  %2283 = vmatprep.mubr.bf16.mxu1 %v1501_v0  ;;  %v1491_v8 = vmul.f32 %v2060_v2, %v1411_v63 }
 0x316   : > { %v2199_v5 = vpop.f32.mrf.mxu1 }
 0x317   : > { %v1414_v6 = vadd.f32 %v2198_v3, %v2864_v50 }
 0x318   : > { %v2200_v7 = vpop.f32.mrf.mxu1 }
 0x319   : > { %1444 = vst [vmem:[%s2659_s17 + $0x58] sm:$0xff] %v1414_v6  ;;  %v1492_v9 = vmul.f32 %v2061_v4, %v1414_v6  ;;  %v2201_v10 = vadd.f32 %v2200_v7, %v2199_v5 }
 0x31a   : > { %v2202_v12 = vpop.f32.mrf.mxu1 }
 0x31b   : > { %v1502_v13 = vpack.c.bf16 %v1492_v9, %v1491_v8  ;;  %v1419_v14 = vadd.f32 %v2201_v10, %v2864_v50 }
 0x31c   : > { %v2203_v15 = vpop.f32.mrf.mxu1 }
 0x31d   : > { %1445 = vst [vmem:[%s2659_s17 + $0x60] sm:$0xff] %v1419_v14  ;;  %v2204_v17 = vadd.f32 %v2203_v15, %v2202_v12  ;;  %2284 = vmatmul.mubr.bf16.vlgmr.msra.gmra.mxu1 %v1502_v13  ;;  %v1493_v23 = vmul.f32 %v2064_v16, %v1419_v14 }
 0x31e   : > { %v2205_v20 = vpop.f32.mrf.mxu1 }
 0x31f   : > { %v1422_v21 = vadd.f32 %v2204_v17, %v2864_v50 }
 0x320   : > { %v2206_v22 = vpop.f32.mrf.mxu1 }
 0x321   : > { %1446 = vst [vmem:[%s2659_s17 + $0x68] sm:$0xff] %v1422_v21  ;;  %v1494_v24 = vmul.f32 %v2065_v18, %v1422_v21  ;;  %v2207_v25 = vadd.f32 %v2206_v22, %v2205_v20 }
 0x322   : > { %v2208_v27 = vpop.f32.mrf.mxu1 }
 0x323   : > { %v1427_v28 = vadd.f32 %v2207_v25, %v2864_v50  ;;  %v1503_v29 = vpack.c.bf16 %v1494_v24, %v1493_v23 }
 0x324   : > { %v2209_v30 = vpop.f32.mrf.mxu1 }
 0x325   : > { %1447 = vst [vmem:[%s2659_s17 + $0x70] sm:$0xff] %v1427_v28  ;;  %v2210_v32 = vadd.f32 %v2209_v30, %v2208_v27  ;;  %2287 = vmatprep.mubr.bf16.mxu1 %v1503_v29  ;;  %v1495_v35 = vmul.f32 %v2068_v31, %v1427_v28 }
 0x327   : > { %v1430_v34 = vadd.f32 %v2210_v32, %v2864_v50 }
 0x329   : > { %1448 = vst [vmem:[%s2659_s17 + $0x78] sm:$0xff] %v1430_v34  ;;  %v1496_v36 = vmul.f32 %v2069_v33, %v1430_v34 }
 0x32b   : > { %v1504_v37 = vpack.c.bf16 %v1496_v36, %v1495_v35 }
 0x32d   : > { %2288 = vmatmul.mubr.bf16.gmra.mxu1 %v1504_v37 }
 0x3bd   : > { %v2277_v38 = vpop.f32.mrf.mxu0 }
 0x3bf   : > { %v1603_v39 = vpop.f32.mrf.mxu0 }
 0x3c1   : > { %v2278_v40 = vpop.f32.mrf.mxu0 }
 0x3c2   : > { %v2078_v41 = vpack.c.bf16 %v2278_v40, %v2277_v38 }
 0x3c3   : > { %v1606_v42 = vpop.f32.mrf.mxu0 }
 0x3c4   : > { %2124 = vst [vmem:[%s2664_s30 + $0x8] sm:$0xff] %v2078_v41   ;;  %v2073_v43 = vpack.c.bf16 %v1606_v42, %v1603_v39 }
 0x3c6   : > { %2074 = vst [vmem:[%s2664_s30] sm:$0xff] %v2073_v43  }
 0x3cd   : > { %v2281_v44 = vpop.f32.mrf.mxu0 }
 0x3cf   : > { %v1619_v45 = vpop.f32.mrf.mxu0 }
 0x3d1   : > { %v2282_v50 = vpop.f32.mrf.mxu0 }
 0x3d2   : > { %v2088_v46 = vpack.c.bf16 %v2282_v50, %v2281_v44 }
 0x3d3   : > { %v1622_v47 = vpop.f32.mrf.mxu0 }
 0x3d4   : > { %2126 = vst [vmem:[%s2664_s30 + $0x18] sm:$0xff] %v2088_v46   ;;  %v2083_v59 = vpack.c.bf16 %v1622_v47, %v1619_v45 }
 0x3d6   : > { %2125 = vst [vmem:[%s2664_s30 + $0x10] sm:$0xff] %v2083_v59  }
 0x3dd   : > { %v2285_v60 = vpop.f32.mrf.mxu1 }
 0x3df   : > { %v1635_v19 = vpop.f32.mrf.mxu1 }
 0x3e1   : > { %v2286_v48 = vpop.f32.mrf.mxu1 }
 0x3e2   : > { %v2098_v49 = vpack.c.bf16 %v2286_v48, %v2285_v60 }
 0x3e3   : > { %v1638_v51 = vpop.f32.mrf.mxu1 }
 0x3e4   : > { %2128 = vst [vmem:[%s2664_s30 + $0x28] sm:$0xff] %v2098_v49   ;;  %v2093_v52 = vpack.c.bf16 %v1638_v51, %v1635_v19 }
 0x3e6   : > { %2127 = vst [vmem:[%s2664_s30 + $0x20] sm:$0xff] %v2093_v52  }
 0x3ed   : > { %v2289_v53 = vpop.f32.mrf.mxu1 }
 0x3ef   : > { %v1651_v54 = vpop.f32.mrf.mxu1 }
 0x3f1   : > { %v2290_v55 = vpop.f32.mrf.mxu1 }
 0x3f2   : > { %v2108_v56 = vpack.c.bf16 %v2290_v55, %v2289_v53 }
 0x3f3   : > { %v1654_v57 = vpop.f32.mrf.mxu1 }
 0x3f4   : > { %2130 = vst [vmem:[%s2664_s30 + $0x38] sm:$0xff] %v2108_v56   ;;  %v2103_v58 = vpack.c.bf16 %v1654_v57, %v1651_v54 }
 0x3f6   : > { %2129 = vst [vmem:[%s2664_s30 + $0x30] sm:$0xff] %v2103_v58  }
 0x3f7 PF: > { %s21_s19 = sadd.s32 1, %s2499_s19   ;;  %s2956_s15 = sld [smem:[#allocation4_spill]] }
 0x3f8   : > { %p18_p0 = scmp.ge.s32.totalorder %s21_s19, 6   ;;  %s2957_s16 = sld [smem:[#allocation5_spill]] }
 0x3f9   : > { %s2958_s17 = sld [smem:[#allocation6_spill]]  ;;  %s2960_s13 = smov %s2479_s14 }
 0x3fa   : > { %s2959_s18 = sld [smem:[#allocation7_spill]]  ;;  %s2961_s14 = smov %s2609_s26 }
 0x3fb   :  { %20 = sbr.rel (!%p18_p0) target bundleno = 6 (0x6), region = 161 }

// kernel: moama_forward.5
= control target key start
LH: loop header
LB: loop body
LE: loop exit
PB: predicated region body
PF: predicated region fallthrough
CT: control target
= control target key end

     0   :  { %s2208_s0 = inlined_call_operand.vmem [shape: bf16[256,256], index: 0, kind: input, shape index: {}]   ;;  %s2209_s1 = inlined_call_operand.vmem [shape: bf16[256,128], index: 1, kind: input, shape index: {}]   ;;  %s2210_s2 = inlined_call_operand.vmem [shape: bf16[256,128], index: 2, kind: input, shape index: {}]   ;;  %s2211_s3 = inlined_call_operand.vmem [shape: bf16[128,256], index: 3, kind: input, shape index: {}]   ;;  %s2212_s4 = inlined_call_operand.vmem [shape: f32[1,256], index: 4, kind: input, shape index: {}]   ;;  %s2213_s5 = inlined_call_operand.vmem [shape: bf16[256,128], index: 5, kind: input, shape index: {}]   ;;  %s2214_s6 = inlined_call_operand.vmem [shape: f32[1,128], index: 6, kind: input, shape index: {}]   ;;  %s2215_s7 = inlined_call_operand.vmem [shape: f32[256,128], index: 7, kind: output, shape index: {}]  }
   0x1   :  { %2216 = sst [smem:[#allocation4_spill]] %s2208_s0 }
   0x2   :  { %s1881_s24 = smov 0   ;;  %s1883_s25 = smov 0  }
   0x3   :  { %s1885_s26 = smov 0   ;;  %s1887_s27 = smov 0  }
   0x4   :  { %s1889_s28 = smov 0   ;;  %s1891_s29 = smov 0  }
   0x5   :  { %s1893_s30 = smov 0  }
   0x6 LB: > { %s26_s8 = sadd.s32 1, %s1829_s28  ;;  %s29_s9 = sadd.s32 1, %s1833_s29  ;;  %s1837_s30 = sphi %s1893_s30, %s17_s30   ;;  %s1833_s29 = sphi %s1891_s29, %s2223_s29   ;;  %s1829_s28 = sphi %s1889_s28, %s2222_s28   ;;  %s1825_s27 = sphi %s1887_s27, %s2221_s27   ;;  %s1821_s26 = sphi %s1885_s26, %s2220_s26   ;;  %s1817_s25 = sphi %s1883_s25, %s2219_s25   ;;  %s1813_s24 = sphi %s1881_s24, %s2218_s24  }
   0x7   : > { %p27_p0 = scmp.ge.s32.totalorder %s26_s8, 2  ;;  %p45_p1 = scmp.ne.s32.totalorder %s1817_s25, %s1813_s24 }
   0x8   : > { %p46_p2 = scmp.eq.s32.totalorder %s1837_s30, 0  ;;  %s38_s13 = sadd.s32 1, %s1817_s25 }
   0x9   : > { %s2225_s8 = smov (%p27_p0, %s26_s8), 0  ;;  %s2227_s9 = smov (!%p27_p0, %s29_s9), %s1833_s29 }
   0xa   : > { %p47_p3 = por %p46_p2, %p45_p1  ;;  %p31_p4 = scmp.ge.s32.totalorder %s2227_s9, 2 }
   0xb   : > { %s34_s10 = ssub.s32 %s1829_s28, %s2225_s8  ;;  %p1435_p6 = scmp.ge.s32.totalorder %s1837_s30, 4 }
   0xc   : > { %s2229_s9 = smov (%p31_p4, %s2227_s9), 0 }
   0xd   : > { %s33_s11 = ssub.s32 %s1833_s29, %s2229_s9  ;;  %245 = sbr.rel (%p1435_p6) target bundleno = 38 (0x26), region = 32 }
   0xe   : > { %s35_s12 = sor.u32 %s34_s10, %s33_s11 }
   0xf   : > { %p36_p5 = scmp.eq.s32.totalorder %s35_s12, 0 }
  0x11   : > { %s1932_s14 = scalar_select %p36_p5, %s1817_s25, %s38_s13  }
  0x12   : > { %248 = sbr.rel (!%p47_p3) target bundleno = 38 (0x26), region = 36  ;;  %s250_s15 = sand.u32 (%p47_p3), 1, %s1817_s25  }
  0x13   : > { %s1501_s16 = sshll.u32 (%p47_p3), %s1833_s29, 5  ;;  %s1436_s17 = sshll.u32 (%p47_p3), %s250_s15, 6 }
  0x14   : > { %s255_s18 = sadd.s32 (%p47_p3), %s1829_s28, %s1501_s16  ;;  %s2217_s0 = sld [smem:[#allocation4_spill]] (%p47_p3) }
  0x15   : > { %s1439_s19 = sshll.u32 (%p47_p3), %s255_s18, 2  ;;  %s252_s23 = scalar_lea.vmem (%p47_p3), [#allocation3], %s1436_s17 }
  0x1a   : > { %s1941_s22 = scalar_lea.vmem %s2217_s0, %s1439_s19 }
  0x1b   : > { %v274_v0 = vld [vmem:[%s1941_s22] sm:$0xf]  ;;  %v276_v1 = vld [vmem:[%s1941_s22 + $0x8] sm:$0xf]  ;;  %v278_v2 = vld [vmem:[%s1941_s22 + $0x10] sm:$0xf] }
  0x1c   : > { %275 = vst [vmem:[%s252_s23] sm:$0xf] %v274_v0  ;;  %277 = vst [vmem:[%s252_s23 + $0x4] sm:$0xf] %v276_v1  ;;  %v280_v3 = vld [vmem:[%s1941_s22 + $0x18] sm:$0xf] }
  0x1d   : > { %279 = vst [vmem:[%s252_s23 + $0x8] sm:$0xf] %v278_v2  ;;  %v282_v4 = vld [vmem:[%s1941_s22 + $0x20] sm:$0xf]  ;;  %v284_v5 = vld [vmem:[%s1941_s22 + $0x28] sm:$0xf] }
  0x1e   : > { %281 = vst [vmem:[%s252_s23 + $0xc] sm:$0xf] %v280_v3  ;;  %283 = vst [vmem:[%s252_s23 + $0x10] sm:$0xf] %v282_v4  ;;  %v286_v6 = vld [vmem:[%s1941_s22 + $0x30] sm:$0xf] }
  0x1f   : > { %285 = vst [vmem:[%s252_s23 + $0x14] sm:$0xf] %v284_v5  ;;  %v288_v7 = vld [vmem:[%s1941_s22 + $0x38] sm:$0xf]  ;;  %v290_v8 = vld [vmem:[%s1941_s22 + $0x40] sm:$0xf] }
  0x20   : > { %287 = vst [vmem:[%s252_s23 + $0x18] sm:$0xf] %v286_v6  ;;  %289 = vst [vmem:[%s252_s23 + $0x1c] sm:$0xf] %v288_v7  ;;  %v292_v9 = vld [vmem:[%s1941_s22 + $0x48] sm:$0xf] }
  0x21   : > { %291 = vst [vmem:[%s252_s23 + $0x20] sm:$0xf] %v290_v8  ;;  %v294_v10 = vld [vmem:[%s1941_s22 + $0x50] sm:$0xf]  ;;  %v296_v11 = vld [vmem:[%s1941_s22 + $0x58] sm:$0xf] }
  0x22   : > { %293 = vst [vmem:[%s252_s23 + $0x24] sm:$0xf] %v292_v9  ;;  %295 = vst [vmem:[%s252_s23 + $0x28] sm:$0xf] %v294_v10  ;;  %v298_v12 = vld [vmem:[%s1941_s22 + $0x60] sm:$0xf] }
  0x23   : > { %297 = vst [vmem:[%s252_s23 + $0x2c] sm:$0xf] %v296_v11  ;;  %v300_v13 = vld [vmem:[%s1941_s22 + $0x68] sm:$0xf]  ;;  %v302_v14 = vld [vmem:[%s1941_s22 + $0x70] sm:$0xf] }
  0x24   : > { %299 = vst [vmem:[%s252_s23 + $0x30] sm:$0xf] %v298_v12  ;;  %301 = vst [vmem:[%s252_s23 + $0x34] sm:$0xf] %v300_v13  ;;  %v304_v15 = vld [vmem:[%s1941_s22 + $0x78] sm:$0xf] }
  0x25   : > { %303 = vst [vmem:[%s252_s23 + $0x38] sm:$0xf] %v302_v14  ;;  %305 = vst [vmem:[%s252_s23 + $0x3c] sm:$0xf] %v304_v15 }
  0x26 PF: > { %p1440_p7 = scmp.ge.s32.totalorder %s1837_s30, 1  ;;  %p378_p8 = scmp.lt.s32.totalorder %s1837_s30, 5 }
  0x28   : > { %p379_p9 = pnand %p1440_p7, %p378_p8 }
  0x29   : > { %s385_s10 = sand.u32 (!%p379_p9), 1, %s1813_s24   ;;  %s1442_s11 = sshll.u32 (!%p379_p9), %s1821_s26, 4 }
  0x2a   : > { %382 = sbr.rel (%p379_p9) target bundleno = 807 (0x327), region = 85  ;;  %s1441_s12 = sshll.u32 (!%p379_p9), %s385_s10, 6 }
  0x2b   : > { %p428_p10 = scmp.lt.s32.totalorder (!%p379_p9), %s1442_s11, 31  ;;  %s1444_s13 = sshll.u32 (!%p379_p9), %s1825_s27, 4 }
  0x2c   : > { %p434_p11 = scmp.lt.s32.totalorder (!%p379_p9), %s1444_s13, 31  ;;  %s1979_s0 = scalar_lea.vmem (!%p379_p9), [#allocation3], %s1441_s12 }
  0x2d   : > { %p1448_p12 = scmp.ne.s32.totalorder (!%p379_p9), %s1821_s26, 0 }
  0x2f   : > { %s2231_s11 = smov (!%p428_p10, %s1442_s11), 31  ;;  %s2233_s13 = smov (!%p434_p11, %s1444_s13), 31 }
  0x30   : > { %s1443_s15 = sshll.u32 %s2231_s11, 2  ;;  %s1445_s19 = sshll.u32 %s2233_s13, 2 }
  0x31   : > { %s1967_s18 = scalar_lea.vmem %s2209_s1, %s1443_s15  ;;  %s1447_s20 = sshll.u32 %s2233_s13, 3 }
  0x32   : > { %s1972_s23 = scalar_lea.vmem %s2210_s2, %s1445_s19  ;;  %s1977_s27 = scalar_lea.vmem %s2215_s7, %s1447_s20 }
  0x33   : > { %449 = sbr.rel (%p1448_p12) target bundleno = 65 (0x41), region = 93 }
  0x38   : > { %v1839_v16 = vmov 0.0  }
  0x39   : > { %450 = vst [vmem:[#allocation2 + $0x30] sm:$0xff] %v1839_v16  ;;  %451 = vst [vmem:[#allocation2] sm:$0xff] %v1839_v16 }
  0x3a   : > { %452 = vst [vmem:[#allocation2 + $0x58] sm:$0xff] %v1839_v16  ;;  %453 = vst [vmem:[#allocation2 + $0x18] sm:$0xff] %v1839_v16 }
  0x3b   : > { %454 = vst [vmem:[#allocation2 + $0x50] sm:$0xff] %v1839_v16  ;;  %455 = vst [vmem:[#allocation2 + $0x68] sm:$0xff] %v1839_v16 }
  0x3c   : > { %456 = vst [vmem:[#allocation2 + $0x8] sm:$0xff] %v1839_v16  ;;  %457 = vst [vmem:[#allocation2 + $0x48] sm:$0xff] %v1839_v16 }
  0x3d   : > { %458 = vst [vmem:[#allocation2 + $0x40] sm:$0xff] %v1839_v16  ;;  %459 = vst [vmem:[#allocation2 + $0x20] sm:$0xff] %v1839_v16 }
  0x3e   : > { %460 = vst [vmem:[#allocation2 + $0x10] sm:$0xff] %v1839_v16  ;;  %461 = vst [vmem:[#allocation2 + $0x38] sm:$0xff] %v1839_v16 }
  0x3f   : > { %462 = vst [vmem:[#allocation2 + $0x60] sm:$0xff] %v1839_v16  ;;  %463 = vst [vmem:[#allocation2 + $0x70] sm:$0xff] %v1839_v16 }
  0x40   : > { %464 = vst [vmem:[#allocation2 + $0x78] sm:$0xff] %v1839_v16  ;;  %465 = vst [vmem:[#allocation2 + $0x28] sm:$0xff] %v1839_v16 }
  0x41 PF: > { %v1727_v17 = vld [vmem:[%s1967_s18 + $0x38] sm:$0xff]   ;;  %v1728_v18 = vld [vmem:[%s1967_s18 + $0x30] sm:$0xff]   ;;  %v1729_v19 = vld [vmem:[%s1967_s18 + $0x28] sm:$0xff]   ;;  %p1465_p13 = scmp.ne.s32.totalorder %s1821_s26, 1 }
  0x42   : > { %1621 = vmatprep.subr.bf16.mxu0 %v1727_v17  ;;  %1653 = vmatprep.subr.bf16.mxu1 %v1727_v17  ;;  %v1730_v20 = vld [vmem:[%s1967_s18 + $0x20] sm:$0xff]   ;;  %v1731_v23 = vld [vmem:[%s1967_s18 + $0x18] sm:$0xff]   ;;  %v1732_v24 = vld [vmem:[%s1967_s18 + $0x10] sm:$0xff]  }
  0x43   : > { %1622 = vmatpush3.bf16.msra.mxu0 %v1727_v17  ;;  %1661 = vmatpush3.bf16.msra.mxu1 %v1727_v17  ;;  %v1735_v21 = vld [vmem:[%s1979_s0] sm:$0xff]   ;;  %v1733_v25 = vld [vmem:[%s1967_s18 + $0x8] sm:$0xff]   ;;  %v1739_v29 = vld [vmem:[%s1979_s0 + $0x10] sm:$0xff]  }
  0x44   : > { %1623 = vmatprep.subr.bf16.mxu0 %v1728_v18  ;;  %1654 = vmatprep.subr.bf16.mxu1 %v1728_v18  ;;  %v1736_v22 = vld [vmem:[%s1979_s0 + $0x20] sm:$0xff]   ;;  %v1737_v27 = vld [vmem:[%s1979_s0 + $0x8] sm:$0xff]   ;;  %v1740_v30 = vld [vmem:[%s1979_s0 + $0x30] sm:$0xff]  }
  0x45   : > { %1637 = vmatprep.mubr.bf16.mxu0 %v1735_v21  ;;  %1645 = vmatprep.mubr.bf16.mxu1 %v1736_v22  ;;  %v1734_v26 = vld [vmem:[%s1967_s18] sm:$0xff]   ;;  %v1738_v28 = vld [vmem:[%s1979_s0 + $0x28] sm:$0xff]   ;;  %v1741_v31 = vld [vmem:[%s1979_s0 + $0x18] sm:$0xff]  }
  0x46   : > { %v1742_v32 = vld [vmem:[%s1979_s0 + $0x38] sm:$0xff]   ;;  %v476_v34 = vld [vmem:[#allocation2 + $0x10] sm:$0xff]  ;;  %v474_v38 = vld [vmem:[#allocation2 + $0x40] sm:$0xff] }
  0x47   : > { %1624 = vmatpush3.bf16.msra.mxu0 %v1728_v18  ;;  %1662 = vmatpush3.bf16.msra.mxu1 %v1728_v18  ;;  %v468_v33 = vld [vmem:[#allocation2 + $0x58] sm:$0xff]  ;;  %v466_v37 = vld [vmem:[#allocation2 + $0x30] sm:$0xff]  ;;  %v467_v49 = vld [vmem:[#allocation2] sm:$0xff] }
  0x48   : > { %1625 = vmatprep.subr.bf16.mxu0 %v1729_v19  ;;  %1655 = vmatprep.subr.bf16.mxu1 %v1729_v19  ;;  %v469_v43 = vld [vmem:[#allocation2 + $0x18] sm:$0xff]  ;;  %v475_v50 = vld [vmem:[#allocation2 + $0x20] sm:$0xff]  ;;  %v472_v55 = vld [vmem:[#allocation2 + $0x8] sm:$0xff] }
  0x49   : > { %v477_v44 = vld [vmem:[#allocation2 + $0x38] sm:$0xff]  ;;  %v470_v61 = vld [vmem:[#allocation2 + $0x50] sm:$0xff]  ;;  %v478_v62 = vld [vmem:[#allocation2 + $0x60] sm:$0xff] }
  0x4a   : > { %v480_v56 = vld [vmem:[#allocation2 + $0x78] sm:$0xff]  ;;  %v473_v3 = vld [vmem:[#allocation2 + $0x48] sm:$0xff]  ;;  %v479_v10 = vld [vmem:[#allocation2 + $0x70] sm:$0xff] }
  0x4b   : > { %1626 = vmatpush3.bf16.msra.mxu0 %v1729_v19  ;;  %1663 = vmatpush3.bf16.msra.mxu1 %v1729_v19  ;;  %v481_v4 = vld [vmem:[#allocation2 + $0x28] sm:$0xff] }
  0x4c   : > { %1627 = vmatprep.subr.bf16.mxu0 %v1730_v20  ;;  %1656 = vmatprep.subr.bf16.mxu1 %v1730_v20  ;;  %v471_v9 = vld [vmem:[#allocation2 + $0x68] sm:$0xff] }
  0x4f   : > { %1628 = vmatpush3.bf16.msra.mxu0 %v1730_v20  ;;  %1664 = vmatpush3.bf16.msra.mxu1 %v1730_v20 }
  0x50   : > { %1629 = vmatprep.subr.bf16.mxu0 %v1731_v23  ;;  %1657 = vmatprep.subr.bf16.mxu1 %v1731_v23 }
  0x53   : > { %1630 = vmatpush3.bf16.msra.mxu0 %v1731_v23  ;;  %1665 = vmatpush3.bf16.msra.mxu1 %v1731_v23 }
  0x54   : > { %1631 = vmatprep.subr.bf16.mxu0 %v1732_v24  ;;  %1658 = vmatprep.subr.bf16.mxu1 %v1732_v24 }
  0x57   : > { %1632 = vmatpush3.bf16.msra.mxu0 %v1732_v24  ;;  %1666 = vmatpush3.bf16.msra.mxu1 %v1732_v24 }
  0x58   : > { %1633 = vmatprep.subr.bf16.mxu0 %v1733_v25  ;;  %1659 = vmatprep.subr.bf16.mxu1 %v1733_v25 }
  0x5b   : > { %1634 = vmatpush3.bf16.msra.mxu0 %v1733_v25  ;;  %1667 = vmatpush3.bf16.msra.mxu1 %v1733_v25 }
  0x5c   : > { %1635 = vmatprep.subr.bf16.mxu0 %v1734_v26  ;;  %1660 = vmatprep.subr.bf16.mxu1 %v1734_v26 }
  0x5f   : > { %1636 = vmatpush3.bf16.msra.mxu0 %v1734_v26  ;;  %1668 = vmatpush3.bf16.msra.mxu1 %v1734_v26 }
  0x62   : > { %1638 = vmatmul.mubr.bf16.vlgmr.msra.gmra.mxu0 %v1737_v27  ;;  %1646 = vmatmul.mubr.bf16.vlgmr.msra.gmra.mxu1 %v1738_v28 }
  0x63   : > { %1641 = vmatprep.mubr.bf16.mxu0 %v1739_v29  ;;  %1649 = vmatprep.mubr.bf16.mxu1 %v1740_v30 }
  0x6a   : > { %1642 = vmatmul.mubr.bf16.gmra.mxu0 %v1741_v31  ;;  %1650 = vmatmul.mubr.bf16.gmra.mxu1 %v1742_v32 }
 0x122   : > { %v1639_v35 = vpop.f32.mrf.mxu0  ;;  %v1647_v36 = vpop.f32.mrf.mxu1 }
 0x123   : > { %v709_v39 = vadd.f32 %v1639_v35, %v468_v33  ;;  %v717_v40 = vadd.f32 %v1647_v36, %v476_v34 }
 0x124   : > { %v644_v41 = vpop.f32.mrf.mxu0  ;;  %v676_v42 = vpop.f32.mrf.mxu1 }
 0x125   : > { %725 = vst [vmem:[#allocation2 + $0x58] sm:$0xff] %v709_v39  ;;  %733 = vst [vmem:[#allocation2 + $0x10] sm:$0xff] %v717_v40  ;;  %v707_v45 = vadd.f32 %v644_v41, %v466_v37  ;;  %v715_v46 = vadd.f32 %v676_v42, %v474_v38 }
 0x126   : > { %v1640_v47 = vpop.f32.mrf.mxu0  ;;  %v1648_v48 = vpop.f32.mrf.mxu1 }
 0x127   : > { %723 = vst [vmem:[#allocation2 + $0x30] sm:$0xff] %v707_v45  ;;  %731 = vst [vmem:[#allocation2 + $0x40] sm:$0xff] %v715_v46  ;;  %v710_v51 = vadd.f32 %v1640_v47, %v469_v43  ;;  %v718_v52 = vadd.f32 %v1648_v48, %v477_v44 }
 0x128   : > { %v647_v53 = vpop.f32.mrf.mxu0  ;;  %v679_v54 = vpop.f32.mrf.mxu1 }
 0x129   : > { %726 = vst [vmem:[#allocation2 + $0x18] sm:$0xff] %v710_v51  ;;  %734 = vst [vmem:[#allocation2 + $0x38] sm:$0xff] %v718_v52  ;;  %v708_v57 = vadd.f32 %v647_v53, %v467_v49  ;;  %v716_v58 = vadd.f32 %v679_v54, %v475_v50 }
 0x12a   : > { %v1643_v59 = vpop.f32.mrf.mxu0  ;;  %v1651_v60 = vpop.f32.mrf.mxu1 }
 0x12b   : > { %724 = vst [vmem:[#allocation2] sm:$0xff] %v708_v57  ;;  %732 = vst [vmem:[#allocation2 + $0x20] sm:$0xff] %v716_v58  ;;  %v713_v63 = vadd.f32 %v1643_v59, %v472_v55  ;;  %v721_v0 = vadd.f32 %v1651_v60, %v480_v56 }
 0x12c   : > { %v660_v1 = vpop.f32.mrf.mxu0  ;;  %v692_v2 = vpop.f32.mrf.mxu1 }
 0x12d   : > { %729 = vst [vmem:[#allocation2 + $0x8] sm:$0xff] %v713_v63  ;;  %737 = vst [vmem:[#allocation2 + $0x78] sm:$0xff] %v721_v0  ;;  %v711_v5 = vadd.f32 %v660_v1, %v470_v61  ;;  %v719_v6 = vadd.f32 %v692_v2, %v478_v62 }
 0x12e   : > { %v1644_v7 = vpop.f32.mrf.mxu0  ;;  %v1652_v8 = vpop.f32.mrf.mxu1 }
 0x12f   : > { %727 = vst [vmem:[#allocation2 + $0x50] sm:$0xff] %v711_v5  ;;  %735 = vst [vmem:[#allocation2 + $0x60] sm:$0xff] %v719_v6  ;;  %v714_v11 = vadd.f32 %v1644_v7, %v473_v3  ;;  %v722_v12 = vadd.f32 %v1652_v8, %v481_v4  ;;  %742 = sbr.rel (%p1465_p13) target bundleno = 807 (0x327), region = 97 }
 0x130   : > { %v663_v13 = vpop.f32.mrf.mxu0  ;;  %v695_v14 = vpop.f32.mrf.mxu1 }
 0x131   : > { %730 = vst [vmem:[#allocation2 + $0x48] sm:$0xff] %v714_v11  ;;  %738 = vst [vmem:[#allocation2 + $0x28] sm:$0xff] %v722_v12  ;;  %v712_v15 = vadd.f32 %v663_v13, %v471_v9  ;;  %v720_v16 = vadd.f32 %v695_v14, %v479_v10 }
 0x133   : > { %728 = vst [vmem:[#allocation2 + $0x68] sm:$0xff] %v712_v15  ;;  %736 = vst [vmem:[#allocation2 + $0x70] sm:$0xff] %v720_v16 }
 0x134   : > { %v1743_v17 = vld [vmem:[%s2211_s3 + $0x74] ss:$8 sps:$4 sm:$0xff]   ;;  %v1745_v18 = vld [vmem:[%s2211_s3 + $0x70] ss:$8 sps:$4 sm:$0xff]   ;;  %v1840_v19 = vmov 0   ;;  %v1503_v31 = vld [vmem:[%s1972_s23] sm:$0xff]  }
 0x135   : > { %955 = vmatprep.mubr.bf16.mxu0 %v1840_v19  ;;  %923 = vmatprep.subr.bf16.mxu0 %v1743_v17  ;;  %v1746_v20 = vld [vmem:[%s2211_s3 + $0x64] ss:$8 sps:$4 sm:$0xff]   ;;  %v1748_v21 = vld [vmem:[%s2211_s3 + $0x60] ss:$8 sps:$4 sm:$0xff]   ;;  %v1749_v22 = vld [vmem:[%s2211_s3 + $0x54] ss:$8 sps:$4 sm:$0xff]   ;;  %v1504_v38 = vunpack.c.l.bf16 %v1503_v31  ;;  %v1505_v39 = vunpack.c.h.bf16 %v1503_v31 }
 0x136   : > { %924 = vmatpush1.bf16.msra.mxu0 %v1745_v18  ;;  %v1751_v23 = vld [vmem:[%s2211_s3 + $0x50] ss:$8 sps:$4 sm:$0xff]   ;;  %v1752_v24 = vld [vmem:[%s2211_s3 + $0x44] ss:$8 sps:$4 sm:$0xff]   ;;  %v1754_v25 = vld [vmem:[%s2211_s3 + $0x40] ss:$8 sps:$4 sm:$0xff]  }
 0x137   : > { %925 = vmatprep.subr.bf16.mxu0 %v1746_v20  ;;  %v1755_v26 = vld [vmem:[%s2211_s3 + $0x34] ss:$8 sps:$4 sm:$0xff]   ;;  %v1757_v27 = vld [vmem:[%s2211_s3 + $0x30] ss:$8 sps:$4 sm:$0xff]   ;;  %v1758_v28 = vld [vmem:[%s2211_s3 + $0x24] ss:$8 sps:$4 sm:$0xff]  }
 0x138   : > { %v1760_v29 = vld [vmem:[%s2211_s3 + $0x20] ss:$8 sps:$4 sm:$0xff]   ;;  %v1761_v30 = vld [vmem:[%s2211_s3 + $0x14] ss:$8 sps:$4 sm:$0xff]   ;;  %v1763_v34 = vld [vmem:[%s2211_s3 + $0x10] ss:$8 sps:$4 sm:$0xff]  }
 0x139   : > { %v1767_v32 = vld [vmem:[%s2213_s5 + $0x78] sm:$0xff]   ;;  %v743_v35 = vld [vmem:[#allocation2 + $0x30] sm:$0xff]  ;;  %v744_v36 = vld [vmem:[#allocation2] sm:$0xff] }
 0x13a   : > { %926 = vmatpush1.bf16.msra.mxu0 %v1748_v21  ;;  %v1768_v33 = vld [vmem:[%s2213_s5 + $0x38] sm:$0xff]   ;;  %1557 = vmatprep.subr.bf16.mxu1 %v1767_v32  ;;  %v1769_v37 = vld [vmem:[%s2213_s5 + $0x70] sm:$0xff]   ;;  %v1771_v41 = vld [vmem:[%s2213_s5 + $0x68] sm:$0xff]   ;;  %v791_v45 = vadd.f32 %v1504_v38, %v743_v35  ;;  %v792_v46 = vadd.f32 %v1505_v39, %v744_v36 }
 0x13b   : > { %927 = vmatprep.subr.bf16.mxu0 %v1749_v22  ;;  %1558 = vmatpush3.bf16.msra.mxu1 %v1768_v33  ;;  %v1770_v40 = vld [vmem:[%s2213_s5 + $0x30] sm:$0xff]   ;;  %v1764_v42 = vld [vmem:[%s2211_s3 + $0x4] ss:$8 sps:$4 sm:$0xff]   ;;  %v1766_v43 = vld [vmem:[%s2211_s3] ss:$8 sps:$4 sm:$0xff]  }
 0x13c   : > { %1559 = vmatprep.subr.bf16.mxu1 %v1769_v37  ;;  %v1534_v44 = vld [vmem:[%s1972_s23 + $0x8] sm:$0xff]   ;;  %v1773_v48 = vld [vmem:[%s2213_s5 + $0x60] sm:$0xff]   ;;  %v745_v50 = vld [vmem:[#allocation2 + $0x58] sm:$0xff]  ;;  %v807_v53 = vpack.c.bf16 %v792_v46, %v791_v45 }
 0x13d   : > { %v1772_v47 = vld [vmem:[%s2213_s5 + $0x28] sm:$0xff]   ;;  %v1774_v49 = vld [vmem:[%s2213_s5 + $0x20] sm:$0xff]   ;;  %v746_v51 = vld [vmem:[#allocation2 + $0x18] sm:$0xff]  ;;  %v1508_v54 = vunpack.c.l.bf16 %v1534_v44  ;;  %v1509_v55 = vunpack.c.h.bf16 %v1534_v44 }
 0x13e   : > { %928 = vmatpush1.bf16.msra.mxu0 %v1751_v23  ;;  %v1775_v52 = vld [vmem:[%s2213_s5 + $0x58] sm:$0xff]   ;;  %v1535_v59 = vld [vmem:[%s1972_s23 + $0x10] sm:$0xff]   ;;  %v748_v0 = vld [vmem:[#allocation2 + $0x68] sm:$0xff] }
 0x13f   : > { %929 = vmatprep.subr.bf16.mxu0 %v1752_v24  ;;  %1560 = vmatpush3.bf16.msra.mxu1 %v1770_v40  ;;  %v793_v56 = vadd.f32 %v1508_v54, %v745_v50  ;;  %v794_v57 = vadd.f32 %v1509_v55, %v746_v51  ;;  %v1776_v58 = vld [vmem:[%s2213_s5 + $0x18] sm:$0xff]   ;;  %v1512_v61 = vunpack.c.l.bf16 %v1535_v59  ;;  %v1513_v62 = vunpack.c.h.bf16 %v1535_v59  ;;  %v747_v63 = vld [vmem:[#allocation2 + $0x50] sm:$0xff]  ;;  %v749_v7 = vld [vmem:[#allocation2 + $0x8] sm:$0xff] }
 0x140   : > { %1561 = vmatprep.subr.bf16.mxu1 %v1771_v41  ;;  %v1536_v3 = vld [vmem:[%s1972_s23 + $0x18] sm:$0xff]   ;;  %v750_v8 = vld [vmem:[#allocation2 + $0x48] sm:$0xff]  ;;  %v1537_v11 = vld [vmem:[%s1972_s23 + $0x20] sm:$0xff]   ;;  %v833_v50 = vlaneseq }
 0x141   : > { %v808_v60 = vpack.c.bf16 %v794_v57, %v793_v56  ;;  %v795_v1 = vadd.f32 %v1512_v61, %v747_v63  ;;  %v796_v2 = vadd.f32 %v1513_v62, %v748_v0  ;;  %v1516_v5 = vunpack.c.l.bf16 %v1536_v3  ;;  %v751_v15 = vld [vmem:[#allocation2 + $0x40] sm:$0xff]  ;;  %v1538_v20 = vld [vmem:[%s1972_s23 + $0x28] sm:$0xff]   ;;  %v753_v24 = vld [vmem:[#allocation2 + $0x10] sm:$0xff] }
 0x142   : > { %930 = vmatpush1.bf16.msra.mxu0 %v1754_v25  ;;  %v1517_v6 = vunpack.c.h.bf16 %v1536_v3  ;;  %v1520_v13 = vunpack.c.l.bf16 %v1537_v11  ;;  %v1521_v14 = vunpack.c.h.bf16 %v1537_v11  ;;  %v752_v16 = vld [vmem:[#allocation2 + $0x20] sm:$0xff]  ;;  %v1524_v22 = vunpack.c.l.bf16 %v1538_v20  ;;  %v754_v25 = vld [vmem:[#allocation2 + $0x38] sm:$0xff]  ;;  %v756_v33 = vld [vmem:[#allocation2 + $0x70] sm:$0xff] }
 0x143   : > { %931 = vmatprep.subr.bf16.mxu0 %v1755_v26  ;;  %1562 = vmatpush3.bf16.msra.mxu1 %v1772_v47  ;;  %v809_v4 = vpack.c.bf16 %v796_v2, %v795_v1  ;;  %v797_v9 = vadd.f32 %v1516_v5, %v749_v7  ;;  %v1525_v23 = vunpack.c.h.bf16 %v1538_v20  ;;  %v755_v32 = vld [vmem:[#allocation2 + $0x60] sm:$0xff]  ;;  %v1540_v36 = vld [vmem:[%s1972_s23 + $0x38] sm:$0xff]   ;;  %v758_v41 = vld [vmem:[#allocation2 + $0x28] sm:$0xff]  ;;  %v834_v51 = vshrl.u32 %v833_v50, 7 }
 0x144   : > { %1563 = vmatprep.subr.bf16.mxu1 %v1773_v48  ;;  %v798_v10 = vadd.f32 %v1517_v6, %v750_v8  ;;  %v799_v17 = vadd.f32 %v1520_v13, %v751_v15  ;;  %v800_v18 = vadd.f32 %v1521_v14, %v752_v16  ;;  %v801_v26 = vadd.f32 %v1524_v22, %v753_v24  ;;  %v757_v40 = vld [vmem:[#allocation2 + $0x78] sm:$0xff]  ;;  %v1777_v45 = vld [vmem:[%s2213_s5 + $0x50] sm:$0xff]   ;;  %v1779_v47 = vld [vmem:[%s2213_s5 + $0x48] sm:$0xff]  }
 0x145   : > { %v1532_v38 = vunpack.c.l.bf16 %v1540_v36  ;;  %v1533_v39 = vunpack.c.h.bf16 %v1540_v36  ;;  %v1778_v46 = vld [vmem:[%s2213_s5 + $0x10] sm:$0xff]   ;;  %v1781_v48 = vld [vmem:[%s2213_s5 + $0x40] sm:$0xff]  }
 0x146   : > { %932 = vmatpush1.bf16.msra.mxu0 %v1757_v27  ;;  %v810_v12 = vpack.c.bf16 %v798_v10, %v797_v9  ;;  %v811_v21 = vpack.c.bf16 %v800_v18, %v799_v17  ;;  %v802_v27 = vadd.f32 %v1525_v23, %v754_v25  ;;  %v831_v54 = vld [vmem:[%s2212_s4] sm:$0x3] }
 0x147   : > { %933 = vmatprep.subr.bf16.mxu0 %v1758_v28  ;;  %1564 = vmatpush3.bf16.msra.mxu1 %v1774_v49  ;;  %v1539_v28 = vld [vmem:[%s1972_s23 + $0x30] sm:$0xff]   ;;  %v1782_v49 = vld [vmem:[%s2213_s5] sm:$0xff]  }
 0x148   : > { %1565 = vmatprep.subr.bf16.mxu1 %v1775_v52  ;;  %v1529_v31 = vunpack.c.h.bf16 %v1539_v28  ;;  %v839_v52 = vsub.s32 1, %v834_v51 }
 0x14a   : > { %934 = vmatpush1.bf16.msra.mxu0 %v1760_v29  ;;  %v812_v29 = vpack.c.bf16 %v802_v27, %v801_v26  ;;  %v804_v35 = vadd.f32 %v1529_v31, %v756_v33  ;;  %v2114_v56 = vrot.slane %v831_v54, %v839_v52 }
 0x14b   : > { %935 = vmatprep.subr.bf16.mxu0 %v1761_v30  ;;  %1566 = vmatpush3.bf16.msra.mxu1 %v1776_v58  ;;  %v1528_v30 = vunpack.c.l.bf16 %v1539_v28 }
 0x14c   : > { %1567 = vmatprep.subr.bf16.mxu1 %v1777_v45 }
 0x14e   : > { %936 = vmatpush1.bf16.msra.mxu0 %v1763_v34  ;;  %v803_v34 = vadd.f32 %v1528_v30, %v755_v32 }
 0x14f   : > { %937 = vmatprep.subr.bf16.mxu0 %v1764_v42  ;;  %v805_v42 = vadd.f32 %v1532_v38, %v757_v40  ;;  %1568 = vmatpush3.bf16.msra.mxu1 %v1778_v46 }
 0x150   : > { %v813_v37 = vpack.c.bf16 %v804_v35, %v803_v34  ;;  %1569 = vmatprep.subr.bf16.mxu1 %v1779_v47 }
 0x152   : > { %938 = vmatpush1.bf16.msra.mxu0 %v1766_v43  ;;  %v806_v43 = vadd.f32 %v1533_v39, %v758_v41 }
 0x154   : > { %v814_v44 = vpack.c.bf16 %v806_v43, %v805_v42 }
 0x155   : > { %956 = vmatmul.mubr.bf16.vlgmr.msra.gmra.mxu0 %v807_v53  ;;  %v835_v53 = vsub.s32 0, %v834_v51 }
 0x156   : > { %965 = vmatprep.mubr.bf16.mxu0 %v1840_v19 }
 0x157   : > { %v2116_v57 = vrot.slane %v831_v54, %v835_v53 }
 0x15d   : > { %966 = vmatmul.mubr.bf16.gmra.mxu0 %v808_v60 }
 0x15e   : > { %975 = vmatprep.mubr.bf16.mxu0 %v1840_v19 }
 0x165   : > { %976 = vmatmul.mubr.bf16.gmra.mxu0 %v809_v4 }
 0x166   : > { %985 = vmatprep.mubr.bf16.mxu0 %v1840_v19 }
 0x16d   : > { %986 = vmatmul.mubr.bf16.gmra.mxu0 %v810_v12 }
 0x16e   : > { %995 = vmatprep.mubr.bf16.mxu0 %v1840_v19 }
 0x175   : > { %996 = vmatmul.mubr.bf16.gmra.mxu0 %v811_v21 }
 0x176   : > { %1005 = vmatprep.mubr.bf16.mxu0 %v1840_v19 }
 0x17d   : > { %1006 = vmatmul.mubr.bf16.gmra.mxu0 %v812_v29 }
 0x17e   : > { %1015 = vmatprep.mubr.bf16.mxu0 %v1840_v19 }
 0x185   : > { %1016 = vmatmul.mubr.bf16.gmra.mxu0 %v813_v37 }
 0x186   : > { %1025 = vmatprep.mubr.bf16.mxu0 %v1840_v19  ;;  %v1780_v19 = vld [vmem:[%s2213_s5 + $0x8] sm:$0xff]  }
 0x187   : > { %1570 = vmatpush3.bf16.msra.mxu1 %v1780_v19 }
 0x188   : > { %1571 = vmatprep.subr.bf16.mxu1 %v1781_v48 }
 0x18b   : > { %1572 = vmatpush3.bf16.msra.mxu1 %v1782_v49 }
 0x18d   : > { %1026 = vmatmul.mubr.bf16.gmra.mxu0 %v814_v44 }
 0x215   : > { %v957_v55 = vpop.f32.mrf.mxu0 }
 0x216   : > { %v958_v62 = vadd.f32 %v957_v55, %v2116_v57 }
 0x217   : > { %v959_v58 = vpop.f32.mrf.mxu0 }
 0x218   : > { %v960_v60 = vadd.f32 %v959_v58, %v2114_v56  ;;  %v1036_v5 = vmax.f32 %v958_v62, 0.0 }
 0x219   : > { %v961_v59 = vpop.f32.mrf.mxu0 }
 0x21a   : > { %v962_v61 = vadd.f32 %v961_v59, %v2116_v57  ;;  %v1037_v3 = vmax.f32 %v960_v60, 0.0 }
 0x21b   : > { %v963_v63 = vpop.f32.mrf.mxu0 }
 0x21c   : > { %v964_v0 = vadd.f32 %v963_v63, %v2114_v56  ;;  %v1038_v1 = vmax.f32 %v962_v61, 0.0 }
 0x21d   : > { %v967_v2 = vpop.f32.mrf.mxu0 }
 0x21e   : > { %v1039_v4 = vmax.f32 %v964_v0, 0.0  ;;  %v1068_v8 = vpack.c.bf16 %v1038_v1, %v1036_v5  ;;  %v968_v12 = vadd.f32 %v967_v2, %v2116_v57 }
 0x21f   : > { %v969_v6 = vpop.f32.mrf.mxu0 }
 0x220   : > { %v1069_v7 = vpack.c.bf16 %v1039_v4, %v1037_v3  ;;  %v970_v10 = vadd.f32 %v969_v6, %v2114_v56  ;;  %v1040_v20 = vmax.f32 %v968_v12, 0.0 }
 0x221   : > { %v971_v9 = vpop.f32.mrf.mxu0 }
 0x222   : > { %v972_v11 = vadd.f32 %v971_v9, %v2116_v57  ;;  %1251 = vmatprep.mubr.bf16.mxu1 %v1069_v7  ;;  %v1041_v17 = vmax.f32 %v970_v10, 0.0 }
 0x223   : > { %v973_v13 = vpop.f32.mrf.mxu0  ;;  %1252 = vmatmul.mubr.bf16.vlgmr.msra.gmra.mxu1 %v1068_v8 }
 0x224   : > { %v974_v14 = vadd.f32 %v973_v13, %v2114_v56  ;;  %v1042_v15 = vmax.f32 %v972_v11, 0.0 }
 0x225   : > { %v977_v16 = vpop.f32.mrf.mxu0 }
 0x226   : > { %v1043_v18 = vmax.f32 %v974_v14, 0.0  ;;  %v1070_v23 = vpack.c.bf16 %v1042_v15, %v1040_v20  ;;  %v978_v27 = vadd.f32 %v977_v16, %v2116_v57 }
 0x227   : > { %v979_v21 = vpop.f32.mrf.mxu0 }
 0x228   : > { %v1071_v22 = vpack.c.bf16 %v1043_v18, %v1041_v17  ;;  %v980_v25 = vadd.f32 %v979_v21, %v2114_v56  ;;  %v1044_v34 = vmax.f32 %v978_v27, 0.0 }
 0x229   : > { %v981_v24 = vpop.f32.mrf.mxu0 }
 0x22a   : > { %v982_v26 = vadd.f32 %v981_v24, %v2116_v57  ;;  %1259 = vmatprep.mubr.bf16.mxu1 %v1071_v22  ;;  %v1045_v32 = vmax.f32 %v980_v25, 0.0 }
 0x22b   : > { %v983_v28 = vpop.f32.mrf.mxu0  ;;  %1260 = vmatmul.mubr.bf16.gmra.mxu1 %v1070_v23 }
 0x22c   : > { %v984_v29 = vadd.f32 %v983_v28, %v2114_v56  ;;  %v1046_v30 = vmax.f32 %v982_v26, 0.0 }
 0x22d   : > { %v987_v31 = vpop.f32.mrf.mxu0 }
 0x22e   : > { %v1047_v33 = vmax.f32 %v984_v29, 0.0  ;;  %v1072_v37 = vpack.c.bf16 %v1046_v30, %v1044_v34  ;;  %v988_v41 = vadd.f32 %v987_v31, %v2116_v57 }
 0x22f   : > { %v989_v35 = vpop.f32.mrf.mxu0 }
 0x230   : > { %v1073_v36 = vpack.c.bf16 %v1047_v33, %v1045_v32  ;;  %v990_v39 = vadd.f32 %v989_v35, %v2114_v56  ;;  %v1048_v19 = vmax.f32 %v988_v41, 0.0 }
 0x231   : > { %v991_v38 = vpop.f32.mrf.mxu0 }
 0x232   : > { %v992_v40 = vadd.f32 %v991_v38, %v2116_v57  ;;  %1267 = vmatprep.mubr.bf16.mxu1 %v1073_v36  ;;  %v1049_v46 = vmax.f32 %v990_v39, 0.0 }
 0x233   : > { %v993_v42 = vpop.f32.mrf.mxu0  ;;  %1268 = vmatmul.mubr.bf16.gmra.mxu1 %v1072_v37 }
 0x234   : > { %v994_v43 = vadd.f32 %v993_v42, %v2114_v56  ;;  %v1050_v44 = vmax.f32 %v992_v40, 0.0 }
 0x235   : > { %v997_v45 = vpop.f32.mrf.mxu0 }
 0x236   : > { %v1051_v47 = vmax.f32 %v994_v43, 0.0  ;;  %v1074_v50 = vpack.c.bf16 %v1050_v44, %v1048_v19  ;;  %v998_v54 = vadd.f32 %v997_v45, %v2116_v57  ;;  %v2153_v45 = vld [vmem:[%s2214_s6] ss:$0 sm:$0xff] }
 0x237   : > { %v999_v48 = vpop.f32.mrf.mxu0 }
 0x238   : > { %v1075_v49 = vpack.c.bf16 %v1051_v47, %v1049_v46  ;;  %v1000_v52 = vadd.f32 %v999_v48, %v2114_v56  ;;  %v1052_v63 = vmax.f32 %v998_v54, 0.0 }
 0x239   : > { %v1001_v51 = vpop.f32.mrf.mxu0 }
 0x23a   : > { %v1002_v53 = vadd.f32 %v1001_v51, %v2116_v57  ;;  %1275 = vmatprep.mubr.bf16.mxu1 %v1075_v49  ;;  %v1053_v61 = vmax.f32 %v1000_v52, 0.0 }
 0x23b   : > { %v1003_v55 = vpop.f32.mrf.mxu0  ;;  %1276 = vmatmul.mubr.bf16.gmra.mxu1 %v1074_v50 }
 0x23c   : > { %v1004_v58 = vadd.f32 %v1003_v55, %v2114_v56  ;;  %v1054_v59 = vmax.f32 %v1002_v53, 0.0 }
 0x23d   : > { %v1007_v60 = vpop.f32.mrf.mxu0 }
 0x23e   : > { %v1055_v62 = vmax.f32 %v1004_v58, 0.0  ;;  %v1076_v2 = vpack.c.bf16 %v1054_v59, %v1052_v63  ;;  %v1008_v6 = vadd.f32 %v1007_v60, %v2116_v57 }
 0x23f   : > { %v1009_v0 = vpop.f32.mrf.mxu0 }
 0x240   : > { %v1077_v1 = vpack.c.bf16 %v1055_v62, %v1053_v61  ;;  %v1010_v4 = vadd.f32 %v1009_v0, %v2114_v56  ;;  %v1056_v13 = vmax.f32 %v1008_v6, 0.0 }
 0x241   : > { %v1011_v3 = vpop.f32.mrf.mxu0 }
 0x242   : > { %v1012_v5 = vadd.f32 %v1011_v3, %v2116_v57  ;;  %1283 = vmatprep.mubr.bf16.mxu1 %v1077_v1  ;;  %v1057_v11 = vmax.f32 %v1010_v4, 0.0 }
 0x243   : > { %v1013_v7 = vpop.f32.mrf.mxu0  ;;  %1284 = vmatmul.mubr.bf16.gmra.mxu1 %v1076_v2 }
 0x244   : > { %v1014_v8 = vadd.f32 %v1013_v7, %v2114_v56  ;;  %v1058_v9 = vmax.f32 %v1012_v5, 0.0 }
 0x245   : > { %v1017_v10 = vpop.f32.mrf.mxu0 }
 0x246   : > { %v1059_v12 = vmax.f32 %v1014_v8, 0.0  ;;  %v1078_v16 = vpack.c.bf16 %v1058_v9, %v1056_v13  ;;  %v1018_v21 = vadd.f32 %v1017_v10, %v2116_v57 }
 0x247   : > { %v1019_v14 = vpop.f32.mrf.mxu0 }
 0x248   : > { %v1079_v15 = vpack.c.bf16 %v1059_v12, %v1057_v11  ;;  %v1020_v18 = vadd.f32 %v1019_v14, %v2114_v56  ;;  %v1060_v28 = vmax.f32 %v1018_v21, 0.0 }
 0x249   : > { %v1021_v17 = vpop.f32.mrf.mxu0 }
 0x24a   : > { %v1022_v20 = vadd.f32 %v1021_v17, %v2116_v57  ;;  %1291 = vmatprep.mubr.bf16.mxu1 %v1079_v15  ;;  %v1061_v26 = vmax.f32 %v1020_v18, 0.0 }
 0x24b   : > { %v1023_v22 = vpop.f32.mrf.mxu0  ;;  %1292 = vmatmul.mubr.bf16.gmra.mxu1 %v1078_v16 }
 0x24c   : > { %v1024_v23 = vadd.f32 %v1023_v22, %v2114_v56  ;;  %v1062_v24 = vmax.f32 %v1022_v20, 0.0 }
 0x24d   : > { %v1027_v25 = vpop.f32.mrf.mxu0 }
 0x24e   : > { %v1063_v27 = vmax.f32 %v1024_v23, 0.0  ;;  %v1080_v31 = vpack.c.bf16 %v1062_v24, %v1060_v28  ;;  %v1028_v35 = vadd.f32 %v1027_v25, %v2116_v57 }
 0x24f   : > { %v1029_v29 = vpop.f32.mrf.mxu0 }
 0x250   : > { %v1081_v30 = vpack.c.bf16 %v1063_v27, %v1061_v26  ;;  %v1030_v33 = vadd.f32 %v1029_v29, %v2114_v56  ;;  %v1064_v41 = vmax.f32 %v1028_v35, 0.0 }
 0x251   : > { %v1031_v32 = vpop.f32.mrf.mxu0 }
 0x252   : > { %v1032_v34 = vadd.f32 %v1031_v32, %v2116_v57  ;;  %1299 = vmatprep.mubr.bf16.mxu1 %v1081_v30  ;;  %v1065_v39 = vmax.f32 %v1030_v33, 0.0 }
 0x253   : > { %v1033_v36 = vpop.f32.mrf.mxu0  ;;  %1300 = vmatmul.mubr.bf16.gmra.mxu1 %v1080_v31 }
 0x254   : > { %v1034_v37 = vadd.f32 %v1033_v36, %v2114_v56  ;;  %v1066_v38 = vmax.f32 %v1032_v34, 0.0 }
 0x256   : > { %v1067_v40 = vmax.f32 %v1034_v37, 0.0  ;;  %v1082_v43 = vpack.c.bf16 %v1066_v38, %v1064_v41 }
 0x258   : > { %v1083_v42 = vpack.c.bf16 %v1067_v40, %v1065_v39 }
 0x25a   : > { %1307 = vmatprep.mubr.bf16.mxu1 %v1083_v42 }
 0x25b   : > { %1308 = vmatmul.mubr.bf16.gmra.mxu1 %v1082_v43 }
 0x2e3   : > { %v1573_v44 = vpop.f32.mrf.mxu1 }
 0x2e5   : > { %v1574_v57 = vpop.f32.mrf.mxu1 }
 0x2e6   : > { %v1575_v46 = vadd.f32 %v1574_v57, %v1573_v44 }
 0x2e7   : > { %v1576_v56 = vpop.f32.mrf.mxu1 }
 0x2e8   : > { %v1254_v47 = vadd.f32 %v1575_v46, %v2153_v45 }
 0x2e9   : > { %v1577_v19 = vpop.f32.mrf.mxu1 }
 0x2ea   : > { %1316 = vst [vmem:[%s1977_s27] sm:$0xff] %v1254_v47  ;;  %v1578_v48 = vadd.f32 %v1577_v19, %v1576_v56 }
 0x2eb   : > { %v1579_v49 = vpop.f32.mrf.mxu1 }
 0x2ec   : > { %v1257_v50 = vadd.f32 %v1578_v48, %v2153_v45 }
 0x2ed   : > { %v1580_v51 = vpop.f32.mrf.mxu1 }
 0x2ee   : > { %1317 = vst [vmem:[%s1977_s27 + $0x8] sm:$0xff] %v1257_v50  ;;  %v1581_v52 = vadd.f32 %v1580_v51, %v1579_v49 }
 0x2ef   : > { %v1582_v53 = vpop.f32.mrf.mxu1 }
 0x2f0   : > { %v1262_v54 = vadd.f32 %v1581_v52, %v2153_v45 }
 0x2f1   : > { %v1583_v55 = vpop.f32.mrf.mxu1 }
 0x2f2   : > { %1318 = vst [vmem:[%s1977_s27 + $0x10] sm:$0xff] %v1262_v54  ;;  %v1584_v58 = vadd.f32 %v1583_v55, %v1582_v53 }
 0x2f3   : > { %v1585_v59 = vpop.f32.mrf.mxu1 }
 0x2f4   : > { %v1265_v60 = vadd.f32 %v1584_v58, %v2153_v45 }
 0x2f5   : > { %v1586_v61 = vpop.f32.mrf.mxu1 }
 0x2f6   : > { %1319 = vst [vmem:[%s1977_s27 + $0x18] sm:$0xff] %v1265_v60  ;;  %v1587_v62 = vadd.f32 %v1586_v61, %v1585_v59 }
 0x2f7   : > { %v1588_v63 = vpop.f32.mrf.mxu1 }
 0x2f8   : > { %v1270_v0 = vadd.f32 %v1587_v62, %v2153_v45 }
 0x2f9   : > { %v1589_v1 = vpop.f32.mrf.mxu1 }
 0x2fa   : > { %1320 = vst [vmem:[%s1977_s27 + $0x20] sm:$0xff] %v1270_v0  ;;  %v1590_v2 = vadd.f32 %v1589_v1, %v1588_v63 }
 0x2fb   : > { %v1591_v3 = vpop.f32.mrf.mxu1 }
 0x2fc   : > { %v1273_v4 = vadd.f32 %v1590_v2, %v2153_v45 }
 0x2fd   : > { %v1592_v5 = vpop.f32.mrf.mxu1 }
 0x2fe   : > { %1321 = vst [vmem:[%s1977_s27 + $0x28] sm:$0xff] %v1273_v4  ;;  %v1593_v6 = vadd.f32 %v1592_v5, %v1591_v3 }
 0x2ff   : > { %v1594_v7 = vpop.f32.mrf.mxu1 }
 0x300   : > { %v1278_v8 = vadd.f32 %v1593_v6, %v2153_v45 }
 0x301   : > { %v1595_v9 = vpop.f32.mrf.mxu1 }
 0x302   : > { %1322 = vst [vmem:[%s1977_s27 + $0x30] sm:$0xff] %v1278_v8  ;;  %v1596_v10 = vadd.f32 %v1595_v9, %v1594_v7 }
 0x303   : > { %v1597_v11 = vpop.f32.mrf.mxu1 }
 0x304   : > { %v1281_v12 = vadd.f32 %v1596_v10, %v2153_v45 }
 0x305   : > { %v1598_v13 = vpop.f32.mrf.mxu1 }
 0x306   : > { %1323 = vst [vmem:[%s1977_s27 + $0x38] sm:$0xff] %v1281_v12  ;;  %v1599_v14 = vadd.f32 %v1598_v13, %v1597_v11 }
 0x307   : > { %v1600_v15 = vpop.f32.mrf.mxu1 }
 0x308   : > { %v1286_v16 = vadd.f32 %v1599_v14, %v2153_v45 }
 0x309   : > { %v1601_v17 = vpop.f32.mrf.mxu1 }
 0x30a   : > { %1324 = vst [vmem:[%s1977_s27 + $0x40] sm:$0xff] %v1286_v16  ;;  %v1602_v18 = vadd.f32 %v1601_v17, %v1600_v15 }
 0x30b   : > { %v1603_v20 = vpop.f32.mrf.mxu1 }
 0x30c   : > { %v1289_v21 = vadd.f32 %v1602_v18, %v2153_v45 }
 0x30d   : > { %v1604_v22 = vpop.f32.mrf.mxu1 }
 0x30e   : > { %1325 = vst [vmem:[%s1977_s27 + $0x48] sm:$0xff] %v1289_v21  ;;  %v1605_v23 = vadd.f32 %v1604_v22, %v1603_v20 }
 0x30f   : > { %v1606_v24 = vpop.f32.mrf.mxu1 }
 0x310   : > { %v1294_v25 = vadd.f32 %v1605_v23, %v2153_v45 }
 0x311   : > { %v1607_v26 = vpop.f32.mrf.mxu1 }
 0x312   : > { %1326 = vst [vmem:[%s1977_s27 + $0x50] sm:$0xff] %v1294_v25  ;;  %v1608_v27 = vadd.f32 %v1607_v26, %v1606_v24 }
 0x313   : > { %v1609_v28 = vpop.f32.mrf.mxu1 }
 0x314   : > { %v1297_v29 = vadd.f32 %v1608_v27, %v2153_v45 }
 0x315   : > { %v1610_v30 = vpop.f32.mrf.mxu1 }
 0x316   : > { %1327 = vst [vmem:[%s1977_s27 + $0x58] sm:$0xff] %v1297_v29  ;;  %v1611_v31 = vadd.f32 %v1610_v30, %v1609_v28 }
 0x317   : > { %v1612_v32 = vpop.f32.mrf.mxu1 }
 0x318   : > { %v1302_v33 = vadd.f32 %v1611_v31, %v2153_v45 }
 0x319   : > { %v1613_v34 = vpop.f32.mrf.mxu1 }
 0x31a   : > { %1328 = vst [vmem:[%s1977_s27 + $0x60] sm:$0xff] %v1302_v33  ;;  %v1614_v35 = vadd.f32 %v1613_v34, %v1612_v32 }
 0x31b   : > { %v1615_v36 = vpop.f32.mrf.mxu1 }
 0x31c   : > { %v1305_v37 = vadd.f32 %v1614_v35, %v2153_v45 }
 0x31d   : > { %v1616_v38 = vpop.f32.mrf.mxu1 }
 0x31e   : > { %1329 = vst [vmem:[%s1977_s27 + $0x68] sm:$0xff] %v1305_v37  ;;  %v1617_v39 = vadd.f32 %v1616_v38, %v1615_v36 }
 0x31f   : > { %v1618_v40 = vpop.f32.mrf.mxu1 }
 0x320   : > { %v1310_v41 = vadd.f32 %v1617_v39, %v2153_v45 }
 0x321   : > { %v1619_v42 = vpop.f32.mrf.mxu1 }
 0x322   : > { %1330 = vst [vmem:[%s1977_s27 + $0x70] sm:$0xff] %v1310_v41  ;;  %v1620_v43 = vadd.f32 %v1619_v42, %v1618_v40 }
 0x324   : > { %v1313_v44 = vadd.f32 %v1620_v43, %v2153_v45 }
 0x326   : > { %1331 = vst [vmem:[%s1977_s27 + $0x78] sm:$0xff] %v1313_v44 }
 0x327 PF: > { %s17_s30 = sadd.s32 1, %s1837_s30   ;;  %s2218_s24 = smov %s1817_s25 }
 0x328   : > { %p14_p0 = scmp.ge.s32.totalorder %s17_s30, 6   ;;  %s2219_s25 = smov %s1932_s14 }
 0x329   : > { %s2220_s26 = smov %s1829_s28  ;;  %s2221_s27 = smov %s1833_s29 }
 0x32a   : > { %s2222_s28 = smov %s2225_s8  ;;  %s2223_s29 = smov %s2229_s9 }
 0x32b   :  { %16 = sbr.rel (!%p14_p0) target bundleno = 6 (0x6), region = 138 }

</bundles_post_ra>
